<compile_context>
chip_gen: v5e
topology: v5e:2x2
jax: 0.10.0
libtpu: 0.0.40
codegen_flags: <defaults>
</compile_context>

<pallas_src>
import math

import numpy as np
import jax
import jax.numpy as jnp
from jax.experimental import pallas as pl
from jax.experimental.pallas import tpu as pltpu

# ----------------------------- small config ---------------------------------
B = 2                      # batch
C = 3                      # pixel channels
IMG = 16                   # canvas H == W
VIT_PATCH = 4              # vit.config.patch_size
AGENT_PATCH = (8, 8)       # `patch_size` constructor arg
PATCH_H = AGENT_PATCH[0] // VIT_PATCH   # 2
PATCH_W = AGENT_PATCH[1] // VIT_PATCH   # 2
GRID = IMG // VIT_PATCH                 # 4
N = GRID * GRID                         # 16 patches
S = N + 1                               # + CLS token
S_PAD = 24                              # S padded to a multiple of 8
P = C * VIT_PATCH * VIT_PATCH           # 48 (flattened patch dim)
D = 32                     # hidden_size
HEADS = 4
HEAD_DIM = D // HEADS
MLP = 64                   # intermediate size
LAYERS = 2
N_LAST = 3                 # n_last_positions
LN_EPS = 1e-12             # HF ViT layer_norm_eps

# -------- packed "vec_d" buffer layout (all rows are D=32 lanes wide) --------
OFF_CONST = 0                               # (B*S_PAD, D) additive embed slab
OFF_HMASK = OFF_CONST + B * S_PAD           # (HEADS*S_PAD, D) block-diag head mask
OFF_MAE = OFF_HMASK + HEADS * S_PAD         # (N, D) mae_pos_emb
OFF_ORD = OFF_MAE + N                       # (N_LAST, D) order embeddings
OFF_LNF = OFF_ORD + N_LAST                  # final LN gamma / beta
OFF_LYR = OFF_LNF + 2                       # per-layer: ln1_g, ln1_b, bo, ln2_g, ln2_b, b2
VEC_ROWS = OFF_LYR + 6 * LAYERS             # 177 rows total


# ------------------------- 2D sincos position embed -------------------------
def _get_1d_sincos(embed_dim, pos):
    omega = np.arange(embed_dim // 2, dtype=np.float64) / (embed_dim / 2.0)
    omega = 1.0 / 10000 ** omega
    pos = pos.reshape(-1)
    out = np.einsum("m,d->md", pos, omega)
    return np.concatenate([np.sin(out), np.cos(out)], axis=1)


def get_2d_sincos_pos_embed(embed_dim, grid_size, add_cls_token=False):
    gh = np.arange(grid_size, dtype=np.float64)
    gw = np.arange(grid_size, dtype=np.float64)
    grid = np.meshgrid(gw, gh)                       # w goes first (MAE convention)
    grid = np.stack(grid, axis=0).reshape(2, 1, grid_size, grid_size)
    emb_h = _get_1d_sincos(embed_dim // 2, grid[0])
    emb_w = _get_1d_sincos(embed_dim // 2, grid[1])
    emb = np.concatenate([emb_h, emb_w], axis=1)     # (N, D)
    if add_cls_token:
        emb = np.concatenate([np.zeros([1, embed_dim]), emb], axis=0)
    return emb.astype(np.float32)


# ------------------------------ fused kernel ---------------------------------
def _layer_norm(x, g, b):
    mu = jnp.mean(x, axis=-1, keepdims=True)
    var = jnp.mean(jnp.square(x - mu), axis=-1, keepdims=True)
    return (x - mu) * jax.lax.rsqrt(var + LN_EPS) * g + b


def _fused_forward_kernel(patches_ref, w_pe_ref, wqkv_ref, wo_ref, w1_ref, w2_ref,
                          vec_d_ref, bqkv_ref, b1_ref, idx_ref, pmask_ref, o_ref):
    scale = 1.0 / math.sqrt(HEAD_DIM)

    # ---- packed constants / parameters (static ref slices) ----
    const_add = vec_d_ref[OFF_CONST:OFF_CONST + B * S_PAD, :]       # (48, D)
    head_mask = vec_d_ref[OFF_HMASK:OFF_HMASK + HEADS * S_PAD, :]   # (96, D)
    mae_pos = vec_d_ref[OFF_MAE:OFF_MAE + N, :]                     # (N, D)
    ord_emb = vec_d_ref[OFF_ORD:OFF_ORD + N_LAST, :]                # (N_LAST, D)
    lnf_g = vec_d_ref[OFF_LNF:OFF_LNF + 1, :]
    lnf_b = vec_d_ref[OFF_LNF + 1:OFF_LNF + 2, :]

    # additive key-padding mask: real tokens (incl. CLS at row N) = 0, pad = -1e9
    key_iota = jax.lax.broadcasted_iota(jnp.int32, (1, S_PAD), 1)
    key_mask = jnp.where(key_iota < S, 0.0, -1e9).astype(jnp.float32)   # (1, S_PAD)

    # ---- patch embedding, batch folded; CLS + pos + bias baked into const_add ----
    x = jnp.dot(patches_ref[...], w_pe_ref[...],
                preferred_element_type=jnp.float32) + const_add         # (48, D)

    for l in range(LAYERS):                      # static unroll over layers
        off = OFF_LYR + 6 * l
        ln1_g = vec_d_ref[off + 0:off + 1, :]
        ln1_b = vec_d_ref[off + 1:off + 2, :]
        bo = vec_d_ref[off + 2:off + 3, :]
        ln2_g = vec_d_ref[off + 3:off + 4, :]
        ln2_b = vec_d_ref[off + 4:off + 5, :]
        b2 = vec_d_ref[off + 5:off + 6, :]

        # ---- attention: fused QKV on the batch-folded slab ----
        h = _layer_norm(x, ln1_g, ln1_b)                                 # (48, D)
        qkv = jnp.dot(h, wqkv_ref[l],
                      preferred_element_type=jnp.float32) + bqkv_ref[l:l + 1, :]   # (48, 3D)

        ctx_parts = []
        for b in range(B):                       # per-batch score/softmax/PV only
            qkv_b = qkv[b * S_PAD:(b + 1) * S_PAD, :]                    # (24, 3D)
            q = qkv_b[:, 0:D] * scale
            k = qkv_b[:, D:2 * D]
            v = qkv_b[:, 2 * D:3 * D]

            # heads-on-sublanes: one score matmul / softmax / PV for ALL heads
            qt = jnp.concatenate([q] * HEADS, axis=0) * head_mask        # (96, D)
            s = jax.lax.dot_general(qt, k, (((1,), (1,)), ((), ())),
                                    preferred_element_type=jnp.float32)  # (96, 24)
            s = s + key_mask
            m = jnp.max(s, axis=-1, keepdims=True)
            p = jnp.exp(s - m)
            denom = jnp.sum(p, axis=-1, keepdims=True)
            pv = jnp.dot(p, v, preferred_element_type=jnp.float32)       # (96, D)
            pv = pv * pl.reciprocal(denom, approx=True) * head_mask
            ctx_b = (pv[0:S_PAD] + pv[S_PAD:2 * S_PAD]
                     + pv[2 * S_PAD:3 * S_PAD] + pv[3 * S_PAD:4 * S_PAD])  # (24, D)
            ctx_parts.append(ctx_b)
        ctx = jnp.concatenate(ctx_parts, axis=0)                          # (48, D)

        x = x + jnp.dot(ctx, wo_ref[l], preferred_element_type=jnp.float32) + bo

        # ---- MLP on the batch-folded slab ----
        h2 = _layer_norm(x, ln2_g, ln2_b)
        mlp = jnp.dot(h2, w1_ref[l],
                      preferred_element_type=jnp.float32) + b1_ref[l:l + 1, :]   # (48, MLP)
        mlp = jax.nn.gelu(mlp, approximate=True)
        x = x + jnp.dot(mlp, w2_ref[l], preferred_element_type=jnp.float32) + b2

    # ---- final LayerNorm ----
    hidden = _layer_norm(x, lnf_g, lnf_b)                                 # (48, D)

    # ---- order-embedding scatter_add as one-hot matmul, + mae_pos_emb ----
    row_iota = jax.lax.broadcasted_iota(jnp.int32, (N, 1), 0)
    for b in range(B):
        lhs_b = hidden[b * S_PAD:b * S_PAD + N, :]                        # (N, D)
        idx_row = idx_ref[b:b + 1, :]                                     # (1, N_LAST)
        keep = (pmask_ref[b:b + 1, :] == 0).astype(jnp.float32)           # (1, N_LAST)
        onehot = (row_iota == idx_row).astype(jnp.float32) * keep         # (N, N_LAST)
        add = jnp.dot(onehot, ord_emb, preferred_element_type=jnp.float32)  # (N, D)
        o_ref[b] = lhs_b + mae_pos + add


def fused_forward(packed, patches_slab, idx, pmask):
    vmem = pl.BlockSpec(memory_space=pltpu.MemorySpace.VMEM)
    return pl.pallas_call(
        _fused_forward_kernel,
        out_shape=jax.ShapeDtypeStruct((B, N, D), jnp.float32),
        in_specs=[vmem] * 11,
        out_specs=vmem,
    )(patches_slab, packed["w_pe"], packed["wqkv"], packed["wo"],
      packed["w1"], packed["w2"], packed["vec_d"], packed["bqkv"], packed["b1"],
      idx, pmask)


# ------------------------------ forward pass ---------------------------------
def patchify(canvas):
    # NCHW -> (B, N, C*p*p), flatten order (c, ph, pw) like Conv2d patch embed.
    b, c, _, _ = canvas.shape
    x = canvas.reshape(b, c, GRID, VIT_PATCH, GRID, VIT_PATCH)
    x = x.transpose(0, 2, 4, 1, 3, 5)
    return x.reshape(b, GRID * GRID, c * VIT_PATCH * VIT_PATCH)


def build_indices(row, col):
    w = IMG // VIT_PATCH
    i = row * PATCH_H
    j = col * PATCH_W
    return i * w + j + (PATCH_H // 2) * w + PATCH_W // 2


def order_embedding_forward(packed, obs):
    history = obs["history"]
    kmask = history["kmask"][:, ::VIT_PATCH, ::VIT_PATCH].reshape(B, -1)
    canvas = history["history"].astype(jnp.float32)

    patches = patchify(canvas)                                     # (B, N, P)
    patches_slab = jnp.pad(patches, ((0, 0), (0, S_PAD - N), (0, 0)))
    patches_slab = patches_slab.reshape(B * S_PAD, P)              # (48, P)

    last_positions = history["last_positions"]
    idx = build_indices(last_positions[..., 0], last_positions[..., 1]).astype(jnp.int32)
    pmask = history["padded_mask"].astype(jnp.int32)

    lhs = fused_forward(packed, patches_slab, idx, pmask)

    running_kmask = None   # 'running_kmask' not in history in this example
    urdl = None
    return (lhs, kmask, idx, urdl, running_kmask)


# ----------------------------- parameter init --------------------------------
def init_params(key):
    keys = jax.random.split(key, 3 + LAYERS)
    scale = 0.02
    vit_pos = get_2d_sincos_pos_embed(D, GRID, add_cls_token=True)    # (S, D)
    mae_pos = get_2d_sincos_pos_embed(D, GRID, add_cls_token=False)   # (N, D)

    ln1_g, ln1_b, wqkv, bqkv, wo, bo = [], [], [], [], [], []
    ln2_g, ln2_b, w1, b1, w2, b2 = [], [], [], [], [], []
    for l in range(LAYERS):
        ks = jax.random.split(keys[3 + l], 6)
        wq = scale * jax.random.normal(ks[0], (D, D), jnp.float32)
        wk = scale * jax.random.normal(ks[1], (D, D), jnp.float32)
        wv = scale * jax.random.normal(ks[2], (D, D), jnp.float32)
        wqkv.append(jnp.concatenate([wq, wk, wv], axis=1))            # (D, 3D)
        bqkv.append(jnp.zeros((1, 3 * D), jnp.float32))
        wo.append(scale * jax.random.normal(ks[3], (D, D), jnp.float32))
        bo.append(jnp.zeros((1, D), jnp.float32))
        w1.append(scale * jax.random.normal(ks[4], (D, MLP), jnp.float32))
        b1.append(jnp.zeros((1, MLP), jnp.float32))
        w2.append(scale * jax.random.normal(ks[5], (MLP, D), jnp.float32))
        b2.append(jnp.zeros((1, D), jnp.float32))
        ln1_g.append(jnp.ones((1, D), jnp.float32))
        ln1_b.append(jnp.zeros((1, D), jnp.float32))
        ln2_g.append(jnp.ones((1, D), jnp.float32))
        ln2_b.append(jnp.zeros((1, D), jnp.float32))

    return dict(
        w_pe=scale * jax.random.normal(keys[0], (P, D), jnp.float32),
        b_pe=jnp.zeros((1, D), jnp.float32),
        cls=scale * jax.random.normal(keys[1], (1, D), jnp.float32),
        vit_pos_cls=jnp.asarray(vit_pos[0:1]),        # (1, D)
        vit_pos_patch=jnp.asarray(vit_pos[1:]),       # (N, D)
        ln_f_g=jnp.ones((1, D), jnp.float32),
        ln_f_b=jnp.zeros((1, D), jnp.float32),
        # nn.Parameter(torch.zeros(1, n_last, hidden)) in the module; a small
        # deterministic nonzero init is used so the scatter path is exercised.
        order_embeddings=scale * jax.random.normal(keys[2], (N_LAST, D), jnp.float32),
        mae_pos_emb=jnp.asarray(mae_pos),             # (N, D)
        ln1_g=jnp.stack(ln1_g), ln1_b=jnp.stack(ln1_b),
        wqkv=jnp.stack(wqkv), bqkv=jnp.stack(bqkv),
        wo=jnp.stack(wo), bo=jnp.stack(bo),
        ln2_g=jnp.stack(ln2_g), ln2_b=jnp.stack(ln2_b),
        w1=jnp.stack(w1), b1=jnp.stack(b1),
        w2=jnp.stack(w2), b2=jnp.stack(b2),
    )


def pack_params(p):
    """Pack the many small parameters into a few contiguous buffers (few DMAs)."""
    # additive embedding slab: patch rows get pos+bias, CLS row gets cls+pos, pad rows 0
    const_b = jnp.concatenate([
        p["vit_pos_patch"] + p["b_pe"],                       # (N, D)
        p["cls"] + p["vit_pos_cls"],                          # (1, D) CLS at row N
        jnp.zeros((S_PAD - N - 1, D), jnp.float32),           # pad rows
    ], axis=0)                                                 # (S_PAD, D)
    const_add = jnp.tile(const_b, (B, 1))                      # (B*S_PAD, D)

    # block-diagonal head mask: row block h keeps only columns of head h
    head_mask = jnp.asarray(np.kron(np.eye(HEADS, dtype=np.float32),
                                    np.ones((S_PAD, HEAD_DIM), np.float32)))  # (96, D)

    rows = [const_add, head_mask, p["mae_pos_emb"], p["order_embeddings"],
            p["ln_f_g"], p["ln_f_b"]]
    for l in range(LAYERS):
        rows += [p["ln1_g"][l], p["ln1_b"][l], p["bo"][l],
                 p["ln2_g"][l], p["ln2_b"][l], p["b2"][l]]
    vec_d = jnp.concatenate(rows, axis=0)                      # (VEC_ROWS, D)
    assert vec_d.shape == (VEC_ROWS, D)

    return dict(
        w_pe=p["w_pe"],                                        # (P, D)
        wqkv=p["wqkv"],                                        # (L, D, 3D)
        wo=p["wo"],                                            # (L, D, D)
        w1=p["w1"],                                            # (L, D, MLP)
        w2=p["w2"],                                            # (L, MLP, D)
        vec_d=vec_d,                                           # (177, D)
        bqkv=p["bqkv"].reshape(LAYERS, 3 * D),                 # (L, 3D)
        b1=p["b1"].reshape(LAYERS, MLP),                       # (L, MLP)
    )


# ---------------------------------- main --------------------------------------
if __name__ == "__main__":
    key = jax.random.PRNGKey(0)
    pk, ck, kk, lk = jax.random.split(key, 4)
    params = init_params(pk)
    packed = pack_params(params)

    canvas = jax.random.normal(ck, (B, C, IMG, IMG), jnp.float32)
    kmask_full = jax.random.bernoulli(kk, 0.5, (B, IMG, IMG))
    last_positions = jax.random.randint(lk, (B, N_LAST, 2), 0, IMG // AGENT_PATCH[0])
    padded_mask = jnp.array([[False, False, True],
                             [False, True, True]])

    obs = {"history": {"history": canvas,
                       "kmask": kmask_full,
                       "last_positions": last_positions,
                       "padded_mask": padded_mask}}

    lhs, kmask, idx, urdl, running_kmask = order_embedding_forward(packed, obs)
    jax.block_until_ready(lhs)
    jax.block_until_ready(kmask)
    jax.block_until_ready(idx)
    assert lhs.shape == (B, N, D) and kmask.shape == (B, N) and idx.shape == (B, N_LAST)
    assert bool(jnp.isfinite(lhs).all())
    print("KERNEL_OK")
</pallas_src>

<mosaic_0001>
module attributes {stable_mosaic.version = 11 : i64} {
  func.func @_fused_forward_kernel(%arg0: memref<48x48xf32, #tpu.memory_space<vmem>>, %arg1: memref<48x32xf32, #tpu.memory_space<vmem>>, %arg2: memref<2x32x96xf32, #tpu.memory_space<vmem>>, %arg3: memref<2x32x32xf32, #tpu.memory_space<vmem>>, %arg4: memref<2x32x64xf32, #tpu.memory_space<vmem>>, %arg5: memref<2x64x32xf32, #tpu.memory_space<vmem>>, %arg6: memref<177x32xf32, #tpu.memory_space<vmem>>, %arg7: memref<2x96xf32, #tpu.memory_space<vmem>>, %arg8: memref<2x64xf32, #tpu.memory_space<vmem>>, %arg9: memref<2x3xi32, #tpu.memory_space<vmem>>, %arg10: memref<2x3xi32, #tpu.memory_space<vmem>>, %arg11: memref<2x16x32xf32, #tpu.memory_space<vmem>>) attributes {dimension_semantics = [], scalar_prefetch = 0 : i64, scratch_operands = 0 : i64, tpu.core_type = #tpu.core_type<tc>} {
    %c0 = arith.constant 0 : index
    %c0_0 = arith.constant 0 : index
    %0 = vector.load %arg6[%c0, %c0_0] : memref<177x32xf32, #tpu.memory_space<vmem>>, vector<48x32xf32>
    %c48 = arith.constant 48 : index
    %c0_1 = arith.constant 0 : index
    %1 = vector.load %arg6[%c48, %c0_1] : memref<177x32xf32, #tpu.memory_space<vmem>>, vector<96x32xf32>
    %c144 = arith.constant 144 : index
    %c0_2 = arith.constant 0 : index
    %2 = vector.load %arg6[%c144, %c0_2] : memref<177x32xf32, #tpu.memory_space<vmem>>, vector<16x32xf32>
    %c160 = arith.constant 160 : index
    %c0_3 = arith.constant 0 : index
    %3 = vector.load %arg6[%c160, %c0_3] : memref<177x32xf32, #tpu.memory_space<vmem>>, vector<3x32xf32>
    %c163 = arith.constant 163 : index
    %c0_4 = arith.constant 0 : index
    %4 = vector.load %arg6[%c163, %c0_4] : memref<177x32xf32, #tpu.memory_space<vmem>>, vector<1x32xf32>
    %c164 = arith.constant 164 : index
    %c0_5 = arith.constant 0 : index
    %5 = vector.load %arg6[%c164, %c0_5] : memref<177x32xf32, #tpu.memory_space<vmem>>, vector<1x32xf32>
    %6 = tpu.iota {dimensions = array<i32: 1>} : vector<1x24xi32>
    %c17_i32 = arith.constant 17 : i32
    %7 = vector.broadcast %c17_i32 : i32 to vector<1x24xi32>
    %8 = arith.cmpi slt, %6, %7 : vector<1x24xi32>
    %cst = arith.constant 0.000000e+00 : f32
    %cst_6 = arith.constant -1.000000e+09 : f32
    %9 = vector.broadcast %cst : f32 to vector<1x24xf32>
    %10 = vector.broadcast %cst_6 : f32 to vector<1x24xf32>
    %11 = arith.select %8, %9, %10 : vector<1x24xi1>, vector<1x24xf32>
    %c0_7 = arith.constant 0 : index
    %c0_8 = arith.constant 0 : index
    %12 = vector.load %arg0[%c0_7, %c0_8] : memref<48x48xf32, #tpu.memory_space<vmem>>, vector<48x48xf32>
    %c0_9 = arith.constant 0 : index
    %c0_10 = arith.constant 0 : index
    %13 = vector.load %arg1[%c0_9, %c0_10] : memref<48x32xf32, #tpu.memory_space<vmem>>, vector<48x32xf32>
    %cst_11 = arith.constant dense<0.000000e+00> : vector<48x32xf32>
    %14 = tpu.matmul %12, %13, %cst_11 {dimension_numbers = #tpu.dot_dimension_numbers<[1], [0], [0], [1], [0, 0, 1, 1], [], []>} : vector<48x48xf32>, vector<48x32xf32>, vector<48x32xf32> -> vector<48x32xf32>
    %15 = arith.addf %14, %0 : vector<48x32xf32>
    %c165 = arith.constant 165 : index
    %c0_12 = arith.constant 0 : index
    %16 = vector.load %arg6[%c165, %c0_12] : memref<177x32xf32, #tpu.memory_space<vmem>>, vector<1x32xf32>
    %c166 = arith.constant 166 : index
    %c0_13 = arith.constant 0 : index
    %17 = vector.load %arg6[%c166, %c0_13] : memref<177x32xf32, #tpu.memory_space<vmem>>, vector<1x32xf32>
    %c167 = arith.constant 167 : index
    %c0_14 = arith.constant 0 : index
    %18 = vector.load %arg6[%c167, %c0_14] : memref<177x32xf32, #tpu.memory_space<vmem>>, vector<1x32xf32>
    %c168 = arith.constant 168 : index
    %c0_15 = arith.constant 0 : index
    %19 = vector.load %arg6[%c168, %c0_15] : memref<177x32xf32, #tpu.memory_space<vmem>>, vector<1x32xf32>
    %c169 = arith.constant 169 : index
    %c0_16 = arith.constant 0 : index
    %20 = vector.load %arg6[%c169, %c0_16] : memref<177x32xf32, #tpu.memory_space<vmem>>, vector<1x32xf32>
    %c170 = arith.constant 170 : index
    %c0_17 = arith.constant 0 : index
    %21 = vector.load %arg6[%c170, %c0_17] : memref<177x32xf32, #tpu.memory_space<vmem>>, vector<1x32xf32>
    %cst_18 = arith.constant dense<0.000000e+00> : vector<48xf32>
    %22 = vector.multi_reduction <add>, %15, %cst_18 [1] : vector<48x32xf32> to vector<48xf32>
    %23 = vector.shape_cast %22 : vector<48xf32> to vector<48x1xf32>
    %cst_19 = arith.constant 3.200000e+01 : f32
    %24 = vector.broadcast %cst_19 : f32 to vector<48x1xf32>
    %25 = arith.divf %23, %24 : vector<48x1xf32>
    %26 = vector.broadcast %25 : vector<48x1xf32> to vector<48x32xf32>
    %27 = arith.subf %15, %26 : vector<48x32xf32>
    %28 = arith.mulf %27, %27 : vector<48x32xf32>
    %cst_20 = arith.constant dense<0.000000e+00> : vector<48xf32>
    %29 = vector.multi_reduction <add>, %28, %cst_20 [1] : vector<48x32xf32> to vector<48xf32>
    %30 = vector.shape_cast %29 : vector<48xf32> to vector<48x1xf32>
    %cst_21 = arith.constant 3.200000e+01 : f32
    %31 = vector.broadcast %cst_21 : f32 to vector<48x1xf32>
    %32 = arith.divf %30, %31 : vector<48x1xf32>
    %33 = vector.broadcast %25 : vector<48x1xf32> to vector<48x32xf32>
    %34 = arith.subf %15, %33 : vector<48x32xf32>
    %cst_22 = arith.constant 9.99999996E-13 : f32
    %35 = vector.broadcast %cst_22 : f32 to vector<48x1xf32>
    %36 = arith.addf %32, %35 : vector<48x1xf32>
    %37 = math.rsqrt %36 : vector<48x1xf32>
    %38 = vector.broadcast %37 : vector<48x1xf32> to vector<48x32xf32>
    %39 = arith.mulf %34, %38 : vector<48x32xf32>
    %40 = vector.broadcast %16 : vector<1x32xf32> to vector<48x32xf32>
    %41 = arith.mulf %39, %40 : vector<48x32xf32>
    %42 = vector.broadcast %17 : vector<1x32xf32> to vector<48x32xf32>
    %43 = arith.addf %41, %42 : vector<48x32xf32>
    %c0_23 = arith.constant 0 : index
    %c0_24 = arith.constant 0 : index
    %c0_25 = arith.constant 0 : index
    %44 = vector.load %arg2[%c0_23, %c0_24, %c0_25] : memref<2x32x96xf32, #tpu.memory_space<vmem>>, vector<1x32x96xf32>
    %45 = vector.shape_cast %44 : vector<1x32x96xf32> to vector<32x96xf32>
    %cst_26 = arith.constant dense<0.000000e+00> : vector<48x96xf32>
    %46 = tpu.matmul %43, %45, %cst_26 {dimension_numbers = #tpu.dot_dimension_numbers<[1], [0], [0], [1], [0, 0, 1, 1], [], []>} : vector<48x32xf32>, vector<32x96xf32>, vector<48x96xf32> -> vector<48x96xf32>
    %c0_27 = arith.constant 0 : index
    %c0_28 = arith.constant 0 : index
    %47 = vector.load %arg7[%c0_27, %c0_28] : memref<2x96xf32, #tpu.memory_space<vmem>>, vector<1x96xf32>
    %48 = vector.broadcast %47 : vector<1x96xf32> to vector<48x96xf32>
    %49 = arith.addf %46, %48 : vector<48x96xf32>
    %50 = vector.extract_strided_slice %49 {offsets = [0, 0], sizes = [24, 96], strides = [1, 1]} : vector<48x96xf32> to vector<24x96xf32>
    %51 = vector.extract_strided_slice %50 {offsets = [0, 0], sizes = [24, 32], strides = [1, 1]} : vector<24x96xf32> to vector<24x32xf32>
    %cst_29 = arith.constant 0.353553385 : f32
    %52 = vector.broadcast %cst_29 : f32 to vector<24x32xf32>
    %53 = arith.mulf %51, %52 : vector<24x32xf32>
    %54 = vector.extract_strided_slice %50 {offsets = [0, 32], sizes = [24, 32], strides = [1, 1]} : vector<24x96xf32> to vector<24x32xf32>
    %55 = vector.extract_strided_slice %50 {offsets = [0, 64], sizes = [24, 32], strides = [1, 1]} : vector<24x96xf32> to vector<24x32xf32>
    %56 = tpu.concatenate %53, %53, %53, %53 in 0 : vector<24x32xf32>, vector<24x32xf32>, vector<24x32xf32>, vector<24x32xf32> -> vector<96x32xf32>
    %57 = arith.mulf %56, %1 : vector<96x32xf32>
    %cst_30 = arith.constant dense<0.000000e+00> : vector<96x24xf32>
    %58 = tpu.matmul %57, %54, %cst_30 {dimension_numbers = #tpu.dot_dimension_numbers<[1], [1], [0], [0], [0, 0, 1, 0], [], []>} : vector<96x32xf32>, vector<24x32xf32>, vector<96x24xf32> -> vector<96x24xf32>
    %59 = vector.broadcast %11 : vector<1x24xf32> to vector<96x24xf32>
    %60 = arith.addf %58, %59 : vector<96x24xf32>
    %cst_31 = arith.constant dense<0xFF800000> : vector<96xf32>
    %61 = vector.multi_reduction <maximumf>, %60, %cst_31 [1] : vector<96x24xf32> to vector<96xf32>
    %62 = vector.shape_cast %61 : vector<96xf32> to vector<96x1xf32>
    %63 = vector.broadcast %62 : vector<96x1xf32> to vector<96x24xf32>
    %64 = arith.subf %60, %63 : vector<96x24xf32>
    %65 = math.exp %64 : vector<96x24xf32>
    %cst_32 = arith.constant dense<0.000000e+00> : vector<96xf32>
    %66 = vector.multi_reduction <add>, %65, %cst_32 [1] : vector<96x24xf32> to vector<96xf32>
    %67 = vector.shape_cast %66 : vector<96xf32> to vector<96x1xf32>
    %cst_33 = arith.constant dense<0.000000e+00> : vector<96x32xf32>
    %68 = tpu.matmul %65, %55, %cst_33 {dimension_numbers = #tpu.dot_dimension_numbers<[1], [0], [0], [1], [0, 0, 1, 1], [], []>} : vector<96x24xf32>, vector<24x32xf32>, vector<96x32xf32> -> vector<96x32xf32>
    %69 = tpu.reciprocal %67 {approx = true} : vector<96x1xf32> -> vector<96x1xf32>
    %70 = vector.broadcast %69 : vector<96x1xf32> to vector<96x32xf32>
    %71 = arith.mulf %68, %70 : vector<96x32xf32>
    %72 = arith.mulf %71, %1 : vector<96x32xf32>
    %73 = vector.extract_strided_slice %72 {offsets = [0, 0], sizes = [24, 32], strides = [1, 1]} : vector<96x32xf32> to vector<24x32xf32>
    %74 = vector.extract_strided_slice %72 {offsets = [24, 0], sizes = [24, 32], strides = [1, 1]} : vector<96x32xf32> to vector<24x32xf32>
    %75 = arith.addf %73, %74 : vector<24x32xf32>
    %76 = vector.extract_strided_slice %72 {offsets = [48, 0], sizes = [24, 32], strides = [1, 1]} : vector<96x32xf32> to vector<24x32xf32>
    %77 = arith.addf %75, %76 : vector<24x32xf32>
    %78 = vector.extract_strided_slice %72 {offsets = [72, 0], sizes = [24, 32], strides = [1, 1]} : vector<96x32xf32> to vector<24x32xf32>
    %79 = arith.addf %77, %78 : vector<24x32xf32>
    %80 = vector.extract_strided_slice %49 {offsets = [24, 0], sizes = [24, 96], strides = [1, 1]} : vector<48x96xf32> to vector<24x96xf32>
    %81 = vector.extract_strided_slice %80 {offsets = [0, 0], sizes = [24, 32], strides = [1, 1]} : vector<24x96xf32> to vector<24x32xf32>
    %cst_34 = arith.constant 0.353553385 : f32
    %82 = vector.broadcast %cst_34 : f32 to vector<24x32xf32>
    %83 = arith.mulf %81, %82 : vector<24x32xf32>
    %84 = vector.extract_strided_slice %80 {offsets = [0, 32], sizes = [24, 32], strides = [1, 1]} : vector<24x96xf32> to vector<24x32xf32>
    %85 = vector.extract_strided_slice %80 {offsets = [0, 64], sizes = [24, 32], strides = [1, 1]} : vector<24x96xf32> to vector<24x32xf32>
    %86 = tpu.concatenate %83, %83, %83, %83 in 0 : vector<24x32xf32>, vector<24x32xf32>, vector<24x32xf32>, vector<24x32xf32> -> vector<96x32xf32>
    %87 = arith.mulf %86, %1 : vector<96x32xf32>
    %cst_35 = arith.constant dense<0.000000e+00> : vector<96x24xf32>
    %88 = tpu.matmul %87, %84, %cst_35 {dimension_numbers = #tpu.dot_dimension_numbers<[1], [1], [0], [0], [0, 0, 1, 0], [], []>} : vector<96x32xf32>, vector<24x32xf32>, vector<96x24xf32> -> vector<96x24xf32>
    %89 = vector.broadcast %11 : vector<1x24xf32> to vector<96x24xf32>
    %90 = arith.addf %88, %89 : vector<96x24xf32>
    %cst_36 = arith.constant dense<0xFF800000> : vector<96xf32>
    %91 = vector.multi_reduction <maximumf>, %90, %cst_36 [1] : vector<96x24xf32> to vector<96xf32>
    %92 = vector.shape_cast %91 : vector<96xf32> to vector<96x1xf32>
    %93 = vector.broadcast %92 : vector<96x1xf32> to vector<96x24xf32>
    %94 = arith.subf %90, %93 : vector<96x24xf32>
    %95 = math.exp %94 : vector<96x24xf32>
    %cst_37 = arith.constant dense<0.000000e+00> : vector<96xf32>
    %96 = vector.multi_reduction <add>, %95, %cst_37 [1] : vector<96x24xf32> to vector<96xf32>
    %97 = vector.shape_cast %96 : vector<96xf32> to vector<96x1xf32>
    %cst_38 = arith.constant dense<0.000000e+00> : vector<96x32xf32>
    %98 = tpu.matmul %95, %85, %cst_38 {dimension_numbers = #tpu.dot_dimension_numbers<[1], [0], [0], [1], [0, 0, 1, 1], [], []>} : vector<96x24xf32>, vector<24x32xf32>, vector<96x32xf32> -> vector<96x32xf32>
    %99 = tpu.reciprocal %97 {approx = true} : vector<96x1xf32> -> vector<96x1xf32>
    %100 = vector.broadcast %99 : vector<96x1xf32> to vector<96x32xf32>
    %101 = arith.mulf %98, %100 : vector<96x32xf32>
    %102 = arith.mulf %101, %1 : vector<96x32xf32>
    %103 = vector.extract_strided_slice %102 {offsets = [0, 0], sizes = [24, 32], strides = [1, 1]} : vector<96x32xf32> to vector<24x32xf32>
    %104 = vector.extract_strided_slice %102 {offsets = [24, 0], sizes = [24, 32], strides = [1, 1]} : vector<96x32xf32> to vector<24x32xf32>
    %105 = arith.addf %103, %104 : vector<24x32xf32>
    %106 = vector.extract_strided_slice %102 {offsets = [48, 0], sizes = [24, 32], strides = [1, 1]} : vector<96x32xf32> to vector<24x32xf32>
    %107 = arith.addf %105, %106 : vector<24x32xf32>
    %108 = vector.extract_strided_slice %102 {offsets = [72, 0], sizes = [24, 32], strides = [1, 1]} : vector<96x32xf32> to vector<24x32xf32>
    %109 = arith.addf %107, %108 : vector<24x32xf32>
    %110 = tpu.concatenate %79, %109 in 0 : vector<24x32xf32>, vector<24x32xf32> -> vector<48x32xf32>
    %c0_39 = arith.constant 0 : index
    %c0_40 = arith.constant 0 : index
    %c0_41 = arith.constant 0 : index
    %111 = vector.load %arg3[%c0_39, %c0_40, %c0_41] : memref<2x32x32xf32, #tpu.memory_space<vmem>>, vector<1x32x32xf32>
    %112 = vector.shape_cast %111 : vector<1x32x32xf32> to vector<32x32xf32>
    %cst_42 = arith.constant dense<0.000000e+00> : vector<48x32xf32>
    %113 = tpu.matmul %110, %112, %cst_42 {dimension_numbers = #tpu.dot_dimension_numbers<[1], [0], [0], [1], [0, 0, 1, 1], [], []>} : vector<48x32xf32>, vector<32x32xf32>, vector<48x32xf32> -> vector<48x32xf32>
    %114 = arith.addf %15, %113 : vector<48x32xf32>
    %115 = vector.broadcast %18 : vector<1x32xf32> to vector<48x32xf32>
    %116 = arith.addf %114, %115 : vector<48x32xf32>
    %cst_43 = arith.constant dense<0.000000e+00> : vector<48xf32>
    %117 = vector.multi_reduction <add>, %116, %cst_43 [1] : vector<48x32xf32> to vector<48xf32>
    %118 = vector.shape_cast %117 : vector<48xf32> to vector<48x1xf32>
    %cst_44 = arith.constant 3.200000e+01 : f32
    %119 = vector.broadcast %cst_44 : f32 to vector<48x1xf32>
    %120 = arith.divf %118, %119 : vector<48x1xf32>
    %121 = vector.broadcast %120 : vector<48x1xf32> to vector<48x32xf32>
    %122 = arith.subf %116, %121 : vector<48x32xf32>
    %123 = arith.mulf %122, %122 : vector<48x32xf32>
    %cst_45 = arith.constant dense<0.000000e+00> : vector<48xf32>
    %124 = vector.multi_reduction <add>, %123, %cst_45 [1] : vector<48x32xf32> to vector<48xf32>
    %125 = vector.shape_cast %124 : vector<48xf32> to vector<48x1xf32>
    %cst_46 = arith.constant 3.200000e+01 : f32
    %126 = vector.broadcast %cst_46 : f32 to vector<48x1xf32>
    %127 = arith.divf %125, %126 : vector<48x1xf32>
    %128 = vector.broadcast %120 : vector<48x1xf32> to vector<48x32xf32>
    %129 = arith.subf %116, %128 : vector<48x32xf32>
    %cst_47 = arith.constant 9.99999996E-13 : f32
    %130 = vector.broadcast %cst_47 : f32 to vector<48x1xf32>
    %131 = arith.addf %127, %130 : vector<48x1xf32>
    %132 = math.rsqrt %131 : vector<48x1xf32>
    %133 = vector.broadcast %132 : vector<48x1xf32> to vector<48x32xf32>
    %134 = arith.mulf %129, %133 : vector<48x32xf32>
    %135 = vector.broadcast %19 : vector<1x32xf32> to vector<48x32xf32>
    %136 = arith.mulf %134, %135 : vector<48x32xf32>
    %137 = vector.broadcast %20 : vector<1x32xf32> to vector<48x32xf32>
    %138 = arith.addf %136, %137 : vector<48x32xf32>
    %c0_48 = arith.constant 0 : index
    %c0_49 = arith.constant 0 : index
    %c0_50 = arith.constant 0 : index
    %139 = vector.load %arg4[%c0_48, %c0_49, %c0_50] : memref<2x32x64xf32, #tpu.memory_space<vmem>>, vector<1x32x64xf32>
    %140 = vector.shape_cast %139 : vector<1x32x64xf32> to vector<32x64xf32>
    %cst_51 = arith.constant dense<0.000000e+00> : vector<48x64xf32>
    %141 = tpu.matmul %138, %140, %cst_51 {dimension_numbers = #tpu.dot_dimension_numbers<[1], [0], [0], [1], [0, 0, 1, 1], [], []>} : vector<48x32xf32>, vector<32x64xf32>, vector<48x64xf32> -> vector<48x64xf32>
    %c0_52 = arith.constant 0 : index
    %c0_53 = arith.constant 0 : index
    %142 = vector.load %arg8[%c0_52, %c0_53] : memref<2x64xf32, #tpu.memory_space<vmem>>, vector<1x64xf32>
    %143 = vector.broadcast %142 : vector<1x64xf32> to vector<48x64xf32>
    %144 = arith.addf %141, %143 : vector<48x64xf32>
    %145 = arith.mulf %144, %144 : vector<48x64xf32>
    %146 = arith.mulf %144, %145 : vector<48x64xf32>
    %cst_54 = arith.constant 4.471500e-02 : f32
    %147 = vector.broadcast %cst_54 : f32 to vector<48x64xf32>
    %148 = arith.mulf %147, %146 : vector<48x64xf32>
    %149 = arith.addf %144, %148 : vector<48x64xf32>
    %cst_55 = arith.constant 0.797884583 : f32
    %150 = vector.broadcast %cst_55 : f32 to vector<48x64xf32>
    %151 = arith.mulf %150, %149 : vector<48x64xf32>
    %152 = math.tanh %151 : vector<48x64xf32>
    %cst_56 = arith.constant 1.000000e+00 : f32
    %153 = vector.broadcast %cst_56 : f32 to vector<48x64xf32>
    %154 = arith.addf %153, %152 : vector<48x64xf32>
    %cst_57 = arith.constant 5.000000e-01 : f32
    %155 = vector.broadcast %cst_57 : f32 to vector<48x64xf32>
    %156 = arith.mulf %155, %154 : vector<48x64xf32>
    %157 = arith.mulf %144, %156 : vector<48x64xf32>
    %c0_58 = arith.constant 0 : index
    %c0_59 = arith.constant 0 : index
    %c0_60 = arith.constant 0 : index
    %158 = vector.load %arg5[%c0_58, %c0_59, %c0_60] : memref<2x64x32xf32, #tpu.memory_space<vmem>>, vector<1x64x32xf32>
    %159 = vector.shape_cast %158 : vector<1x64x32xf32> to vector<64x32xf32>
    %cst_61 = arith.constant dense<0.000000e+00> : vector<48x32xf32>
    %160 = tpu.matmul %157, %159, %cst_61 {dimension_numbers = #tpu.dot_dimension_numbers<[1], [0], [0], [1], [0, 0, 1, 1], [], []>} : vector<48x64xf32>, vector<64x32xf32>, vector<48x32xf32> -> vector<48x32xf32>
    %161 = arith.addf %116, %160 : vector<48x32xf32>
    %162 = vector.broadcast %21 : vector<1x32xf32> to vector<48x32xf32>
    %163 = arith.addf %161, %162 : vector<48x32xf32>
    %c171 = arith.constant 171 : index
    %c0_62 = arith.constant 0 : index
    %164 = vector.load %arg6[%c171, %c0_62] : memref<177x32xf32, #tpu.memory_space<vmem>>, vector<1x32xf32>
    %c172 = arith.constant 172 : index
    %c0_63 = arith.constant 0 : index
    %165 = vector.load %arg6[%c172, %c0_63] : memref<177x32xf32, #tpu.memory_space<vmem>>, vector<1x32xf32>
    %c173 = arith.constant 173 : index
    %c0_64 = arith.constant 0 : index
    %166 = vector.load %arg6[%c173, %c0_64] : memref<177x32xf32, #tpu.memory_space<vmem>>, vector<1x32xf32>
    %c174 = arith.constant 174 : index
    %c0_65 = arith.constant 0 : index
    %167 = vector.load %arg6[%c174, %c0_65] : memref<177x32xf32, #tpu.memory_space<vmem>>, vector<1x32xf32>
    %c175 = arith.constant 175 : index
    %c0_66 = arith.constant 0 : index
    %168 = vector.load %arg6[%c175, %c0_66] : memref<177x32xf32, #tpu.memory_space<vmem>>, vector<1x32xf32>
    %c176 = arith.constant 176 : index
    %c0_67 = arith.constant 0 : index
    %169 = vector.load %arg6[%c176, %c0_67] : memref<177x32xf32, #tpu.memory_space<vmem>>, vector<1x32xf32>
    %cst_68 = arith.constant dense<0.000000e+00> : vector<48xf32>
    %170 = vector.multi_reduction <add>, %163, %cst_68 [1] : vector<48x32xf32> to vector<48xf32>
    %171 = vector.shape_cast %170 : vector<48xf32> to vector<48x1xf32>
    %cst_69 = arith.constant 3.200000e+01 : f32
    %172 = vector.broadcast %cst_69 : f32 to vector<48x1xf32>
    %173 = arith.divf %171, %172 : vector<48x1xf32>
    %174 = vector.broadcast %173 : vector<48x1xf32> to vector<48x32xf32>
    %175 = arith.subf %163, %174 : vector<48x32xf32>
    %176 = arith.mulf %175, %175 : vector<48x32xf32>
    %cst_70 = arith.constant dense<0.000000e+00> : vector<48xf32>
    %177 = vector.multi_reduction <add>, %176, %cst_70 [1] : vector<48x32xf32> to vector<48xf32>
    %178 = vector.shape_cast %177 : vector<48xf32> to vector<48x1xf32>
    %cst_71 = arith.constant 3.200000e+01 : f32
    %179 = vector.broadcast %cst_71 : f32 to vector<48x1xf32>
    %180 = arith.divf %178, %179 : vector<48x1xf32>
    %181 = vector.broadcast %173 : vector<48x1xf32> to vector<48x32xf32>
    %182 = arith.subf %163, %181 : vector<48x32xf32>
    %cst_72 = arith.constant 9.99999996E-13 : f32
    %183 = vector.broadcast %cst_72 : f32 to vector<48x1xf32>
    %184 = arith.addf %180, %183 : vector<48x1xf32>
    %185 = math.rsqrt %184 : vector<48x1xf32>
    %186 = vector.broadcast %185 : vector<48x1xf32> to vector<48x32xf32>
    %187 = arith.mulf %182, %186 : vector<48x32xf32>
    %188 = vector.broadcast %164 : vector<1x32xf32> to vector<48x32xf32>
    %189 = arith.mulf %187, %188 : vector<48x32xf32>
    %190 = vector.broadcast %165 : vector<1x32xf32> to vector<48x32xf32>
    %191 = arith.addf %189, %190 : vector<48x32xf32>
    %c1 = arith.constant 1 : index
    %c0_73 = arith.constant 0 : index
    %c0_74 = arith.constant 0 : index
    %192 = vector.load %arg2[%c1, %c0_73, %c0_74] : memref<2x32x96xf32, #tpu.memory_space<vmem>>, vector<1x32x96xf32>
    %193 = vector.shape_cast %192 : vector<1x32x96xf32> to vector<32x96xf32>
    %cst_75 = arith.constant dense<0.000000e+00> : vector<48x96xf32>
    %194 = tpu.matmul %191, %193, %cst_75 {dimension_numbers = #tpu.dot_dimension_numbers<[1], [0], [0], [1], [0, 0, 1, 1], [], []>} : vector<48x32xf32>, vector<32x96xf32>, vector<48x96xf32> -> vector<48x96xf32>
    %c1_76 = arith.constant 1 : index
    %c0_77 = arith.constant 0 : index
    %195 = vector.load %arg7[%c1_76, %c0_77] : memref<2x96xf32, #tpu.memory_space<vmem>>, vector<1x96xf32>
    %196 = vector.broadcast %195 : vector<1x96xf32> to vector<48x96xf32>
    %197 = arith.addf %194, %196 : vector<48x96xf32>
    %198 = vector.extract_strided_slice %197 {offsets = [0, 0], sizes = [24, 96], strides = [1, 1]} : vector<48x96xf32> to vector<24x96xf32>
    %199 = vector.extract_strided_slice %198 {offsets = [0, 0], sizes = [24, 32], strides = [1, 1]} : vector<24x96xf32> to vector<24x32xf32>
    %cst_78 = arith.constant 0.353553385 : f32
    %200 = vector.broadcast %cst_78 : f32 to vector<24x32xf32>
    %201 = arith.mulf %199, %200 : vector<24x32xf32>
    %202 = vector.extract_strided_slice %198 {offsets = [0, 32], sizes = [24, 32], strides = [1, 1]} : vector<24x96xf32> to vector<24x32xf32>
    %203 = vector.extract_strided_slice %198 {offsets = [0, 64], sizes = [24, 32], strides = [1, 1]} : vector<24x96xf32> to vector<24x32xf32>
    %204 = tpu.concatenate %201, %201, %201, %201 in 0 : vector<24x32xf32>, vector<24x32xf32>, vector<24x32xf32>, vector<24x32xf32> -> vector<96x32xf32>
    %205 = arith.mulf %204, %1 : vector<96x32xf32>
    %cst_79 = arith.constant dense<0.000000e+00> : vector<96x24xf32>
    %206 = tpu.matmul %205, %202, %cst_79 {dimension_numbers = #tpu.dot_dimension_numbers<[1], [1], [0], [0], [0, 0, 1, 0], [], []>} : vector<96x32xf32>, vector<24x32xf32>, vector<96x24xf32> -> vector<96x24xf32>
    %207 = vector.broadcast %11 : vector<1x24xf32> to vector<96x24xf32>
    %208 = arith.addf %206, %207 : vector<96x24xf32>
    %cst_80 = arith.constant dense<0xFF800000> : vector<96xf32>
    %209 = vector.multi_reduction <maximumf>, %208, %cst_80 [1] : vector<96x24xf32> to vector<96xf32>
    %210 = vector.shape_cast %209 : vector<96xf32> to vector<96x1xf32>
    %211 = vector.broadcast %210 : vector<96x1xf32> to vector<96x24xf32>
    %212 = arith.subf %208, %211 : vector<96x24xf32>
    %213 = math.exp %212 : vector<96x24xf32>
    %cst_81 = arith.constant dense<0.000000e+00> : vector<96xf32>
    %214 = vector.multi_reduction <add>, %213, %cst_81 [1] : vector<96x24xf32> to vector<96xf32>
    %215 = vector.shape_cast %214 : vector<96xf32> to vector<96x1xf32>
    %cst_82 = arith.constant dense<0.000000e+00> : vector<96x32xf32>
    %216 = tpu.matmul %213, %203, %cst_82 {dimension_numbers = #tpu.dot_dimension_numbers<[1], [0], [0], [1], [0, 0, 1, 1], [], []>} : vector<96x24xf32>, vector<24x32xf32>, vector<96x32xf32> -> vector<96x32xf32>
    %217 = tpu.reciprocal %215 {approx = true} : vector<96x1xf32> -> vector<96x1xf32>
    %218 = vector.broadcast %217 : vector<96x1xf32> to vector<96x32xf32>
    %219 = arith.mulf %216, %218 : vector<96x32xf32>
    %220 = arith.mulf %219, %1 : vector<96x32xf32>
    %221 = vector.extract_strided_slice %220 {offsets = [0, 0], sizes = [24, 32], strides = [1, 1]} : vector<96x32xf32> to vector<24x32xf32>
    %222 = vector.extract_strided_slice %220 {offsets = [24, 0], sizes = [24, 32], strides = [1, 1]} : vector<96x32xf32> to vector<24x32xf32>
    %223 = arith.addf %221, %222 : vector<24x32xf32>
    %224 = vector.extract_strided_slice %220 {offsets = [48, 0], sizes = [24, 32], strides = [1, 1]} : vector<96x32xf32> to vector<24x32xf32>
    %225 = arith.addf %223, %224 : vector<24x32xf32>
    %226 = vector.extract_strided_slice %220 {offsets = [72, 0], sizes = [24, 32], strides = [1, 1]} : vector<96x32xf32> to vector<24x32xf32>
    %227 = arith.addf %225, %226 : vector<24x32xf32>
    %228 = vector.extract_strided_slice %197 {offsets = [24, 0], sizes = [24, 96], strides = [1, 1]} : vector<48x96xf32> to vector<24x96xf32>
    %229 = vector.extract_strided_slice %228 {offsets = [0, 0], sizes = [24, 32], strides = [1, 1]} : vector<24x96xf32> to vector<24x32xf32>
    %cst_83 = arith.constant 0.353553385 : f32
    %230 = vector.broadcast %cst_83 : f32 to vector<24x32xf32>
    %231 = arith.mulf %229, %230 : vector<24x32xf32>
    %232 = vector.extract_strided_slice %228 {offsets = [0, 32], sizes = [24, 32], strides = [1, 1]} : vector<24x96xf32> to vector<24x32xf32>
    %233 = vector.extract_strided_slice %228 {offsets = [0, 64], sizes = [24, 32], strides = [1, 1]} : vector<24x96xf32> to vector<24x32xf32>
    %234 = tpu.concatenate %231, %231, %231, %231 in 0 : vector<24x32xf32>, vector<24x32xf32>, vector<24x32xf32>, vector<24x32xf32> -> vector<96x32xf32>
    %235 = arith.mulf %234, %1 : vector<96x32xf32>
    %cst_84 = arith.constant dense<0.000000e+00> : vector<96x24xf32>
    %236 = tpu.matmul %235, %232, %cst_84 {dimension_numbers = #tpu.dot_dimension_numbers<[1], [1], [0], [0], [0, 0, 1, 0], [], []>} : vector<96x32xf32>, vector<24x32xf32>, vector<96x24xf32> -> vector<96x24xf32>
    %237 = vector.broadcast %11 : vector<1x24xf32> to vector<96x24xf32>
    %238 = arith.addf %236, %237 : vector<96x24xf32>
    %cst_85 = arith.constant dense<0xFF800000> : vector<96xf32>
    %239 = vector.multi_reduction <maximumf>, %238, %cst_85 [1] : vector<96x24xf32> to vector<96xf32>
    %240 = vector.shape_cast %239 : vector<96xf32> to vector<96x1xf32>
    %241 = vector.broadcast %240 : vector<96x1xf32> to vector<96x24xf32>
    %242 = arith.subf %238, %241 : vector<96x24xf32>
    %243 = math.exp %242 : vector<96x24xf32>
    %cst_86 = arith.constant dense<0.000000e+00> : vector<96xf32>
    %244 = vector.multi_reduction <add>, %243, %cst_86 [1] : vector<96x24xf32> to vector<96xf32>
    %245 = vector.shape_cast %244 : vector<96xf32> to vector<96x1xf32>
    %cst_87 = arith.constant dense<0.000000e+00> : vector<96x32xf32>
    %246 = tpu.matmul %243, %233, %cst_87 {dimension_numbers = #tpu.dot_dimension_numbers<[1], [0], [0], [1], [0, 0, 1, 1], [], []>} : vector<96x24xf32>, vector<24x32xf32>, vector<96x32xf32> -> vector<96x32xf32>
    %247 = tpu.reciprocal %245 {approx = true} : vector<96x1xf32> -> vector<96x1xf32>
    %248 = vector.broadcast %247 : vector<96x1xf32> to vector<96x32xf32>
    %249 = arith.mulf %246, %248 : vector<96x32xf32>
    %250 = arith.mulf %249, %1 : vector<96x32xf32>
    %251 = vector.extract_strided_slice %250 {offsets = [0, 0], sizes = [24, 32], strides = [1, 1]} : vector<96x32xf32> to vector<24x32xf32>
    %252 = vector.extract_strided_slice %250 {offsets = [24, 0], sizes = [24, 32], strides = [1, 1]} : vector<96x32xf32> to vector<24x32xf32>
    %253 = arith.addf %251, %252 : vector<24x32xf32>
    %254 = vector.extract_strided_slice %250 {offsets = [48, 0], sizes = [24, 32], strides = [1, 1]} : vector<96x32xf32> to vector<24x32xf32>
    %255 = arith.addf %253, %254 : vector<24x32xf32>
    %256 = vector.extract_strided_slice %250 {offsets = [72, 0], sizes = [24, 32], strides = [1, 1]} : vector<96x32xf32> to vector<24x32xf32>
    %257 = arith.addf %255, %256 : vector<24x32xf32>
    %258 = tpu.concatenate %227, %257 in 0 : vector<24x32xf32>, vector<24x32xf32> -> vector<48x32xf32>
    %c1_88 = arith.constant 1 : index
    %c0_89 = arith.constant 0 : index
    %c0_90 = arith.constant 0 : index
    %259 = vector.load %arg3[%c1_88, %c0_89, %c0_90] : memref<2x32x32xf32, #tpu.memory_space<vmem>>, vector<1x32x32xf32>
    %260 = vector.shape_cast %259 : vector<1x32x32xf32> to vector<32x32xf32>
    %cst_91 = arith.constant dense<0.000000e+00> : vector<48x32xf32>
    %261 = tpu.matmul %258, %260, %cst_91 {dimension_numbers = #tpu.dot_dimension_numbers<[1], [0], [0], [1], [0, 0, 1, 1], [], []>} : vector<48x32xf32>, vector<32x32xf32>, vector<48x32xf32> -> vector<48x32xf32>
    %262 = arith.addf %163, %261 : vector<48x32xf32>
    %263 = vector.broadcast %166 : vector<1x32xf32> to vector<48x32xf32>
    %264 = arith.addf %262, %263 : vector<48x32xf32>
    %cst_92 = arith.constant dense<0.000000e+00> : vector<48xf32>
    %265 = vector.multi_reduction <add>, %264, %cst_92 [1] : vector<48x32xf32> to vector<48xf32>
    %266 = vector.shape_cast %265 : vector<48xf32> to vector<48x1xf32>
    %cst_93 = arith.constant 3.200000e+01 : f32
    %267 = vector.broadcast %cst_93 : f32 to vector<48x1xf32>
    %268 = arith.divf %266, %267 : vector<48x1xf32>
    %269 = vector.broadcast %268 : vector<48x1xf32> to vector<48x32xf32>
    %270 = arith.subf %264, %269 : vector<48x32xf32>
    %271 = arith.mulf %270, %270 : vector<48x32xf32>
    %cst_94 = arith.constant dense<0.000000e+00> : vector<48xf32>
    %272 = vector.multi_reduction <add>, %271, %cst_94 [1] : vector<48x32xf32> to vector<48xf32>
    %273 = vector.shape_cast %272 : vector<48xf32> to vector<48x1xf32>
    %cst_95 = arith.constant 3.200000e+01 : f32
    %274 = vector.broadcast %cst_95 : f32 to vector<48x1xf32>
    %275 = arith.divf %273, %274 : vector<48x1xf32>
    %276 = vector.broadcast %268 : vector<48x1xf32> to vector<48x32xf32>
    %277 = arith.subf %264, %276 : vector<48x32xf32>
    %cst_96 = arith.constant 9.99999996E-13 : f32
    %278 = vector.broadcast %cst_96 : f32 to vector<48x1xf32>
    %279 = arith.addf %275, %278 : vector<48x1xf32>
    %280 = math.rsqrt %279 : vector<48x1xf32>
    %281 = vector.broadcast %280 : vector<48x1xf32> to vector<48x32xf32>
    %282 = arith.mulf %277, %281 : vector<48x32xf32>
    %283 = vector.broadcast %167 : vector<1x32xf32> to vector<48x32xf32>
    %284 = arith.mulf %282, %283 : vector<48x32xf32>
    %285 = vector.broadcast %168 : vector<1x32xf32> to vector<48x32xf32>
    %286 = arith.addf %284, %285 : vector<48x32xf32>
    %c1_97 = arith.constant 1 : index
    %c0_98 = arith.constant 0 : index
    %c0_99 = arith.constant 0 : index
    %287 = vector.load %arg4[%c1_97, %c0_98, %c0_99] : memref<2x32x64xf32, #tpu.memory_space<vmem>>, vector<1x32x64xf32>
    %288 = vector.shape_cast %287 : vector<1x32x64xf32> to vector<32x64xf32>
    %cst_100 = arith.constant dense<0.000000e+00> : vector<48x64xf32>
    %289 = tpu.matmul %286, %288, %cst_100 {dimension_numbers = #tpu.dot_dimension_numbers<[1], [0], [0], [1], [0, 0, 1, 1], [], []>} : vector<48x32xf32>, vector<32x64xf32>, vector<48x64xf32> -> vector<48x64xf32>
    %c1_101 = arith.constant 1 : index
    %c0_102 = arith.constant 0 : index
    %290 = vector.load %arg8[%c1_101, %c0_102] : memref<2x64xf32, #tpu.memory_space<vmem>>, vector<1x64xf32>
    %291 = vector.broadcast %290 : vector<1x64xf32> to vector<48x64xf32>
    %292 = arith.addf %289, %291 : vector<48x64xf32>
    %293 = arith.mulf %292, %292 : vector<48x64xf32>
    %294 = arith.mulf %292, %293 : vector<48x64xf32>
    %cst_103 = arith.constant 4.471500e-02 : f32
    %295 = vector.broadcast %cst_103 : f32 to vector<48x64xf32>
    %296 = arith.mulf %295, %294 : vector<48x64xf32>
    %297 = arith.addf %292, %296 : vector<48x64xf32>
    %cst_104 = arith.constant 0.797884583 : f32
    %298 = vector.broadcast %cst_104 : f32 to vector<48x64xf32>
    %299 = arith.mulf %298, %297 : vector<48x64xf32>
    %300 = math.tanh %299 : vector<48x64xf32>
    %cst_105 = arith.constant 1.000000e+00 : f32
    %301 = vector.broadcast %cst_105 : f32 to vector<48x64xf32>
    %302 = arith.addf %301, %300 : vector<48x64xf32>
    %cst_106 = arith.constant 5.000000e-01 : f32
    %303 = vector.broadcast %cst_106 : f32 to vector<48x64xf32>
    %304 = arith.mulf %303, %302 : vector<48x64xf32>
    %305 = arith.mulf %292, %304 : vector<48x64xf32>
    %c1_107 = arith.constant 1 : index
    %c0_108 = arith.constant 0 : index
    %c0_109 = arith.constant 0 : index
    %306 = vector.load %arg5[%c1_107, %c0_108, %c0_109] : memref<2x64x32xf32, #tpu.memory_space<vmem>>, vector<1x64x32xf32>
    %307 = vector.shape_cast %306 : vector<1x64x32xf32> to vector<64x32xf32>
    %cst_110 = arith.constant dense<0.000000e+00> : vector<48x32xf32>
    %308 = tpu.matmul %305, %307, %cst_110 {dimension_numbers = #tpu.dot_dimension_numbers<[1], [0], [0], [1], [0, 0, 1, 1], [], []>} : vector<48x64xf32>, vector<64x32xf32>, vector<48x32xf32> -> vector<48x32xf32>
    %309 = arith.addf %264, %308 : vector<48x32xf32>
    %310 = vector.broadcast %169 : vector<1x32xf32> to vector<48x32xf32>
    %311 = arith.addf %309, %310 : vector<48x32xf32>
    %cst_111 = arith.constant dense<0.000000e+00> : vector<48xf32>
    %312 = vector.multi_reduction <add>, %311, %cst_111 [1] : vector<48x32xf32> to vector<48xf32>
    %313 = vector.shape_cast %312 : vector<48xf32> to vector<48x1xf32>
    %cst_112 = arith.constant 3.200000e+01 : f32
    %314 = vector.broadcast %cst_112 : f32 to vector<48x1xf32>
    %315 = arith.divf %313, %314 : vector<48x1xf32>
    %316 = vector.broadcast %315 : vector<48x1xf32> to vector<48x32xf32>
    %317 = arith.subf %311, %316 : vector<48x32xf32>
    %318 = arith.mulf %317, %317 : vector<48x32xf32>
    %cst_113 = arith.constant dense<0.000000e+00> : vector<48xf32>
    %319 = vector.multi_reduction <add>, %318, %cst_113 [1] : vector<48x32xf32> to vector<48xf32>
    %320 = vector.shape_cast %319 : vector<48xf32> to vector<48x1xf32>
    %cst_114 = arith.constant 3.200000e+01 : f32
    %321 = vector.broadcast %cst_114 : f32 to vector<48x1xf32>
    %322 = arith.divf %320, %321 : vector<48x1xf32>
    %323 = vector.broadcast %315 : vector<48x1xf32> to vector<48x32xf32>
    %324 = arith.subf %311, %323 : vector<48x32xf32>
    %cst_115 = arith.constant 9.99999996E-13 : f32
    %325 = vector.broadcast %cst_115 : f32 to vector<48x1xf32>
    %326 = arith.addf %322, %325 : vector<48x1xf32>
    %327 = math.rsqrt %326 : vector<48x1xf32>
    %328 = vector.broadcast %327 : vector<48x1xf32> to vector<48x32xf32>
    %329 = arith.mulf %324, %328 : vector<48x32xf32>
    %330 = vector.broadcast %4 : vector<1x32xf32> to vector<48x32xf32>
    %331 = arith.mulf %329, %330 : vector<48x32xf32>
    %332 = vector.broadcast %5 : vector<1x32xf32> to vector<48x32xf32>
    %333 = arith.addf %331, %332 : vector<48x32xf32>
    %334 = tpu.iota {dimensions = array<i32: 0>} : vector<16x1xi32>
    %335 = vector.extract_strided_slice %333 {offsets = [0, 0], sizes = [16, 32], strides = [1, 1]} : vector<48x32xf32> to vector<16x32xf32>
    %c0_116 = arith.constant 0 : index
    %c0_117 = arith.constant 0 : index
    %336 = vector.load %arg9[%c0_116, %c0_117] : memref<2x3xi32, #tpu.memory_space<vmem>>, vector<1x3xi32>
    %c0_118 = arith.constant 0 : index
    %c0_119 = arith.constant 0 : index
    %337 = vector.load %arg10[%c0_118, %c0_119] : memref<2x3xi32, #tpu.memory_space<vmem>>, vector<1x3xi32>
    %c0_i32 = arith.constant 0 : i32
    %338 = vector.broadcast %c0_i32 : i32 to vector<1x3xi32>
    %339 = arith.cmpi eq, %337, %338 : vector<1x3xi32>
    %340 = arith.extui %339 : vector<1x3xi1> to vector<1x3xi32>
    %341 = arith.sitofp %340 : vector<1x3xi32> to vector<1x3xf32>
    %342 = vector.broadcast %334 : vector<16x1xi32> to vector<16x3xi32>
    %343 = vector.broadcast %336 : vector<1x3xi32> to vector<16x3xi32>
    %344 = arith.cmpi eq, %342, %343 : vector<16x3xi32>
    %345 = arith.extui %344 : vector<16x3xi1> to vector<16x3xi32>
    %346 = arith.sitofp %345 : vector<16x3xi32> to vector<16x3xf32>
    %347 = vector.broadcast %341 : vector<1x3xf32> to vector<16x3xf32>
    %348 = arith.mulf %346, %347 : vector<16x3xf32>
    %cst_120 = arith.constant dense<0.000000e+00> : vector<16x32xf32>
    %349 = tpu.matmul %348, %3, %cst_120 {dimension_numbers = #tpu.dot_dimension_numbers<[1], [0], [0], [1], [0, 0, 1, 1], [], []>} : vector<16x3xf32>, vector<3x32xf32>, vector<16x32xf32> -> vector<16x32xf32>
    %350 = arith.addf %335, %2 : vector<16x32xf32>
    %351 = arith.addf %350, %349 : vector<16x32xf32>
    %c0_121 = arith.constant 0 : index
    %c0_122 = arith.constant 0 : index
    %c0_123 = arith.constant 0 : index
    %352 = vector.load %arg11[%c0_121, %c0_122, %c0_123] : memref<2x16x32xf32, #tpu.memory_space<vmem>>, vector<1x16x32xf32>
    %353 = vector.shape_cast %352 : vector<1x16x32xf32> to vector<16x32xf32>
    %354 = vector.shape_cast %351 : vector<16x32xf32> to vector<1x16x32xf32>
    tpu.vector_store %arg11[%c0_121, %c0_122, %c0_123], %354 {strides = array<i32>} : memref<2x16x32xf32, #tpu.memory_space<vmem>>, vector<1x16x32xf32>,
    %355 = vector.extract_strided_slice %333 {offsets = [24, 0], sizes = [16, 32], strides = [1, 1]} : vector<48x32xf32> to vector<16x32xf32>
    %c1_124 = arith.constant 1 : index
    %c0_125 = arith.constant 0 : index
    %356 = vector.load %arg9[%c1_124, %c0_125] : memref<2x3xi32, #tpu.memory_space<vmem>>, vector<1x3xi32>
    %c1_126 = arith.constant 1 : index
    %c0_127 = arith.constant 0 : index
    %357 = vector.load %arg10[%c1_126, %c0_127] : memref<2x3xi32, #tpu.memory_space<vmem>>, vector<1x3xi32>
    %c0_i32_128 = arith.constant 0 : i32
    %358 = vector.broadcast %c0_i32_128 : i32 to vector<1x3xi32>
    %359 = arith.cmpi eq, %357, %358 : vector<1x3xi32>
    %360 = arith.extui %359 : vector<1x3xi1> to vector<1x3xi32>
    %361 = arith.sitofp %360 : vector<1x3xi32> to vector<1x3xf32>
    %362 = vector.broadcast %334 : vector<16x1xi32> to vector<16x3xi32>
    %363 = vector.broadcast %356 : vector<1x3xi32> to vector<16x3xi32>
    %364 = arith.cmpi eq, %362, %363 : vector<16x3xi32>
    %365 = arith.extui %364 : vector<16x3xi1> to vector<16x3xi32>
    %366 = arith.sitofp %365 : vector<16x3xi32> to vector<16x3xf32>
    %367 = vector.broadcast %361 : vector<1x3xf32> to vector<16x3xf32>
    %368 = arith.mulf %366, %367 : vector<16x3xf32>
    %cst_129 = arith.constant dense<0.000000e+00> : vector<16x32xf32>
    %369 = tpu.matmul %368, %3, %cst_129 {dimension_numbers = #tpu.dot_dimension_numbers<[1], [0], [0], [1], [0, 0, 1, 1], [], []>} : vector<16x3xf32>, vector<3x32xf32>, vector<16x32xf32> -> vector<16x32xf32>
    %370 = arith.addf %355, %2 : vector<16x32xf32>
    %371 = arith.addf %370, %369 : vector<16x32xf32>
    %c1_130 = arith.constant 1 : index
    %c0_131 = arith.constant 0 : index
    %c0_132 = arith.constant 0 : index
    %372 = vector.load %arg11[%c1_130, %c0_131, %c0_132] : memref<2x16x32xf32, #tpu.memory_space<vmem>>, vector<1x16x32xf32>
    %373 = vector.shape_cast %372 : vector<1x16x32xf32> to vector<16x32xf32>
    %374 = vector.shape_cast %371 : vector<16x32xf32> to vector<1x16x32xf32>
    tpu.vector_store %arg11[%c1_130, %c0_131, %c0_132], %374 {strides = array<i32>} : memref<2x16x32xf32, #tpu.memory_space<vmem>>, vector<1x16x32xf32>,
    return
  }
}

</mosaic_0001>

<bundles_post_ra>
// kernel: tpu_custom_call.1
= control target key start
LH: loop header
LB: loop body
LE: loop exit
PB: predicated region body
PF: predicated region fallthrough
CT: control target
= control target key end

     0   :  { %vm78_vm0 = vcmask 392192   ;;  %s5319_s0 = inlined_call_operand.vmem [shape: f32[48,48], index: 0, kind: input, shape index: {}]   ;;  %s5320_s1 = inlined_call_operand.vmem [shape: f32[48,32], index: 1, kind: input, shape index: {}]   ;;  %s5321_s2 = inlined_call_operand.vmem [shape: f32[2,32,96], index: 2, kind: input, shape index: {}]   ;;  %s5322_s3 = inlined_call_operand.vmem [shape: f32[2,32,32], index: 3, kind: input, shape index: {}]   ;;  %s5323_s4 = inlined_call_operand.vmem [shape: f32[2,32,64], index: 4, kind: input, shape index: {}]   ;;  %s5324_s5 = inlined_call_operand.vmem [shape: f32[2,64,32], index: 5, kind: input, shape index: {}]   ;;  %s5325_s6 = inlined_call_operand.vmem [shape: f32[177,32], index: 6, kind: input, shape index: {}]   ;;  %s5326_s7 = inlined_call_operand.vmem [shape: f32[2,96], index: 7, kind: input, shape index: {}]   ;;  %s5327_s8 = inlined_call_operand.vmem [shape: f32[2,64], index: 8, kind: input, shape index: {}]   ;;  %s5328_s9 = inlined_call_operand.vmem [shape: s32[2,3], index: 9, kind: input, shape index: {}]   ;;  %s5329_s10 = inlined_call_operand.vmem [shape: s32[2,3], index: 10, kind: input, shape index: {}]   ;;  %s5330_s11 = inlined_call_operand.hbm [shape: f32[2,16,32], index: 11, kind: output, shape index: {}]  }
   0x1   :  { %v77_v0 = vld [vmem:[%s5320_s1 + $0x28] sm:$0xff]  ;;  %v76_v1 = vld [vmem:[%s5320_s1 + $0x20] sm:$0xff]  ;;  %v75_v2 = vld [vmem:[%s5320_s1 + $0x18] sm:$0xff] }
   0x2   :  { %107 = vmatpush.msra.mxu0 %v77_v0  ;;  %v74_v3 = vld [vmem:[%s5320_s1 + $0x10] sm:$0xff]  ;;  %v73_v4 = vld [vmem:[%s5320_s1 + $0x8] sm:$0xff]  ;;  %v72_v5 = vld [vmem:[%s5320_s1] sm:$0xff] }
   0x3   :  { %v66_v6 = vld [vmem:[%s5319_s0] sm:$0xff] }
   0x4   :  { %108 = vmatpush.msra.mxu0 %v76_v1 }
   0x6   :  { %109 = vmatpush.msra.mxu0 %v75_v2 }
   0x8   :  { %110 = vmatpush.msra.mxu0 %v74_v3 }
   0xa   :  { %111 = vmatpush.msra.mxu0 %v73_v4 }
   0xb   :  { %16 = vsyncpa [#allocation3], 0  ;;  %v67_v7 = vld [vmem:[%s5319_s0 + $0x8] sm:$0xff]  ;;  %v68_v8 = vld [vmem:[%s5319_s0 + $0x10] sm:$0xff]  ;;  %vm138_vm1 = vcmask 261120   ;;  %v3643_v36 = vmov 32.0  }
   0xc   :  { %112 = vmatpush.msra.mxu0 %v72_v5  ;;  %v69_v9 = vld [vmem:[%s5319_s0 + $0x18] sm:$0xff]  ;;  %v70_v10 = vld [vmem:[%s5319_s0 + $0x20] sm:$0xff]  ;;  %v71_v11 = vld [vmem:[%s5319_s0 + $0x28] sm:$0xff]  ;;  %3328 = vrcp.f32 %v3643_v36  ;;  %s3644_s25 = smov 96   ;;  %s3645_s26 = smov 64  }
   0xd   :  { %3073 = vmatmul.msk.f32.vlgmr.msra.gmra.mxu0 %vm78_vm0, %v66_v6  ;;  %v39_v12 = vld [vmem:[%s5325_s6] sm:$0xff]  ;;  %v40_v16 = vld [vmem:[%s5325_s6 + $0x8] sm:$0xff]  ;;  %v41_v20 = vld [vmem:[%s5325_s6 + $0x10] sm:$0xff]  ;;  %s3061_s23 = sshll.u32 %s5330_s11, 4  ;;  %s3649_s24 = smov 128   ;;  %s3062_s23 = int_to_ptr.hbm [resolvable:$true] %s3061_s23 }
   0xe   :  { %v42_v24 = vld [vmem:[%s5325_s6 + $0x18] sm:$0xff]  ;;  %v43_v28 = vld [vmem:[%s5325_s6 + $0x20] sm:$0xff]  ;;  %v44_v32 = vld [vmem:[%s5325_s6 + $0x28] sm:$0xff]  ;;  %s3650_s0 = smov 8  }
   0xf   :  { %v3857_v36 = vld [vmem:[%s5325_s6 + $0xa5] ss:$0 sm:$0xff] }
  0x12   :  { %v3329_v37 = vpop.eup %3328 }
  0x13   :  { %v158_v38 = vmul.f32 32.0, %v3329_v37  ;;  %vm162_vm2 = vweird.f32 %v3329_v37 }
  0x15   :  { %3074 = vmatmul.msk.f32.gmra.mxu0 %vm78_vm0, %v67_v7  ;;  %v159_v39 = vsub.f32 1.0, %v158_v38 }
  0x17   :  { %v160_v40 = vmul.f32 %v3329_v37, %v159_v39 }
  0x19   :  { %v161_v41 = vadd.f32 %v3329_v37, %v160_v40  ;;  %v3863_v40 = vld [vmem:[%s5325_s6 + $0xa6] ss:$0 sm:$0xff] }
  0x1b   :  { %v3795_v42 = vsel %vm162_vm2, %v3329_v37, %v161_v41 }
  0x1d   :  { %3075 = vmatmul.msk.f32.gmra.mxu0 %vm78_vm0, %v68_v8 }
  0x25   :  { %3076 = vmatmul.msk.f32.gmra.mxu0 %vm78_vm0, %v69_v9  ;;  %v295_v9 = vld [vmem:[%s5321_s2 + $0x18] sm:$0xff] }
  0x26   :  { %328 = vmatpush.msra.mxu1 %v295_v9 }
  0x2d   :  { %3077 = vmatmul.msk.f32.gmra.mxu0 %vm78_vm0, %v70_v10  ;;  %v294_v10 = vld [vmem:[%s5321_s2 + $0x10] sm:$0xff] }
  0x2e   :  { %329 = vmatpush.msra.mxu1 %v294_v10 }
  0x35   :  { %3078 = vmatmul.msk.f32.gmra.mxu0 %vm78_vm0, %v71_v11  ;;  %v293_v11 = vld [vmem:[%s5321_s2 + $0x8] sm:$0xff] }
  0x36   :  { %330 = vmatpush.msra.mxu1 %v293_v11 }
  0x8a   :  { %v114_v13 = vpop.f32.mrf.mxu0 }
  0x8b   :  { %v3756_v14 = vadd.f32 %v114_v13, %v39_v12  ;;  %v292_v12 = vld [vmem:[%s5321_s2] sm:$0xff] }
  0x8c   :  { %331 = vmatpush.msra.mxu1 %v292_v12 }
  0x8d   :  { %v139_v15 = vsel %vm138_vm1, %v3756_v14, 0.0 }
  0x8e   :  { %140 = vadd.xlane.f32.xlu0 %v139_v15 }
  0x92   :  { %v117_v17 = vpop.f32.mrf.mxu0 }
  0x93   :  { %v3763_v18 = vadd.f32 %v117_v17, %v40_v16 }
  0x95   :  { %v142_v19 = vsel %vm138_vm1, %v3763_v18, 0.0 }
  0x96   :  { %143 = vadd.xlane.f32.xlu0 %v142_v19 }
  0x9a   :  { %v120_v21 = vpop.f32.mrf.mxu0 }
  0x9b   :  { %v3770_v22 = vadd.f32 %v120_v21, %v41_v20 }
  0x9d   :  { %v145_v23 = vsel %vm138_vm1, %v3770_v22, 0.0 }
  0x9e   :  { %146 = vadd.xlane.f32.xlu1 %v145_v23 }
  0xa2   :  { %v123_v25 = vpop.f32.mrf.mxu0 }
  0xa3   :  { %v3777_v26 = vadd.f32 %v123_v25, %v42_v24 }
  0xa5   :  { %v148_v27 = vsel %vm138_vm1, %v3777_v26, 0.0 }
  0xa6   :  { %149 = vadd.xlane.f32.xlu1 %v148_v27 }
  0xaa   :  { %v126_v29 = vpop.f32.mrf.mxu0 }
  0xab   :  { %v3784_v30 = vadd.f32 %v126_v29, %v43_v28 }
  0xad   :  { %v151_v31 = vsel %vm138_vm1, %v3784_v30, 0.0 }
  0xae   :  { %152 = vadd.xlane.f32.xlu2 %v151_v31 }
  0xb2   :  { %v129_v33 = vpop.f32.mrf.mxu0 }
  0xb3   :  { %v3791_v34 = vadd.f32 %v129_v33, %v44_v32 }
  0xb5   :  { %v154_v35 = vsel %vm138_vm1, %v3791_v34, 0.0 }
  0xb6   :  { %155 = vadd.xlane.f32.xlu0 %v154_v35 }
 0x101   :  { %v141_v43 = vpop.xlane.xlu0 %140 }
 0x102   :  { %v164_v44 = vmul.f32 %v3795_v42, %v141_v43 }
 0x104   :  { %v3799_v45 = vsub.f32 %v3756_v14, %v164_v44 }
 0x106   :  { %v176_v46 = vmul.f32 %v3799_v45, %v3799_v45 }
 0x108   :  { %v182_v47 = vsel %vm138_vm1, %v176_v46, 0.0 }
 0x109   :  { %183 = vadd.xlane.f32.xlu2 %v182_v47  ;;  %v144_v48 = vpop.xlane.xlu0 %143 }
 0x10a   :  { %v165_v49 = vmul.f32 %v3795_v42, %v144_v48 }
 0x10c   :  { %v3806_v50 = vsub.f32 %v3763_v18, %v165_v49 }
 0x10e   :  { %v177_v51 = vmul.f32 %v3806_v50, %v3806_v50 }
 0x110   :  { %v185_v52 = vsel %vm138_vm1, %v177_v51, 0.0 }
 0x111   :  { %v147_v53 = vpop.xlane.xlu1 %146  ;;  %186 = vadd.xlane.f32.xlu1 %v185_v52 }
 0x112   :  { %v166_v54 = vmul.f32 %v3795_v42, %v147_v53 }
 0x114   :  { %v3813_v55 = vsub.f32 %v3770_v22, %v166_v54 }
 0x116   :  { %v178_v56 = vmul.f32 %v3813_v55, %v3813_v55 }
 0x118   :  { %v188_v57 = vsel %vm138_vm1, %v178_v56, 0.0 }
 0x119   :  { %v150_v58 = vpop.xlane.xlu1 %149  ;;  %189 = vadd.xlane.f32.xlu2 %v188_v57 }
 0x11a   :  { %v167_v59 = vmul.f32 %v3795_v42, %v150_v58 }
 0x11c   :  { %v3820_v60 = vsub.f32 %v3777_v26, %v167_v59 }
 0x11e   :  { %v179_v61 = vmul.f32 %v3820_v60, %v3820_v60 }
 0x120   :  { %v191_v62 = vsel %vm138_vm1, %v179_v61, 0.0 }
 0x121   :  { %v153_v63 = vpop.xlane.xlu2 %152  ;;  %192 = vadd.xlane.f32.xlu0 %v191_v62 }
 0x122   :  { %v168_v0 = vmul.f32 %v3795_v42, %v153_v63 }
 0x124   :  { %v3827_v1 = vsub.f32 %v3784_v30, %v168_v0 }
 0x126   :  { %v180_v2 = vmul.f32 %v3827_v1, %v3827_v1 }
 0x128   :  { %v194_v3 = vsel %vm138_vm1, %v180_v2, 0.0 }
 0x129   :  { %195 = vadd.xlane.f32.xlu1 %v194_v3  ;;  %v156_v4 = vpop.xlane.xlu0 %155 }
 0x12a   :  { %v169_v5 = vmul.f32 %v3795_v42, %v156_v4 }
 0x12c   :  { %v3834_v6 = vsub.f32 %v3791_v34, %v169_v5 }
 0x12e   :  { %v181_v7 = vmul.f32 %v3834_v6, %v3834_v6 }
 0x130   :  { %v197_v8 = vsel %vm138_vm1, %v181_v7, 0.0 }
 0x131   :  { %198 = vadd.xlane.f32.xlu2 %v197_v8 }
 0x17c   :  { %v184_v13 = vpop.xlane.xlu2 %183 }
 0x17d   :  { %v200_v15 = vmul.f32 %v184_v13, %v3795_v42 }
 0x17f   :  { %v206_v16 = vadd.f32 1e-12, %v200_v15 }
 0x181   :  { %3330 = vrsqrt.f32 %v206_v16  ;;  %vm218_vm4 = vweird.f32 %v206_v16 }
 0x184   :  { %v187_v17 = vpop.xlane.xlu1 %186 }
 0x185   :  { %v201_v19 = vmul.f32 %v187_v17, %v3795_v42 }
 0x187   :  { %v3331_v20 = vpop.eup %3330  ;;  %v207_v21 = vadd.f32 1e-12, %v201_v19 }
 0x188   :  { %v213_v23 = vmul.f32 %v3331_v20, %v206_v16  ;;  %vm219_vm3 = vweird.f32 %v3331_v20 }
 0x189   :  { %3332 = vrsqrt.f32 %v207_v21  ;;  %vm220_vm5 = vmor %vm218_vm4, %vm219_vm3  ;;  %vm228_vm7 = vweird.f32 %v207_v21 }
 0x18a   :  { %v214_v24 = vmul.f32 %v3331_v20, %v213_v23 }
 0x18c   :  { %v215_v25 = vmul.f32 0.5, %v214_v24  ;;  %v190_v27 = vpop.xlane.xlu2 %189 }
 0x18d   :  { %v202_v28 = vmul.f32 %v190_v27, %v3795_v42 }
 0x18e   :  { %v216_v29 = vsub.f32 1.5, %v215_v25 }
 0x18f   :  { %v3333_v31 = vpop.eup %3332  ;;  %v208_v32 = vadd.f32 1e-12, %v202_v28 }
 0x190   :  { %v217_v33 = vmul.f32 %v3331_v20, %v216_v29  ;;  %v223_v35 = vmul.f32 %v3333_v31, %v207_v21  ;;  %vm229_vm6 = vweird.f32 %v3333_v31 }
 0x191   :  { %3334 = vrsqrt.f32 %v208_v32  ;;  %vm230_vm8 = vmor %vm228_vm7, %vm229_vm6  ;;  %vm238_vm10 = vweird.f32 %v208_v32  ;;  %vm470_vm7 = vcmask 195584  }
 0x192   :  { %v224_v37 = vmul.f32 %v3333_v31, %v223_v35  ;;  %v221_v38 = vsel %vm220_vm5, %v3331_v20, %v217_v33 }
 0x193   :  { %v272_v39 = vmul.f32 %v221_v38, %v3799_v45 }
 0x194   :  { %v225_v41 = vmul.f32 0.5, %v224_v37  ;;  %v193_v43 = vpop.xlane.xlu0 %192 }
 0x195   :  { %v203_v44 = vmul.f32 %v193_v43, %v3795_v42  ;;  %v279_v46 = vmul.f32 %v3857_v36, %v272_v39 }
 0x196   :  { %v226_v47 = vsub.f32 1.5, %v225_v41 }
 0x197   :  { %v3335_v48 = vpop.eup %3334  ;;  %v209_v49 = vadd.f32 1e-12, %v203_v44  ;;  %v286_v51 = vadd.f32 %v3863_v40, %v279_v46 }
 0x198   :  { %v227_v52 = vmul.f32 %v3333_v31, %v226_v47  ;;  %v233_v45 = vmul.f32 %v3335_v48, %v208_v32  ;;  %vm239_vm9 = vweird.f32 %v3335_v48 }
 0x199   :  { %3336 = vrsqrt.f32 %v209_v49  ;;  %3079 = vmatmul.msk.f32.vlgmr.msra.gmra.mxu1 %vm138_vm1, %v286_v51  ;;  %vm240_vm11 = vmor %vm238_vm10, %vm239_vm9  ;;  %vm248_vm13 = vweird.f32 %v209_v49 }
 0x19a   :  { %v234_v53 = vmul.f32 %v3335_v48, %v233_v45  ;;  %v231_v54 = vsel %vm230_vm8, %v3333_v31, %v227_v52 }
 0x19b   :  { %v273_v56 = vmul.f32 %v231_v54, %v3806_v50 }
 0x19c   :  { %v235_v57 = vmul.f32 0.5, %v234_v53  ;;  %v196_v58 = vpop.xlane.xlu1 %195 }
 0x19d   :  { %v204_v59 = vmul.f32 %v196_v58, %v3795_v42  ;;  %v280_v61 = vmul.f32 %v3857_v36, %v273_v56 }
 0x19e   :  { %v236_v62 = vsub.f32 1.5, %v235_v57 }
 0x19f   :  { %v3337_v63 = vpop.eup %3336  ;;  %v210_v0 = vadd.f32 1e-12, %v204_v59  ;;  %v287_v2 = vadd.f32 %v3863_v40, %v280_v61 }
 0x1a0   :  { %v237_v3 = vmul.f32 %v3335_v48, %v236_v62  ;;  %v243_v4 = vmul.f32 %v3337_v63, %v209_v49  ;;  %vm249_vm12 = vweird.f32 %v3337_v63 }
 0x1a1   :  { %3338 = vrsqrt.f32 %v210_v0  ;;  %3080 = vmatmul.msk.f32.gmra.mxu1 %vm138_vm1, %v287_v2  ;;  %vm250_vm14 = vmor %vm248_vm13, %vm249_vm12  ;;  %vm258_vm0 = vweird.f32 %v210_v0  ;;  %v3923_v2 = vld [vmem:[%s5325_s6 + $0x30] sm:$0xff] }
 0x1a2   :  { %v244_v50 = vmul.f32 %v3337_v63, %v243_v4  ;;  %v241_v5 = vsel %vm240_vm11, %v3335_v48, %v237_v3 }
 0x1a3   :  { %v274_v7 = vmul.f32 %v241_v5, %v3813_v55 }
 0x1a4   :  { %v245_v8 = vmul.f32 0.5, %v244_v50  ;;  %v199_v9 = vpop.xlane.xlu2 %198 }
 0x1a5   :  { %v205_v10 = vmul.f32 %v199_v9, %v3795_v42  ;;  %v281_v11 = vmul.f32 %v3857_v36, %v274_v7  ;;  %v3931_v7 = vld [vmem:[%s5325_s6 + $0x38] sm:$0xff] }
 0x1a6   :  { %v246_v12 = vsub.f32 1.5, %v245_v8 }
 0x1a7   :  { %v3339_v13 = vpop.eup %3338  ;;  %v211_v15 = vadd.f32 1e-12, %v205_v10  ;;  %v288_v16 = vadd.f32 %v3863_v40, %v281_v11 }
 0x1a8   :  { %v247_v17 = vmul.f32 %v3337_v63, %v246_v12  ;;  %v253_v19 = vmul.f32 %v3339_v13, %v210_v0  ;;  %vm259_vm15 = vweird.f32 %v3339_v13 }
 0x1a9   :  { %3340 = vrsqrt.f32 %v211_v15  ;;  %3081 = vmatmul.msk.f32.gmra.mxu1 %vm138_vm1, %v288_v16  ;;  %vm260_vm2 = vmor %vm258_vm0, %vm259_vm15  ;;  %vm268_vm4 = vweird.f32 %v211_v15 }
 0x1aa   :  { %v254_v55 = vmul.f32 %v3339_v13, %v253_v19  ;;  %v251_v20 = vsel %vm250_vm14, %v3337_v63, %v247_v17 }
 0x1ab   :  { %v275_v21 = vmul.f32 %v251_v20, %v3820_v60 }
 0x1ac   :  { %v255_v23 = vmul.f32 0.5, %v254_v55  ;;  %v3948_v55 = vld [vmem:[%s5325_s6 + $0x48] sm:$0xff] }
 0x1ad   :  { %v282_v24 = vmul.f32 %v3857_v36, %v275_v21 }
 0x1ae   :  { %v256_v25 = vsub.f32 1.5, %v255_v23 }
 0x1af   :  { %v3341_v27 = vpop.eup %3340  ;;  %v289_v28 = vadd.f32 %v3863_v40, %v282_v24  ;;  %v3959_v24 = vld [vmem:[%s5325_s6 + $0x50] sm:$0xff] }
 0x1b0   :  { %v257_v29 = vmul.f32 %v3339_v13, %v256_v25  ;;  %v263_v31 = vmul.f32 %v3341_v27, %v211_v15  ;;  %vm269_vm3 = vweird.f32 %v3341_v27 }
 0x1b1   :  { %3082 = vmatmul.msk.f32.gmra.mxu1 %vm138_vm1, %v289_v28  ;;  %vm270_vm5 = vmor %vm268_vm4, %vm269_vm3 }
 0x1b2   :  { %v264_v32 = vmul.f32 %v3341_v27, %v263_v31  ;;  %v261_v33 = vsel %vm260_vm2, %v3339_v13, %v257_v29  ;;  %v3938_v13 = vld [vmem:[%s5325_s6 + $0x40] sm:$0xff]  ;;  %v3969_v29 = vld [vmem:[%s5325_s6 + $0x58] sm:$0xff] }
 0x1b3   :  { %v276_v35 = vmul.f32 %v261_v33, %v3827_v1  ;;  %v3310_v1 = vld [vmem:[%s5326_s7] ss:$0 sm:$0xff] }
 0x1b4   :  { %v265_v37 = vmul.f32 0.5, %v264_v32  ;;  %v3978_v33 = vld [vmem:[%s5325_s6 + $0x60] sm:$0xff] }
 0x1b5   :  { %v283_v60 = vmul.f32 %v3857_v36, %v276_v35 }
 0x1b6   :  { %v266_v38 = vsub.f32 1.5, %v265_v37 }
 0x1b7   :  { %v290_v39 = vadd.f32 %v3863_v40, %v283_v60  ;;  %v3987_v60 = vld [vmem:[%s5325_s6 + $0x68] sm:$0xff] }
 0x1b8   :  { %v267_v41 = vmul.f32 %v3341_v27, %v266_v38 }
 0x1b9   :  { %3083 = vmatmul.msk.f32.gmra.mxu1 %vm138_vm1, %v290_v39 }
 0x1ba   :  { %v271_v43 = vsel %vm270_vm5, %v3341_v27, %v267_v41  ;;  %v3996_v41 = vld [vmem:[%s5325_s6 + $0x70] sm:$0xff] }
 0x1bb   :  { %v277_v44 = vmul.f32 %v271_v43, %v3834_v6 }
 0x1bd   :  { %v284_v46 = vmul.f32 %v3857_v36, %v277_v44 }
 0x1bf   :  { %v291_v47 = vadd.f32 %v3863_v40, %v284_v46  ;;  %v4005_v46 = vld [vmem:[%s5325_s6 + $0x78] sm:$0xff] }
 0x1c1   :  { %3084 = vmatmul.msk.f32.gmra.mxu1 %vm138_vm1, %v291_v47 }
 0x216   :  { %v333_v48 = vpop.f32.mrf.mxu1 }
 0x217   :  { %v3894_v49 = vadd.f32 %v3310_v1, %v333_v48  ;;  %v4014_v48 = vld [vmem:[%s5325_s6 + $0x80] sm:$0xff] }
 0x219   :  { %369 = vrot.lane.b32.xlu2 %v3894_v49, %s3644_s25  ;;  %v351_v0 = vmul.f32 0.35355338, %v3894_v49 }
 0x21b   :  { %v354_v50 = vmul.f32 %v351_v0, %v3923_v2  ;;  %v357_v20 = vmul.f32 %v351_v0, %v3948_v55  ;;  %v360_v35 = vmul.f32 %v351_v0, %v3978_v33  ;;  %v363_v47 = vmul.f32 %v351_v0, %v4005_v46 }
 0x21e   :  { %v336_v51 = vpop.f32.mrf.mxu1 }
 0x21f   :  { %v337_v52 = vadd.f32 %v3310_v1, %v336_v51 }
 0x221   :  { %371 = vrot.lane.b32.xlu1 %v337_v52, %s3644_s25  ;;  %v352_v5 = vmul.f32 0.35355338, %v337_v52 }
 0x223   :  { %v355_v10 = vmul.f32 %v352_v5, %v3931_v7  ;;  %v358_v25 = vmul.f32 %v352_v5, %v3959_v24  ;;  %v361_v38 = vmul.f32 %v352_v5, %v3987_v60  ;;  %v364_v51 = vmul.f32 %v352_v5, %v4014_v48 }
 0x226   :  { %v339_v6 = vpop.f32.mrf.mxu1 }
 0x227   :  { %v340_v36 = vadd.f32 %v3310_v1, %v339_v6  ;;  %v4023_v6 = vld [vmem:[%s5325_s6 + $0x88] sm:$0xff] }
 0x229   :  { %373 = vrot.lane.b32.xlu0 %v340_v36, %s3644_s25  ;;  %v3278_v56 = vpack.i.bf16 %v337_v52, %v340_v36  ;;  %v353_v12 = vmul.f32 0.35355338, %v340_v36 }
 0x22b   :  { %v356_v16 = vmul.f32 %v353_v12, %v3938_v13  ;;  %v359_v31 = vmul.f32 %v353_v12, %v3969_v29  ;;  %v362_v43 = vmul.f32 %v353_v12, %v3996_v41  ;;  %v365_v36 = vmul.f32 %v353_v12, %v4023_v6 }
 0x22e   :  { %v342_v40 = vpop.f32.mrf.mxu1 }
 0x22f   :  { %v3900_v45 = vadd.f32 %v3310_v1, %v342_v40 }
 0x231   :  { %740 = vrot.lane.b32.xlu1 %v3900_v45, %s3644_s25  ;;  %v722_v19 = vmul.f32 0.35355338, %v3900_v45 }
 0x233   :  { %v725_v21 = vmul.f32 %v722_v19, %v3923_v2  ;;  %v728_v37 = vmul.f32 %v722_v19, %v3948_v55 }
 0x236   :  { %v345_v53 = vpop.f32.mrf.mxu1 }
 0x237   :  { %v3904_v54 = vadd.f32 %v3310_v1, %v345_v53  ;;  %v734_v53 = vmul.f32 %v722_v19, %v4005_v46 }
 0x239   :  { %742 = vrot.lane.b32.xlu2 %v3904_v54, %s3644_s25  ;;  %3279 = vrot.lane.b32.xlu1 %v3278_v56, %s3645_s26  ;;  %v3288_v57 = vpack.i.bf16 %v3900_v45, %v3904_v54  ;;  %v723_v23 = vmul.f32 0.35355338, %v3904_v54 }
 0x23b   :  { %v726_v27 = vmul.f32 %v723_v23, %v3931_v7  ;;  %v729_v39 = vmul.f32 %v723_v23, %v3959_v24  ;;  %v732_v52 = vmul.f32 %v723_v23, %v3987_v60  ;;  %v735_v56 = vmul.f32 %v723_v23, %v4014_v48 }
 0x23e   :  { %v348_v58 = vpop.f32.mrf.mxu1 }
 0x23f   :  { %v3911_v59 = vadd.f32 %v3310_v1, %v348_v58  ;;  %v731_v1 = vmul.f32 %v722_v19, %v3978_v33 }
 0x241   :  { %744 = vrot.lane.b32.xlu0 %v3911_v59, %s3644_s25  ;;  %v3283_v61 = vpack.i.bf16 %v3911_v59, %v3894_v49  ;;  %v724_v28 = vmul.f32 0.35355338, %v3911_v59 }
 0x243   :  { %v727_v32 = vmul.f32 %v724_v28, %v3938_v13  ;;  %v730_v44 = vmul.f32 %v724_v28, %v3969_v29  ;;  %v733_v40 = vmul.f32 %v724_v28, %v3996_v41  ;;  %v736_v58 = vmul.f32 %v724_v28, %v4023_v6 }
 0x273   :  { %v370_v3 = vpop.permute.xlu2 %369 }
 0x293   :  { %v372_v62 = vpop.permute.xlu1 %371  ;;  %v743_v17 = vpop.permute.xlu2 %742 }
 0x29b   :  { %v374_v63 = vpop.permute.xlu0 %373 }
 0x29c   :  { %3085 = vmatpush.xpose.msk.msra.mxu2 %vm138_vm1, %v374_v63  ;;  %v62_v63 = vlaneseq }
 0x2a0   :  { %3086 = vmatpush.xpose.msk.msra.mxu2 %vm138_vm1, %v372_v62 }
 0x2a3   :  { %v741_v4 = vpop.permute.xlu1 %740 }
 0x2a4   :  { %3087 = vmatpush.xpose.msk.msra.mxu2 %vm138_vm1, %v370_v3  ;;  %v63_v3 = vand.u32 127, %v62_v63 }
 0x2a6   :  { %vm64_vm6 = vcmp.lt.s32.totalorder %v63_v3, 17 }
 0x2a7   :  { %3088 = vmatmul.msk.f32.vlgmr.msra.gmra.mxu2 %vm138_vm1, %v354_v50  ;;  %v3646_v50 = vmov -1e+09  }
 0x2a8   :  { %v4040_v5 = vsel %vm64_vm6, 0.0, %v3646_v50 }
 0x2ab   :  { %v3280_v8 = vpop.permute.xlu1 %3279 }
 0x2ac   :  { %v3281_v9 = vunpack.i.l.bf16 %v3280_v8  ;;  %v3282_v11 = vunpack.i.h.bf16 %v3280_v8 }
 0x2ae   :  { %637 = vmatpush.msrb.mxu2 %v3281_v9  ;;  %3267 = vmatpush.msra.mxu3 %v3281_v9 }
 0x2af   :  { %3089 = vmatmul.msk.f32.gmra.mxu2 %vm138_vm1, %v355_v10 }
 0x2b0   :  { %638 = vmatpush.msrb.mxu2 %v3282_v11  ;;  %3268 = vmatpush.msra.mxu3 %v3282_v11 }
 0x2b3   :  { %v745_v15 = vpop.permute.xlu0 %744 }
 0x2b4   :  { %3112 = vmatpush.xpose.msk.msrb.mxu1 %vm138_vm1, %v745_v15 }
 0x2b7   :  { %3090 = vmatmul.msk.f32.gmra.mxu2 %vm138_vm1, %v356_v16 }
 0x2b8   :  { %3113 = vmatpush.xpose.msk.msrb.mxu1 %vm138_vm1, %v743_v17 }
 0x2bc   :  { %3114 = vmatpush.xpose.msk.msrb.mxu1 %vm138_vm1, %v741_v4 }
 0x2bf   :  { %3091 = vmatmul.msk.f32.gmra.mxu2 %vm138_vm1, %v357_v20  ;;  %3115 = vmatmul.msk.f32.vlgmr.msrb.gmra.mxu1 %vm138_vm1, %v725_v21 }
 0x2c7   :  { %3092 = vmatmul.msk.f32.gmra.mxu2 %vm138_vm1, %v358_v25  ;;  %3116 = vmatmul.msk.f32.gmra.mxu1 %vm138_vm1, %v726_v27 }
 0x2cf   :  { %3093 = vmatmul.msk.f32.gmra.mxu2 %vm138_vm1, %v359_v31  ;;  %3117 = vmatmul.msk.f32.gmra.mxu1 %vm138_vm1, %v727_v32 }
 0x2d7   :  { %3094 = vmatmul.msk.f32.gmra.mxu2 %vm138_vm1, %v360_v35  ;;  %3118 = vmatmul.msk.f32.gmra.mxu1 %vm138_vm1, %v728_v37 }
 0x2df   :  { %3095 = vmatmul.msk.f32.gmra.mxu2 %vm138_vm1, %v361_v38  ;;  %3119 = vmatmul.msk.f32.gmra.mxu1 %vm138_vm1, %v729_v39 }
 0x2e7   :  { %3096 = vmatmul.msk.f32.gmra.mxu2 %vm138_vm1, %v362_v43  ;;  %3120 = vmatmul.msk.f32.gmra.mxu1 %vm138_vm1, %v730_v44 }
 0x2ef   :  { %3097 = vmatmul.msk.f32.gmra.mxu2 %vm138_vm1, %v363_v47  ;;  %3121 = vmatmul.msk.f32.gmra.mxu1 %vm138_vm1, %v731_v1 }
 0x2f7   :  { %3098 = vmatmul.msk.f32.gmra.mxu2 %vm138_vm1, %v364_v51  ;;  %3122 = vmatmul.msk.f32.gmra.mxu1 %vm138_vm1, %v732_v52 }
 0x2ff   :  { %3099 = vmatmul.msk.f32.gmra.mxu2 %vm138_vm1, %v365_v36  ;;  %3123 = vmatmul.msk.f32.gmra.mxu1 %vm138_vm1, %v733_v40 }
 0x307   :  { %3124 = vmatmul.msk.f32.gmra.mxu1 %vm138_vm1, %v734_v53 }
 0x30f   :  { %3125 = vmatmul.msk.f32.gmra.mxu1 %vm138_vm1, %v735_v56 }
 0x317   :  { %3126 = vmatmul.msk.f32.gmra.mxu1 %vm138_vm1, %v736_v58 }
 0x32a   :  { %v434_v62 = vpop.f32.mrf.mxu2 }
 0x32b   :  { %v4091_v45 = vadd.f32 %v434_v62, %v4040_v5 }
 0x332   :  { %v4035_v0 = vpop.f32.mrf.mxu2 }
 0x33a   :  { %v4038_v4 = vpop.f32.mrf.mxu2 }
 0x33c   :  { %v805_v8 = vpop.f32.mrf.mxu1 }
 0x33d   :  { %v4043_v9 = vadd.f32 %v805_v8, %v4040_v5 }
 0x33f   :  { %v841_v10 = vsel %vm470_vm7, %v4043_v9, -inf }
 0x340   :  { %842 = vmax.xlane.f32.xlu2 %v841_v10 }
 0x342   :  { %v443_v11 = vpop.f32.mrf.mxu2 }
 0x343   :  { %v4048_v12 = vadd.f32 %v443_v11, %v4040_v5 }
 0x344   :  { %v808_v15 = vpop.f32.mrf.mxu1 }
 0x345   :  { %v4051_v16 = vadd.f32 %v808_v15, %v4040_v5  ;;  %v480_v17 = vsel %vm470_vm7, %v4048_v12, -inf  ;;  %v4120_v15 = vadd.f32 %v4035_v0, %v4040_v5 }
 0x346   :  { %481 = vmax.xlane.f32.xlu0 %v480_v17 }
 0x347   :  { %v844_v19 = vsel %vm470_vm7, %v4051_v16, -inf }
 0x348   :  { %845 = vmax.xlane.f32.xlu2 %v844_v19 }
 0x34a   :  { %v446_v20 = vpop.f32.mrf.mxu2 }
 0x34b   :  { %v4058_v21 = vadd.f32 %v446_v20, %v4040_v5 }
 0x34c   :  { %v811_v23 = vpop.f32.mrf.mxu1 }
 0x34d   :  { %v483_v25 = vsel %vm470_vm7, %v4058_v21, -inf  ;;  %v4101_v53 = vadd.f32 %v811_v23, %v4040_v5  ;;  %v474_v23 = vsel %vm470_vm7, %v4120_v15, -inf }
 0x34e   :  { %484 = vmax.xlane.f32.xlu1 %v483_v25 }
 0x34f   :  { %v847_v62 = vsel %vm470_vm7, %v4101_v53, -inf }
 0x352   :  { %v449_v27 = vpop.f32.mrf.mxu2 }
 0x353   :  { %v4063_v28 = vadd.f32 %v449_v27, %v4040_v5  ;;  %v4136_v27 = vadd.f32 %v4038_v4, %v4040_v5 }
 0x354   :  { %v814_v31 = vpop.f32.mrf.mxu1 }
 0x355   :  { %v486_v32 = vsel %vm470_vm7, %v4063_v28, -inf  ;;  %v4068_v35 = vadd.f32 %v814_v31, %v4040_v5 }
 0x356   :  { %487 = vmax.xlane.f32.xlu1 %v486_v32 }
 0x357   :  { %v850_v38 = vsel %vm470_vm7, %v4068_v35, -inf }
 0x35a   :  { %3284 = vrot.lane.b32.xlu0 %v3283_v61, %s3645_s26  ;;  %v452_v39 = vpop.f32.mrf.mxu2 }
 0x35b   :  { %v4081_v43 = vadd.f32 %v452_v39, %v4040_v5  ;;  %v477_v39 = vsel %vm470_vm7, %v4136_v27, -inf }
 0x35c   :  { %v817_v37 = vpop.f32.mrf.mxu1 }
 0x35d   :  { %v489_v47 = vsel %vm470_vm7, %v4081_v43, -inf  ;;  %v4086_v49 = vadd.f32 %v817_v37, %v4040_v5 }
 0x35e   :  { %851 = vmax.xlane.f32.xlu1 %v850_v38 }
 0x35f   :  { %v853_v1 = vsel %vm470_vm7, %v4086_v49, -inf }
 0x360   :  { %3289 = vrot.lane.b32.xlu2 %v3288_v57, %s3645_s26  ;;  %v471_v57 = vsel %vm470_vm7, %v4091_v45, -inf }
 0x362   :  { %v455_v59 = vpop.f32.mrf.mxu2 }
 0x363   :  { %v4109_v3 = vadd.f32 %v455_v59, %v4040_v5 }
 0x364   :  { %v820_v44 = vpop.f32.mrf.mxu1 }
 0x365   :  { %v4104_v58 = vadd.f32 %v820_v44, %v4040_v5  ;;  %v492_v11 = vsel %vm470_vm7, %v4109_v3, -inf }
 0x366   :  { %490 = vmax.xlane.f32.xlu1 %v489_v47 }
 0x367   :  { %v856_v50 = vsel %vm470_vm7, %v4104_v58, -inf }
 0x36a   :  { %v458_v54 = vpop.f32.mrf.mxu2 }
 0x36b   :  { %v4096_v52 = vadd.f32 %v458_v54, %v4040_v5 }
 0x36c   :  { %v823_v61 = vpop.f32.mrf.mxu1 }
 0x36d   :  { %v495_v40 = vsel %vm470_vm7, %v4096_v52, -inf  ;;  %v4130_v25 = vadd.f32 %v823_v61, %v4040_v5 }
 0x36e   :  { %854 = vmax.xlane.f32.xlu1 %v853_v1 }
 0x36f   :  { %v859_v32 = vsel %vm470_vm7, %v4130_v25, -inf }
 0x372   :  { %v461_v36 = vpop.f32.mrf.mxu2 }
 0x373   :  { %v4114_v8 = vadd.f32 %v461_v36, %v4040_v5 }
 0x374   :  { %v826_v51 = vpop.f32.mrf.mxu1 }
 0x375   :  { %v498_v19 = vsel %vm470_vm7, %v4114_v8, -inf  ;;  %v4146_v44 = vadd.f32 %v826_v51, %v4040_v5 }
 0x376   :  { %472 = vmax.xlane.f32.xlu1 %v471_v57 }
 0x377   :  { %v862_v59 = vsel %vm470_vm7, %v4146_v44, -inf }
 0x37a   :  { %v464_v10 = vpop.f32.mrf.mxu2 }
 0x37b   :  { %v4125_v20 = vadd.f32 %v464_v10, %v4040_v5 }
 0x37c   :  { %v829_v56 = vpop.f32.mrf.mxu1 }
 0x37d   :  { %v501_v0 = vsel %vm470_vm7, %v4125_v20, -inf  ;;  %v4151_v47 = vadd.f32 %v829_v56, %v4040_v5 }
 0x37e   :  { %496 = vmax.xlane.f32.xlu1 %v495_v40 }
 0x37f   :  { %v865_v1 = vsel %vm470_vm7, %v4151_v47, -inf }
 0x382   :  { %v467_v31 = vpop.f32.mrf.mxu2 }
 0x383   :  { %v4141_v37 = vadd.f32 %v467_v31, %v4040_v5 }
 0x384   :  { %848 = vmax.xlane.f32.xlu0 %v847_v62  ;;  %v832_v17 = vpop.f32.mrf.mxu1 }
 0x385   :  { %v504_v4 = vsel %vm470_vm7, %v4141_v37, -inf  ;;  %v4161_v57 = vadd.f32 %v832_v17, %v4040_v5 }
 0x386   :  { %857 = vmax.xlane.f32.xlu1 %v856_v50 }
 0x387   :  { %v868_v40 = vsel %vm470_vm7, %v4161_v57, -inf }
 0x389   :  { %493 = vmax.xlane.f32.xlu2 %v492_v11 }
 0x38c   :  { %499 = vmax.xlane.f32.xlu0 %v498_v19  ;;  %v835_v38 = vpop.f32.mrf.mxu1 }
 0x38d   :  { %v4156_v61 = vadd.f32 %v835_v38, %v4040_v5 }
 0x38e   :  { %475 = vmax.xlane.f32.xlu1 %v474_v23 }
 0x38f   :  { %v871_v51 = vsel %vm470_vm7, %v4156_v61, -inf }
 0x391   :  { %502 = vmax.xlane.f32.xlu2 %v501_v0 }
 0x394   :  { %860 = vmax.xlane.f32.xlu0 %v859_v32  ;;  %v838_v54 = vpop.f32.mrf.mxu1 }
 0x395   :  { %v4166_v36 = vadd.f32 %v838_v54, %v4040_v5 }
 0x396   :  { %478 = vmax.xlane.f32.xlu1 %v477_v39 }
 0x397   :  { %v874_v56 = vsel %vm470_vm7, %v4166_v36, -inf }
 0x399   :  { %505 = vmax.xlane.f32.xlu2 %v504_v4 }
 0x39c   :  { %863 = vmax.xlane.f32.xlu0 %v862_v59 }
 0x39e   :  { %866 = vmax.xlane.f32.xlu1 %v865_v1 }
 0x3a1   :  { %872 = vmax.xlane.f32.xlu2 %v871_v51 }
 0x3a4   :  { %869 = vmax.xlane.f32.xlu0 %v868_v40 }
 0x3a6   :  { %875 = vmax.xlane.f32.xlu1 %v874_v56 }
 0x3b3   :  { %v843_v62 = vpop.xlane.xlu2 %842 }
 0x3b4   :  { %v877_v31 = vsub.f32 %v4043_v9, %v843_v62 }
 0x3b6   :  { %v889_v38 = vmul.f32 1.442695, %v877_v31 }
 0x3b9   :  { %v482_v50 = vpop.xlane.xlu0 %481 }
 0x3ba   :  { %v510_v10 = vsub.f32 %v4048_v12, %v482_v50 }
 0x3bb   :  { %v846_v19 = vpop.xlane.xlu2 %845 }
 0x3bc   :  { %v525_v0 = vmul.f32 1.442695, %v510_v10  ;;  %v878_v12 = vsub.f32 %v4051_v16, %v846_v19 }
 0x3be   :  { %v891_v62 = vmul.f32 1.442695, %v878_v12 }
 0x3c1   :  { %v485_v11 = vpop.xlane.xlu1 %484 }
 0x3c2   :  { %v511_v17 = vsub.f32 %v4058_v21, %v485_v11 }
 0x3c3   :  { %v3290_v59 = vpop.permute.xlu2 %3289 }
 0x3c4   :  { %v527_v23 = vmul.f32 1.442695, %v511_v17  ;;  %v3291_v9 = vunpack.i.l.bf16 %v3290_v59  ;;  %v3292_v50 = vunpack.i.h.bf16 %v3290_v59 }
 0x3c6   :  { %3342 = vpow2.f32 %v527_v23 }
 0x3c7   :  { %3344 = vpow2.f32 %v525_v0 }
 0x3c8   :  { %3346 = vpow2.f32 %v889_v38 }
 0x3c9   :  { %v488_v32 = vpop.xlane.xlu1 %487  ;;  %3348 = vpow2.f32 %v891_v62 }
 0x3ca   :  { %v512_v40 = vsub.f32 %v4063_v28, %v488_v32 }
 0x3cc   :  { %v3343_v39 = vpop.eup %3342  ;;  %v3285_v4 = vpop.permute.xlu0 %3284  ;;  %v529_v16 = vmul.f32 1.442695, %v512_v40 }
 0x3cd   :  { %v555_v1 = vsel %vm470_vm7, %v3343_v39, 0.0  ;;  %v3286_v54 = vunpack.i.l.bf16 %v3285_v4  ;;  %v3287_v51 = vunpack.i.h.bf16 %v3285_v4  ;;  %v4177_v21 = vpop.eup %3344 }
 0x3ce   :  { %556 = vadd.xlane.f32.xlu1 %v555_v1  ;;  %v4182_v10 = vpop.eup %3346  ;;  %3350 = vpow2.f32 %v529_v16 }
 0x3cf   :  { %639 = vmatpush.msrb.mxu2 %v3286_v54  ;;  %3269 = vmatpush.msra.mxu3 %v3286_v54  ;;  %v4188_v19 = vpop.eup %3348 }
 0x3d0   :  { %1007 = vmatpush.msrb.mxu0 %v3287_v51  ;;  %3103 = vmatmul.msk.f32.vlgmr.msra.gmra.mxu3 %vm470_vm7, %v4177_v21 }
 0x3d1   :  { %v852_v56 = vpop.xlane.xlu1 %851 }
 0x3d2   :  { %1008 = vmatpush.msrb.mxu0 %v3291_v9  ;;  %v880_v40 = vsub.f32 %v4068_v35, %v852_v56 }
 0x3d4   :  { %1009 = vmatpush.msrb.mxu0 %v3292_v50  ;;  %v4192_v23 = vpop.eup %3350 }
 0x3d5   :  { %3127 = vmatmul.msk.f32.vlgmr.msrb.gmra.mxu0 %vm470_vm7, %v4182_v10 }
 0x3d8   :  { %3104 = vmatmul.msk.f32.gmra.mxu3 %vm470_vm7, %v3343_v39 }
 0x3d9   :  { %v491_v11 = vpop.xlane.xlu1 %490 }
 0x3da   :  { %v513_v17 = vsub.f32 %v4081_v43, %v491_v11  ;;  %v895_v11 = vmul.f32 1.442695, %v880_v40 }
 0x3dc   :  { %v531_v28 = vmul.f32 1.442695, %v513_v17 }
 0x3dd   :  { %3128 = vmatmul.msk.f32.gmra.mxu0 %vm470_vm7, %v4188_v19 }
 0x3de   :  { %3352 = vpow2.f32 %v531_v28 }
 0x3e0   :  { %3105 = vmatmul.msk.f32.gmra.mxu3 %vm470_vm7, %v4192_v23 }
 0x3e1   :  { %v855_v0 = vpop.xlane.xlu1 %854 }
 0x3e2   :  { %v881_v35 = vsub.f32 %v4086_v49, %v855_v0 }
 0x3e4   :  { %v3353_v31 = vpop.eup %3352 }
 0x3e5   :  { %v561_v32 = vsel %vm470_vm7, %v3353_v31, 0.0 }
 0x3e6   :  { %562 = vadd.xlane.f32.xlu1 %v561_v32 }
 0x3e8   :  { %3106 = vmatmul.msk.f32.gmra.mxu3 %vm470_vm7, %v3353_v31 }
 0x3e9   :  { %v473_v43 = vpop.xlane.xlu1 %472 }
 0x3ea   :  { %v507_v38 = vsub.f32 %v4091_v45, %v473_v43 }
 0x3ec   :  { %v519_v39 = vmul.f32 1.442695, %v507_v38 }
 0x3ee   :  { %3354 = vpow2.f32 %v519_v39  ;;  %v897_v39 = vmul.f32 1.442695, %v881_v35 }
 0x3f1   :  { %v497_v4 = vpop.xlane.xlu1 %496 }
 0x3f2   :  { %v515_v28 = vsub.f32 %v4096_v52, %v497_v4 }
 0x3f4   :  { %v3355_v59 = vpop.eup %3354  ;;  %v535_v56 = vmul.f32 1.442695, %v515_v28 }
 0x3f5   :  { %3100 = vmatmul.msk.f32.vlgmr.msrb.gmra.mxu2 %vm470_vm7, %v3355_v59  ;;  %v543_v1 = vsel %vm470_vm7, %v3355_v59, 0.0 }
 0x3f6   :  { %544 = vadd.xlane.f32.xlu0 %v543_v1 }
 0x3f7   :  { %v849_v54 = vpop.xlane.xlu0 %848 }
 0x3f8   :  { %v879_v51 = vsub.f32 %v4101_v53, %v849_v54 }
 0x3f9   :  { %v858_v12 = vpop.xlane.xlu1 %857 }
 0x3fa   :  { %v893_v9 = vmul.f32 1.442695, %v879_v51  ;;  %v882_v49 = vsub.f32 %v4104_v58, %v858_v12 }
 0x3fc   :  { %3356 = vpow2.f32 %v893_v9  ;;  %v494_v62 = vpop.xlane.xlu2 %493 }
 0x3fd   :  { %v514_v45 = vsub.f32 %v4109_v3, %v494_v62 }
 0x3ff   :  { %v533_v50 = vmul.f32 1.442695, %v514_v45  ;;  %v500_v16 = vpop.xlane.xlu0 %499  ;;  %v899_v45 = vmul.f32 1.442695, %v882_v49 }
 0x400   :  { %v516_v17 = vsub.f32 %v4114_v8, %v500_v16 }
 0x401   :  { %3358 = vpow2.f32 %v533_v50  ;;  %v476_v31 = vpop.xlane.xlu1 %475 }
 0x402   :  { %v4206_v32 = vpop.eup %3356  ;;  %v508_v53 = vsub.f32 %v4120_v15, %v476_v31  ;;  %v537_v43 = vmul.f32 1.442695, %v516_v17  ;;  %3360 = vpow2.f32 %v895_v11 }
 0x403   :  { %3129 = vmatmul.msk.f32.gmra.mxu0 %vm470_vm7, %v4206_v32 }
 0x404   :  { %v521_v3 = vmul.f32 1.442695, %v508_v53  ;;  %v503_v8 = vpop.xlane.xlu2 %502  ;;  %v552_v53 = vsel %vm470_vm7, %v4177_v21, 0.0 }
 0x405   :  { %v517_v12 = vsub.f32 %v4125_v20, %v503_v8 }
 0x406   :  { %3362 = vpow2.f32 %v521_v3  ;;  %v558_v3 = vsel %vm470_vm7, %v4192_v23, 0.0 }
 0x407   :  { %v3359_v38 = vpop.eup %3358  ;;  %3364 = vpow2.f32 %v537_v43  ;;  %v861_v52 = vpop.xlane.xlu0 %860  ;;  %v539_v28 = vmul.f32 1.442695, %v517_v12 }
 0x408   :  { %3107 = vmatmul.msk.f32.gmra.mxu3 %vm470_vm7, %v3359_v38  ;;  %v564_v4 = vsel %vm470_vm7, %v3359_v38, 0.0  ;;  %3366 = vpow2.f32 %v535_v56  ;;  %v4214_v59 = vpop.eup %3360  ;;  %v883_v54 = vsub.f32 %v4130_v25, %v861_v52 }
 0x409   :  { %v479_v15 = vpop.xlane.xlu1 %478  ;;  %565 = vadd.xlane.f32.xlu0 %v564_v4  ;;  %3368 = vpow2.f32 %v897_v39  ;;  %v913_v4 = vsel %vm470_vm7, %v4182_v10, 0.0 }
 0x40a   :  { %v509_v1 = vsub.f32 %v4136_v27, %v479_v15  ;;  %v901_v50 = vmul.f32 1.442695, %v883_v54 }
 0x40b   :  { %3130 = vmatmul.msk.f32.gmra.mxu0 %vm470_vm7, %v4214_v59 }
 0x40c   :  { %v3363_v0 = vpop.eup %3362  ;;  %v523_v51 = vmul.f32 1.442695, %v509_v1  ;;  %v506_v16 = vpop.xlane.xlu2 %505 }
 0x40d   :  { %v3365_v9 = vpop.eup %3364  ;;  %3101 = vmatmul.msk.f32.gmra.mxu2 %vm470_vm7, %v3363_v0  ;;  %v546_v40 = vsel %vm470_vm7, %v3363_v0, 0.0  ;;  %v518_v17 = vsub.f32 %v4141_v37, %v506_v16 }
 0x40e   :  { %3370 = vpow2.f32 %v523_v51  ;;  %547 = vadd.xlane.f32.xlu2 %v546_v40  ;;  %v3367_v62 = vpop.eup %3366  ;;  %v570_v58 = vsel %vm470_vm7, %v3365_v9, 0.0 }
 0x40f   :  { %v864_v27 = vpop.xlane.xlu0 %863  ;;  %v3369_v25 = vpop.eup %3368  ;;  %3372 = vpow2.f32 %v899_v45  ;;  %v541_v43 = vmul.f32 1.442695, %v518_v17  ;;  %v567_v8 = vsel %vm470_vm7, %v3367_v62, 0.0  ;;  %v922_v45 = vsel %vm470_vm7, %v4214_v59, 0.0 }
 0x410   :  { %3108 = vmatmul.msk.f32.gmra.mxu3 %vm470_vm7, %v3367_v62  ;;  %3374 = vpow2.f32 %v901_v50  ;;  %v884_v21 = vsub.f32 %v4146_v44, %v864_v27  ;;  %v925_v27 = vsel %vm470_vm7, %v3369_v25, 0.0 }
 0x411   :  { %571 = vadd.xlane.f32.xlu0 %v570_v58  ;;  %3376 = vpow2.f32 %v539_v28  ;;  %v867_v39 = vpop.xlane.xlu1 %866 }
 0x412   :  { %3378 = vpow2.f32 %v541_v43  ;;  %v903_v23 = vmul.f32 1.442695, %v884_v21  ;;  %v885_v44 = vsub.f32 %v4151_v47, %v867_v39  ;;  %v1093_v21 = vld [vmem:[%s5322_s3 + $0x8] sm:$0xff] }
 0x413   :  { %3131 = vmatmul.msk.f32.gmra.mxu0 %vm470_vm7, %v3369_v25 }
 0x414   :  { %v3371_v11 = vpop.eup %3370  ;;  %v905_v54 = vmul.f32 1.442695, %v885_v44  ;;  %v873_v51 = vpop.xlane.xlu2 %872 }
 0x415   :  { %3102 = vmatmul.msk.f32.gmra.mxu2 %vm470_vm7, %v3371_v11  ;;  %v549_v31 = vsel %vm470_vm7, %v3371_v11, 0.0  ;;  %v3373_v37 = vpop.eup %3372  ;;  %v887_v62 = vsub.f32 %v4156_v61, %v873_v51  ;;  %v916_v61 = vsel %vm470_vm7, %v4188_v19, 0.0 }
 0x416   :  { %550 = vadd.xlane.f32.xlu1 %v549_v31  ;;  %553 = vadd.xlane.f32.xlu2 %v552_v53  ;;  %v3375_v56 = vpop.eup %3374  ;;  %v928_v59 = vsel %vm470_vm7, %v3373_v37, 0.0 }
 0x417   :  { %v870_v20 = vpop.xlane.xlu0 %869  ;;  %v931_v52 = vsel %vm470_vm7, %v3375_v56, 0.0  ;;  %v909_v50 = vmul.f32 1.442695, %v887_v62 }
 0x418   :  { %v886_v35 = vsub.f32 %v4161_v57, %v870_v20  ;;  %3109 = vmatmul.msk.f32.gmra.mxu3 %vm470_vm7, %v3365_v9  ;;  %v3377_v57 = vpop.eup %3376 }
 0x419   :  { %559 = vadd.xlane.f32.xlu0 %v558_v3  ;;  %v3379_v15 = vpop.eup %3378  ;;  %v573_v49 = vsel %vm470_vm7, %v3377_v57, 0.0  ;;  %v876_v9 = vpop.xlane.xlu1 %875  ;;  %v1095_v3 = vld [vmem:[%s5322_s3 + $0x18] sm:$0xff] }
 0x41a   :  { %v907_v38 = vmul.f32 1.442695, %v886_v35  ;;  %v576_v0 = vsel %vm470_vm7, %v3379_v15, 0.0  ;;  %v888_v47 = vsub.f32 %v4166_v36, %v876_v9  ;;  %v919_v36 = vsel %vm470_vm7, %v4206_v32, 0.0  ;;  %1126 = vmatpush.msrb.mxu3 %v1095_v3 }
 0x41b   :  { %3132 = vmatmul.msk.f32.gmra.mxu0 %vm470_vm7, %v3373_v37 }
 0x41c   :  { %3380 = vpow2.f32 %v907_v38  ;;  %v911_v58 = vmul.f32 1.442695, %v888_v47  ;;  %v1094_v38 = vld [vmem:[%s5322_s3 + $0x10] sm:$0xff] }
 0x41d   :  { %3382 = vpow2.f32 %v903_v23  ;;  %1127 = vmatpush.msrb.mxu3 %v1094_v38 }
 0x41e   :  { %568 = vadd.xlane.f32.xlu2 %v567_v8  ;;  %932 = vadd.xlane.f32.xlu1 %v931_v52  ;;  %3384 = vpow2.f32 %v905_v54 }
 0x41f   :  { %3386 = vpow2.f32 %v909_v50  ;;  %1128 = vmatpush.msrb.mxu3 %v1093_v21 }
 0x420   :  { %3110 = vmatmul.msk.f32.gmra.mxu3 %vm470_vm7, %v3377_v57  ;;  %3388 = vpow2.f32 %v911_v58  ;;  %v1092_v57 = vld [vmem:[%s5322_s3] sm:$0xff] }
 0x421   :  { %914 = vadd.xlane.f32.xlu0 %v913_v4  ;;  %1129 = vmatpush.msrb.mxu3 %v1092_v57 }
 0x422   :  { %v3381_v1 = vpop.eup %3380 }
 0x423   :  { %3133 = vmatmul.msk.f32.gmra.mxu0 %vm470_vm7, %v3375_v56  ;;  %v940_v10 = vsel %vm470_vm7, %v3381_v1, 0.0  ;;  %v3383_v40 = vpop.eup %3382 }
 0x424   :  { %v934_v12 = vsel %vm470_vm7, %v3383_v40, 0.0  ;;  %v3385_v16 = vpop.eup %3384 }
 0x425   :  { %v3387_v25 = vpop.eup %3386  ;;  %v937_v19 = vsel %vm470_vm7, %v3385_v16, 0.0 }
 0x426   :  { %574 = vadd.xlane.f32.xlu2 %v573_v49  ;;  %577 = vadd.xlane.f32.xlu1 %v576_v0  ;;  %v3389_v11 = vpop.eup %3388  ;;  %v943_v17 = vsel %vm470_vm7, %v3387_v25, 0.0 }
 0x427   :  { %v946_v28 = vsel %vm470_vm7, %v3389_v11, 0.0 }
 0x428   :  { %3111 = vmatmul.msk.f32.gmra.mxu3 %vm470_vm7, %v3379_v15 }
 0x429   :  { %941 = vadd.xlane.f32.xlu0 %v940_v10 }
 0x42b   :  { %3134 = vmatmul.msk.f32.gmra.mxu0 %vm470_vm7, %v3383_v40 }
 0x42e   :  { %923 = vadd.xlane.f32.xlu2 %v922_v45  ;;  %926 = vadd.xlane.f32.xlu1 %v925_v27 }
 0x431   :  { %935 = vadd.xlane.f32.xlu0 %v934_v12 }
 0x433   :  { %3135 = vmatmul.msk.f32.gmra.mxu0 %vm470_vm7, %v3385_v16 }
 0x436   :  { %917 = vadd.xlane.f32.xlu2 %v916_v61  ;;  %920 = vadd.xlane.f32.xlu1 %v919_v36 }
 0x439   :  { %929 = vadd.xlane.f32.xlu0 %v928_v59 }
 0x43b   :  { %3136 = vmatmul.msk.f32.gmra.mxu0 %vm470_vm7, %v3381_v1 }
 0x43e   :  { %944 = vadd.xlane.f32.xlu2 %v943_v17  ;;  %947 = vadd.xlane.f32.xlu1 %v946_v28 }
 0x441   :  { %v557_v37 = vpop.xlane.xlu1 %556 }
 0x443   :  { %3137 = vmatmul.msk.f32.gmra.mxu0 %vm470_vm7, %v3387_v25 }
 0x446   :  { %938 = vadd.xlane.f32.xlu2 %v937_v19 }
 0x44b   :  { %3138 = vmatmul.msk.f32.gmra.mxu0 %vm470_vm7, %v3389_v11 }
 0x452   :  { %v4268_v31 = vpop.f32.mrf.mxu0 }
 0x453   :  { %v650_v32 = vpop.f32.mrf.mxu3 }
 0x459   :  { %v563_v23 = vpop.xlane.xlu1 %562 }
 0x45a   :  { %v4270_v43 = vpop.f32.mrf.mxu0 }
 0x45b   :  { %v653_v53 = vpop.f32.mrf.mxu3 }
 0x463   :  { %v4272_v35 = vpop.f32.mrf.mxu3 }
 0x469   :  { %v545_v20 = vpop.xlane.xlu0 %544 }
 0x46b   :  { %v659_v39 = vpop.f32.mrf.mxu3 }
 0x478   :  { %v641_v0 = vpop.f32.mrf.mxu2 }
 0x47c   :  { %v566_v56 = vpop.xlane.xlu0 %565 }
 0x480   :  { %v4283_v8 = vpop.f32.mrf.mxu0 }
 0x481   :  { %v548_v52 = vpop.xlane.xlu2 %547 }
 0x484   :  { %v572_v4 = vpop.xlane.xlu0 %571 }
 0x488   :  { %v4288_v15 = vpop.f32.mrf.mxu0 }
 0x489   :  { %v554_v44 = vpop.xlane.xlu2 %553  ;;  %v551_v49 = vpop.xlane.xlu1 %550 }
 0x48a   :  { %3390 = vrcp.f32 %v554_v44 }
 0x48b   :  { %v662_v1 = vpop.f32.mrf.mxu3  ;;  %3392 = vrcp.f32 %v545_v20 }
 0x48c   :  { %v560_v54 = vpop.xlane.xlu0 %559  ;;  %3394 = vrcp.f32 %v563_v23 }
 0x48d   :  { %3396 = vrcp.f32 %v548_v52 }
 0x48e   :  { %3398 = vrcp.f32 %v557_v37 }
 0x48f   :  { %3400 = vrcp.f32 %v572_v4 }
 0x490   :  { %v4290_v51 = vpop.f32.mrf.mxu0  ;;  %v3391_v10 = vpop.eup %3390  ;;  %3402 = vrcp.f32 %v566_v56 }
 0x491   :  { %v569_v9 = vpop.xlane.xlu2 %568  ;;  %v692_v40 = vmul.f32 %v3391_v10, %v650_v32  ;;  %v3393_v62 = vpop.eup %3392  ;;  %3404 = vrcp.f32 %v551_v49 }
 0x492   :  { %v689_v45 = vmul.f32 %v3393_v62, %v641_v0  ;;  %v644_v27 = vpop.f32.mrf.mxu2  ;;  %v4293_v58 = vpop.xlane.xlu1 %932  ;;  %3406 = vrcp.f32 %v560_v54 }
 0x493   :  { %v665_v47 = vpop.f32.mrf.mxu3  ;;  %v704_v50 = vmul.f32 %v692_v40, %v3948_v55  ;;  %v3395_v12 = vpop.eup %3394 }
 0x494   :  { %v915_v16 = vpop.xlane.xlu0 %914  ;;  %v695_v61 = vmul.f32 %v3395_v12, %v659_v39  ;;  %v701_v36 = vmul.f32 %v689_v45, %v3923_v2  ;;  %v3397_v25 = vpop.eup %3396 }
 0x495   :  { %v3399_v17 = vpop.eup %3398  ;;  %v690_v28 = vmul.f32 %v3397_v25, %v644_v27 }
 0x496   :  { %v713_v19 = vadd.f32 %v704_v50, %v701_v36  ;;  %v3401_v32 = vpop.eup %3400  ;;  %v693_v3 = vmul.f32 %v3399_v17, %v653_v53  ;;  %v707_v37 = vmul.f32 %v695_v61, %v3978_v33 }
 0x497   :  { %v702_v21 = vmul.f32 %v690_v28, %v3931_v7  ;;  %v3403_v39 = vpop.eup %3402 }
 0x498   :  { %v4296_v59 = vpop.f32.mrf.mxu0  ;;  %v716_v57 = vadd.f32 %v713_v19, %v707_v37  ;;  %v3405_v23 = vpop.eup %3404  ;;  %v705_v4 = vmul.f32 %v693_v3, %v3959_v24  ;;  %v696_v44 = vmul.f32 %v3403_v39, %v662_v1 }
 0x499   :  { %v575_v11 = vpop.xlane.xlu2 %574  ;;  %v3407_v53 = vpop.eup %3406 }
 0x49a   :  { %3408 = vrcp.f32 %v575_v11  ;;  %v647_v56 = vpop.f32.mrf.mxu2  ;;  %v578_v49 = vpop.xlane.xlu1 %577  ;;  %v714_v62 = vadd.f32 %v705_v4, %v702_v21  ;;  %v708_v50 = vmul.f32 %v696_v44, %v3987_v60 }
 0x49b   :  { %v668_v20 = vpop.f32.mrf.mxu3  ;;  %3410 = vrcp.f32 %v569_v9  ;;  %v691_v45 = vmul.f32 %v3405_v23, %v647_v56  ;;  %v694_v9 = vmul.f32 %v3407_v53, %v4272_v35 }
 0x49c   :  { %v698_v38 = vmul.f32 %v3401_v32, %v668_v20  ;;  %v942_v10 = vpop.xlane.xlu0 %941  ;;  %3412 = vrcp.f32 %v578_v49  ;;  %v717_v25 = vadd.f32 %v714_v62, %v708_v50 }
 0x49d   :  { %v703_v1 = vmul.f32 %v691_v45, %v3938_v13  ;;  %v706_v17 = vmul.f32 %v694_v9, %v3969_v29 }
 0x49e   :  { %v710_v52 = vmul.f32 %v698_v38, %v4005_v46 }
 0x49f   :  { %v715_v20 = vadd.f32 %v706_v17, %v703_v1 }
 0x4a0   :  { %v719_v0 = vadd.f32 %v716_v57, %v710_v52  ;;  %v1029_v54 = vpop.f32.mrf.mxu0  ;;  %v3409_v7 = vpop.eup %3408 }
 0x4a1   :  { %v924_v40 = vpop.xlane.xlu2 %923  ;;  %v3411_v61 = vpop.eup %3410 }
 0x4a2   :  { %3139 = vmatmul.msk.f32.vlgmr.msrb.gmra.mxu3 %vm138_vm1, %v719_v0  ;;  %3414 = vrcp.f32 %v924_v40  ;;  %v697_v11 = vmul.f32 %v3411_v61, %v665_v47  ;;  %v927_v3 = vpop.xlane.xlu1 %926  ;;  %v3413_v35 = vpop.eup %3412 }
 0x4a3   :  { %v671_v27 = vpop.f32.mrf.mxu3  ;;  %3416 = vrcp.f32 %v915_v16 }
 0x4a4   :  { %v699_v12 = vmul.f32 %v3409_v7, %v671_v27  ;;  %v936_v37 = vpop.xlane.xlu0 %935  ;;  %v709_v13 = vmul.f32 %v697_v11, %v3996_v41  ;;  %3418 = vrcp.f32 %v4293_v58 }
 0x4a6   :  { %v711_v36 = vmul.f32 %v699_v12, %v4014_v48  ;;  %v718_v57 = vadd.f32 %v715_v20, %v709_v13 }
 0x4a8   :  { %v1032_v28 = vpop.f32.mrf.mxu0  ;;  %v720_v19 = vadd.f32 %v717_v25, %v711_v36  ;;  %v3415_v21 = vpop.eup %3414 }
 0x4a9   :  { %v918_v32 = vpop.xlane.xlu2 %917  ;;  %v3417_v47 = vpop.eup %3416  ;;  %v1062_v39 = vmul.f32 %v3415_v21, %v4288_v15 }
 0x4aa   :  { %3140 = vmatmul.msk.f32.gmra.mxu3 %vm138_vm1, %v720_v19  ;;  %3420 = vrcp.f32 %v918_v32  ;;  %v1059_v4 = vmul.f32 %v3417_v47, %v4268_v31  ;;  %v3419_v49 = vpop.eup %3418  ;;  %v921_v53 = vpop.xlane.xlu1 %920  ;;  %v3603_v47 = vld [vmem:[%s5325_s6 + $0x40] sm:$0xff] }
 0x4ab   :  { %v674_v38 = vpop.f32.mrf.mxu3  ;;  %3422 = vrcp.f32 %v927_v3  ;;  %v1074_v0 = vmul.f32 %v1062_v39, %v3948_v55  ;;  %v1065_v62 = vmul.f32 %v3419_v49, %v1029_v54 }
 0x4ac   :  { %v700_v52 = vmul.f32 %v3413_v35, %v674_v38  ;;  %3424 = vrcp.f32 %v942_v10  ;;  %v1071_v40 = vmul.f32 %v1059_v4, %v3923_v2  ;;  %v930_v45 = vpop.xlane.xlu0 %929  ;;  %v3602_v2 = vld [vmem:[%s5325_s6 + $0x38] sm:$0xff] }
 0x4ad   :  { %3426 = vrcp.f32 %v936_v37  ;;  %v1077_v50 = vmul.f32 %v1065_v62, %v3978_v33 }
 0x4ae   :  { %v712_v16 = vmul.f32 %v700_v52, %v4023_v6  ;;  %3428 = vrcp.f32 %v921_v53  ;;  %v1083_v27 = vadd.f32 %v1074_v0, %v1071_v40 }
 0x4af   :  { %3430 = vrcp.f32 %v930_v45 }
 0x4b0   :  { %v1035_v56 = vpop.f32.mrf.mxu0  ;;  %v721_v23 = vadd.f32 %v718_v57, %v712_v16  ;;  %v3421_v58 = vpop.eup %3420  ;;  %v1086_v1 = vadd.f32 %v1083_v27, %v1077_v50 }
 0x4b1   :  { %v945_v44 = vpop.xlane.xlu2 %944  ;;  %v3423_v15 = vpop.eup %3422  ;;  %v1060_v7 = vmul.f32 %v3421_v58, %v4270_v43 }
 0x4b2   :  { %3141 = vmatmul.msk.f32.gmra.mxu3 %vm138_vm1, %v721_v23  ;;  %v3425_v31 = vpop.eup %3424  ;;  %v1063_v9 = vmul.f32 %v3423_v15, %v4290_v51  ;;  %3432 = vrcp.f32 %v945_v44  ;;  %v948_v19 = vpop.xlane.xlu1 %947 }
 0x4b3   :  { %v3427_v61 = vpop.eup %3426  ;;  %v1072_v54 = vmul.f32 %v3602_v2, %v1060_v7 }
 0x4b4   :  { %v3429_v36 = vpop.eup %3428  ;;  %v1075_v25 = vmul.f32 %v1063_v9, %v3959_v24  ;;  %v1066_v11 = vmul.f32 %v3427_v61, %v1032_v28 }
 0x4b5   :  { %v3431_v17 = vpop.eup %3430 }
 0x4b6   :  { %v1084_v32 = vadd.f32 %v1075_v25, %v1072_v54  ;;  %v1078_v35 = vmul.f32 %v1066_v11, %v3987_v60  ;;  %v1064_v37 = vmul.f32 %v3431_v17, %v4296_v59 }
 0x4b8   :  { %v1038_v10 = vpop.f32.mrf.mxu0  ;;  %v3433_v51 = vpop.eup %3432  ;;  %v1087_v28 = vadd.f32 %v1084_v32, %v1078_v35  ;;  %v1076_v13 = vmul.f32 %v1064_v37, %v3969_v29  ;;  %v3311_v29 = vld [vmem:[%s5325_s6 + $0xa7] ss:$0 sm:$0xff] }
 0x4b9   :  { %v1068_v55 = vmul.f32 %v3425_v31, %v1038_v10  ;;  %v939_v12 = vpop.xlane.xlu2 %938 }
 0x4ba   :  { %3434 = vrcp.f32 %v939_v12 }
 0x4bb   :  { %v1080_v43 = vmul.f32 %v1068_v55, %v4005_v46  ;;  %3436 = vrcp.f32 %v948_v19  ;;  %v1061_v46 = vmul.f32 %v3429_v36, %v4283_v8 }
 0x4bd   :  { %v1089_v33 = vadd.f32 %v1086_v1, %v1080_v43  ;;  %v1073_v16 = vmul.f32 %v3603_v47, %v1061_v46 }
 0x4bf   :  { %3142 = vmatmul.msk.f32.gmra.mxu3 %vm138_vm1, %v1089_v33  ;;  %v1085_v8 = vadd.f32 %v1076_v13, %v1073_v16 }
 0x4c0   :  { %v3435_v20 = vpop.eup %3434  ;;  %v1041_v3 = vpop.f32.mrf.mxu0 }
 0x4c1   :  { %v1069_v38 = vmul.f32 %v3433_v51, %v1041_v3  ;;  %v1067_v21 = vmul.f32 %v3435_v20, %v1035_v56  ;;  %v3437_v59 = vpop.eup %3436 }
 0x4c3   :  { %v1081_v24 = vmul.f32 %v1069_v38, %v4014_v48  ;;  %v1079_v60 = vmul.f32 %v1067_v21, %v3996_v41 }
 0x4c5   :  { %v1090_v52 = vadd.f32 %v1087_v28, %v1081_v24  ;;  %v1088_v48 = vadd.f32 %v1085_v8, %v1079_v60  ;;  %v1309_v8 = vld [vmem:[%s5323_s4 + $0x8] sm:$0xff] }
 0x4c7   :  { %3143 = vmatmul.msk.f32.gmra.mxu3 %vm138_vm1, %v1090_v52 }
 0x4c8   :  { %v1044_v57 = vpop.f32.mrf.mxu0 }
 0x4c9   :  { %v1070_v39 = vmul.f32 %v3437_v59, %v1044_v57  ;;  %v1311_v57 = vld [vmem:[%s5323_s4 + $0x18] sm:$0xff] }
 0x4ca   :  { %1344 = vmatpush.msra.mxu2 %v1311_v57 }
 0x4cb   :  { %v1082_v56 = vmul.f32 %v1070_v39, %v4023_v6  ;;  %v1310_v39 = vld [vmem:[%s5323_s4 + $0x10] sm:$0xff] }
 0x4cc   :  { %1345 = vmatpush.msra.mxu2 %v1310_v39 }
 0x4cd   :  { %v1091_v23 = vadd.f32 %v1088_v48, %v1082_v56  ;;  %v1308_v56 = vld [vmem:[%s5323_s4] sm:$0xff] }
 0x4ce   :  { %1346 = vmatpush.msra.mxu2 %v1309_v8 }
 0x4cf   :  { %3144 = vmatmul.msk.f32.gmra.mxu3 %vm138_vm1, %v1091_v23 }
 0x4d0   :  { %1347 = vmatpush.msra.mxu2 %v1308_v56 }
 0x525   :  { %v1131_v4 = vpop.f32.mrf.mxu3 }
 0x526   :  { %v1149_v44 = vadd.f32 %v1131_v4, %v3756_v14 }
 0x528   :  { %v4342_v49 = vadd.f32 %v3311_v29, %v1149_v44 }
 0x52a   :  { %v1162_v41 = vsel %vm138_vm1, %v4342_v49, 0.0 }
 0x52b   :  { %1163 = vadd.xlane.f32.xlu0 %v1162_v41 }
 0x52d   :  { %v1134_v0 = vpop.f32.mrf.mxu3 }
 0x52e   :  { %v1150_v6 = vadd.f32 %v1134_v0, %v3763_v18 }
 0x530   :  { %v4347_v58 = vadd.f32 %v3311_v29, %v1150_v6 }
 0x532   :  { %v1165_v53 = vsel %vm138_vm1, %v4347_v58, 0.0 }
 0x533   :  { %1166 = vadd.xlane.f32.xlu2 %v1165_v53 }
 0x535   :  { %v1137_v40 = vpop.f32.mrf.mxu3 }
 0x536   :  { %v1151_v62 = vadd.f32 %v1137_v40, %v3770_v22 }
 0x538   :  { %v4352_v45 = vadd.f32 %v3311_v29, %v1151_v62 }
 0x53a   :  { %v1168_v14 = vsel %vm138_vm1, %v4352_v45, 0.0 }
 0x53b   :  { %1169 = vadd.xlane.f32.xlu1 %v1168_v14 }
 0x542   :  { %v1140_v15 = vpop.f32.mrf.mxu3 }
 0x543   :  { %v1152_v7 = vadd.f32 %v1140_v15, %v3777_v26 }
 0x545   :  { %v4357_v27 = vadd.f32 %v3311_v29, %v1152_v7 }
 0x547   :  { %v1171_v18 = vsel %vm138_vm1, %v4357_v27, 0.0 }
 0x548   :  { %1172 = vadd.xlane.f32.xlu0 %v1171_v18 }
 0x54a   :  { %v1143_v31 = vpop.f32.mrf.mxu3 }
 0x54b   :  { %v1153_v10 = vadd.f32 %v1143_v31, %v3784_v30 }
 0x54d   :  { %v4362_v50 = vadd.f32 %v3311_v29, %v1153_v10 }
 0x54f   :  { %v1174_v22 = vsel %vm138_vm1, %v4362_v50, 0.0 }
 0x550   :  { %1175 = vadd.xlane.f32.xlu2 %v1174_v22  ;;  %v4431_v22 = vld [vmem:[%s5325_s6 + $0xa8] ss:$0 sm:$0xff] }
 0x552   :  { %v1146_v9 = vpop.f32.mrf.mxu3 }
 0x553   :  { %v1154_v55 = vadd.f32 %v1146_v9, %v3791_v34 }
 0x555   :  { %v4367_v12 = vadd.f32 %v3311_v29, %v1154_v55 }
 0x557   :  { %v1177_v26 = vsel %vm138_vm1, %v4367_v12, 0.0 }
 0x558   :  { %1178 = vadd.xlane.f32.xlu1 %v1177_v26 }
 0x59e   :  { %v1164_v61 = vpop.xlane.xlu0 %1163 }
 0x59f   :  { %v1180_v2 = vmul.f32 %v1164_v61, %v3795_v42  ;;  %v4437_v61 = vld [vmem:[%s5325_s6 + $0xa9] ss:$0 sm:$0xff] }
 0x5a1   :  { %v4373_v30 = vsub.f32 %v4342_v49, %v1180_v2 }
 0x5a3   :  { %v1192_v54 = vmul.f32 %v4373_v30, %v4373_v30 }
 0x5a5   :  { %v1198_v43 = vsel %vm138_vm1, %v1192_v54, 0.0 }
 0x5a6   :  { %v1167_v1 = vpop.xlane.xlu2 %1166  ;;  %1199 = vadd.xlane.f32.xlu0 %v1198_v43 }
 0x5a7   :  { %v1181_v34 = vmul.f32 %v1167_v1, %v3795_v42 }
 0x5a9   :  { %v4380_v36 = vsub.f32 %v4347_v58, %v1181_v34 }
 0x5ab   :  { %v1193_v25 = vmul.f32 %v4380_v36, %v4380_v36 }
 0x5ad   :  { %v1201_v11 = vsel %vm138_vm1, %v1193_v25, 0.0 }
 0x5ae   :  { %v1170_v33 = vpop.xlane.xlu1 %1169  ;;  %1202 = vadd.xlane.f32.xlu2 %v1201_v11 }
 0x5af   :  { %v1182_v17 = vmul.f32 %v1170_v33, %v3795_v42 }
 0x5b1   :  { %v4387_v51 = vsub.f32 %v4352_v45, %v1182_v17 }
 0x5b3   :  { %v1194_v19 = vmul.f32 %v4387_v51, %v4387_v51 }
 0x5b5   :  { %v1204_v32 = vsel %vm138_vm1, %v1194_v19, 0.0 }
 0x5b6   :  { %1205 = vadd.xlane.f32.xlu1 %v1204_v32 }
 0x5bb   :  { %v1173_v20 = vpop.xlane.xlu0 %1172 }
 0x5bc   :  { %v1183_v3 = vmul.f32 %v1173_v20, %v3795_v42 }
 0x5be   :  { %v4394_v35 = vsub.f32 %v4357_v27, %v1183_v3 }
 0x5c0   :  { %v1195_v37 = vmul.f32 %v4394_v35, %v4394_v35 }
 0x5c2   :  { %v1207_v38 = vsel %vm138_vm1, %v1195_v37, 0.0 }
 0x5c3   :  { %1208 = vadd.xlane.f32.xlu0 %v1207_v38  ;;  %v1176_v46 = vpop.xlane.xlu2 %1175 }
 0x5c4   :  { %v1184_v21 = vmul.f32 %v1176_v46, %v3795_v42 }
 0x5c6   :  { %v4401_v24 = vsub.f32 %v4362_v50, %v1184_v21 }
 0x5c8   :  { %v1196_v28 = vmul.f32 %v4401_v24, %v4401_v24 }
 0x5ca   :  { %v1210_v13 = vsel %vm138_vm1, %v1196_v28, 0.0 }
 0x5cb   :  { %1211 = vadd.xlane.f32.xlu2 %v1210_v13  ;;  %v1179_v52 = vpop.xlane.xlu1 %1178 }
 0x5cc   :  { %v1185_v47 = vmul.f32 %v1179_v52, %v3795_v42 }
 0x5ce   :  { %v4408_v16 = vsub.f32 %v4367_v12, %v1185_v47 }
 0x5d0   :  { %v1197_v60 = vmul.f32 %v4408_v16, %v4408_v16 }
 0x5d2   :  { %v1213_v59 = vsel %vm138_vm1, %v1197_v60, 0.0 }
 0x5d3   :  { %1214 = vadd.xlane.f32.xlu1 %v1213_v59 }
 0x619   :  { %v1200_v48 = vpop.xlane.xlu0 %1199 }
 0x61a   :  { %v1216_v23 = vmul.f32 %v1200_v48, %v3795_v42 }
 0x61c   :  { %v1222_v29 = vadd.f32 1e-12, %v1216_v23 }
 0x61e   :  { %3438 = vrsqrt.f32 %v1222_v29  ;;  %vm1234_vm9 = vweird.f32 %v1222_v29 }
 0x621   :  { %v1203_v4 = vpop.xlane.xlu2 %1202 }
 0x622   :  { %v1217_v44 = vmul.f32 %v1203_v4, %v3795_v42 }
 0x624   :  { %v3439_v41 = vpop.eup %3438  ;;  %v1223_v0 = vadd.f32 1e-12, %v1217_v44 }
 0x625   :  { %v1229_v6 = vmul.f32 %v3439_v41, %v1222_v29  ;;  %vm1235_vm8 = vweird.f32 %v3439_v41 }
 0x626   :  { %3440 = vrsqrt.f32 %v1223_v0  ;;  %vm1236_vm10 = vmor %vm1234_vm9, %vm1235_vm8  ;;  %vm1244_vm12 = vweird.f32 %v1223_v0 }
 0x627   :  { %v1230_v53 = vmul.f32 %v3439_v41, %v1229_v6 }
 0x629   :  { %v1231_v40 = vmul.f32 0.5, %v1230_v53  ;;  %v1206_v62 = vpop.xlane.xlu1 %1205 }
 0x62a   :  { %v1218_v14 = vmul.f32 %v1206_v62, %v3795_v42 }
 0x62b   :  { %v1232_v15 = vsub.f32 1.5, %v1231_v40 }
 0x62c   :  { %v3441_v7 = vpop.eup %3440  ;;  %v1224_v18 = vadd.f32 1e-12, %v1218_v14 }
 0x62d   :  { %v1233_v31 = vmul.f32 %v3439_v41, %v1232_v15  ;;  %v1239_v10 = vmul.f32 %v3441_v7, %v1223_v0  ;;  %vm1245_vm11 = vweird.f32 %v3441_v7 }
 0x62e   :  { %3442 = vrsqrt.f32 %v1224_v18  ;;  %vm1246_vm13 = vmor %vm1244_vm12, %vm1245_vm11  ;;  %vm1254_vm15 = vweird.f32 %v1224_v18  ;;  %vm1429_vm12 = vcmask 523264  }
 0x62f   :  { %v1237_v9 = vsel %vm1236_vm10, %v3439_v41, %v1233_v31  ;;  %v1240_v55 = vmul.f32 %v3441_v7, %v1239_v10 }
 0x630   :  { %v1288_v26 = vmul.f32 %v1237_v9, %v4373_v30 }
 0x631   :  { %v1241_v2 = vmul.f32 0.5, %v1240_v55 }
 0x632   :  { %v1295_v54 = vmul.f32 %v4431_v22, %v1288_v26 }
 0x633   :  { %v1242_v43 = vsub.f32 1.5, %v1241_v2 }
 0x634   :  { %v3443_v1 = vpop.eup %3442  ;;  %v1302_v34 = vadd.f32 %v4437_v61, %v1295_v54 }
 0x635   :  { %v1243_v25 = vmul.f32 %v3441_v7, %v1242_v43  ;;  %v1249_v11 = vmul.f32 %v3443_v1, %v1224_v18  ;;  %vm1255_vm14 = vweird.f32 %v3443_v1 }
 0x636   :  { %3145 = vmatmul.msk.f32.vlgmr.msra.gmra.mxu2 %vm138_vm1, %v1302_v34  ;;  %v1209_v30 = vpop.xlane.xlu0 %1208  ;;  %vm1256_vm0 = vmor %vm1254_vm15, %vm1255_vm14 }
 0x637   :  { %v1247_v33 = vsel %vm1246_vm13, %v3441_v7, %v1243_v25  ;;  %v1250_v17 = vmul.f32 %v3443_v1, %v1249_v11  ;;  %v1219_v19 = vmul.f32 %v1209_v30, %v3795_v42  ;;  %v1427_v30 = vld [vmem:[%s5324_s5 + $0x30] sm:$0xff] }
 0x638   :  { %v1289_v32 = vmul.f32 %v1247_v33, %v4380_v36  ;;  %v1423_v33 = vld [vmem:[%s5324_s5 + $0x10] sm:$0xff] }
 0x639   :  { %v1251_v20 = vmul.f32 0.5, %v1250_v17  ;;  %v1225_v3 = vadd.f32 1e-12, %v1219_v19  ;;  %v1422_v17 = vld [vmem:[%s5324_s5 + $0x8] sm:$0xff]  ;;  %v1421_v19 = vld [vmem:[%s5324_s5] sm:$0xff] }
 0x63a   :  { %v1296_v37 = vmul.f32 %v4431_v22, %v1289_v32  ;;  %v3314_v32 = vld [vmem:[%s5327_s8] ss:$0 sm:$0xff] }
 0x63b   :  { %v1252_v38 = vsub.f32 1.5, %v1251_v20  ;;  %3444 = vrsqrt.f32 %v1225_v3  ;;  %vm1264_vm3 = vweird.f32 %v1225_v3 }
 0x63c   :  { %v1303_v46 = vadd.f32 %v4437_v61, %v1296_v37 }
 0x63d   :  { %v1253_v21 = vmul.f32 %v3443_v1, %v1252_v38 }
 0x63e   :  { %3146 = vmatmul.msk.f32.gmra.mxu2 %vm138_vm1, %v1303_v46  ;;  %v1212_v28 = vpop.xlane.xlu2 %1211 }
 0x63f   :  { %v1257_v13 = vsel %vm1256_vm0, %v3443_v1, %v1253_v21  ;;  %v1220_v52 = vmul.f32 %v1212_v28, %v3795_v42 }
 0x640   :  { %v1290_v36 = vmul.f32 %v1257_v13, %v4387_v51 }
 0x641   :  { %v3445_v47 = vpop.eup %3444  ;;  %v1226_v60 = vadd.f32 1e-12, %v1220_v52 }
 0x642   :  { %v1259_v59 = vmul.f32 %v3445_v47, %v1225_v3  ;;  %v1297_v57 = vmul.f32 %v4431_v22, %v1290_v36  ;;  %vm1265_vm2 = vweird.f32 %v3445_v47 }
 0x643   :  { %3446 = vrsqrt.f32 %v1226_v60  ;;  %vm1266_vm4 = vmor %vm1264_vm3, %vm1265_vm2  ;;  %vm1274_vm6 = vweird.f32 %v1226_v60 }
 0x644   :  { %v1260_v39 = vmul.f32 %v3445_v47, %v1259_v59  ;;  %v1304_v8 = vadd.f32 %v4437_v61, %v1297_v57 }
 0x646   :  { %v1261_v56 = vmul.f32 0.5, %v1260_v39  ;;  %3147 = vmatmul.msk.f32.gmra.mxu2 %vm138_vm1, %v1304_v8  ;;  %v1215_v48 = vpop.xlane.xlu1 %1214 }
 0x647   :  { %v1221_v23 = vmul.f32 %v1215_v48, %v3795_v42 }
 0x648   :  { %v1262_v29 = vsub.f32 1.5, %v1261_v56 }
 0x649   :  { %v3447_v4 = vpop.eup %3446  ;;  %v1227_v44 = vadd.f32 1e-12, %v1221_v23 }
 0x64a   :  { %v1263_v51 = vmul.f32 %v3445_v47, %v1262_v29  ;;  %v1269_v41 = vmul.f32 %v3447_v4, %v1226_v60  ;;  %vm1275_vm5 = vweird.f32 %v3447_v4 }
 0x64b   :  { %3448 = vrsqrt.f32 %v1227_v44  ;;  %vm1276_vm8 = vmor %vm1274_vm6, %vm1275_vm5  ;;  %vm1284_vm10 = vweird.f32 %v1227_v44 }
 0x64c   :  { %v1267_v0 = vsel %vm1266_vm4, %v3445_v47, %v1263_v51  ;;  %v1270_v6 = vmul.f32 %v3447_v4, %v1269_v41 }
 0x64d   :  { %v1291_v53 = vmul.f32 %v1267_v0, %v4394_v35 }
 0x64e   :  { %v1271_v40 = vmul.f32 0.5, %v1270_v6 }
 0x64f   :  { %v1298_v62 = vmul.f32 %v4431_v22, %v1291_v53 }
 0x650   :  { %v1272_v14 = vsub.f32 1.5, %v1271_v40 }
 0x651   :  { %v3449_v15 = vpop.eup %3448  ;;  %v1305_v7 = vadd.f32 %v4437_v61, %v1298_v62 }
 0x652   :  { %v1273_v18 = vmul.f32 %v3447_v4, %v1272_v14  ;;  %v1279_v31 = vmul.f32 %v3449_v15, %v1227_v44  ;;  %vm1285_vm9 = vweird.f32 %v3449_v15 }
 0x653   :  { %3148 = vmatmul.msk.f32.gmra.mxu2 %vm138_vm1, %v1305_v7  ;;  %vm1286_vm11 = vmor %vm1284_vm10, %vm1285_vm9 }
 0x654   :  { %v1277_v10 = vsel %vm1276_vm8, %v3447_v4, %v1273_v18  ;;  %v1280_v9 = vmul.f32 %v3449_v15, %v1279_v31 }
 0x655   :  { %v1292_v55 = vmul.f32 %v1277_v10, %v4401_v24  ;;  %v1428_v24 = vld [vmem:[%s5324_s5 + $0x38] sm:$0xff] }
 0x656   :  { %v1281_v26 = vmul.f32 0.5, %v1280_v9  ;;  %1456 = vmatpush.msra.mxu3 %v1428_v24 }
 0x657   :  { %v1299_v35 = vmul.f32 %v4431_v22, %v1292_v55 }
 0x658   :  { %v1282_v2 = vsub.f32 1.5, %v1281_v26  ;;  %1457 = vmatpush.msra.mxu3 %v1427_v30 }
 0x659   :  { %v1306_v54 = vadd.f32 %v4437_v61, %v1299_v35 }
 0x65a   :  { %v1283_v43 = vmul.f32 %v3449_v15, %v1282_v2 }
 0x65b   :  { %3149 = vmatmul.msk.f32.gmra.mxu2 %vm138_vm1, %v1306_v54 }
 0x65c   :  { %v1287_v1 = vsel %vm1286_vm11, %v3449_v15, %v1283_v43 }
 0x65d   :  { %v1293_v34 = vmul.f32 %v1287_v1, %v4408_v16  ;;  %v1426_v16 = vld [vmem:[%s5324_s5 + $0x28] sm:$0xff] }
 0x65e   :  { %1458 = vmatpush.msra.mxu3 %v1426_v16 }
 0x65f   :  { %v1300_v25 = vmul.f32 %v4431_v22, %v1293_v34  ;;  %v1425_v22 = vld [vmem:[%s5324_s5 + $0x20] sm:$0xff] }
 0x660   :  { %1459 = vmatpush.msra.mxu3 %v1425_v22 }
 0x661   :  { %v1307_v11 = vadd.f32 %v4437_v61, %v1300_v25  ;;  %v1424_v61 = vld [vmem:[%s5324_s5 + $0x18] sm:$0xff] }
 0x662   :  { %1460 = vmatpush.msra.mxu3 %v1424_v61 }
 0x663   :  { %3150 = vmatmul.msk.f32.gmra.mxu2 %vm138_vm1, %v1307_v11 }
 0x664   :  { %1461 = vmatpush.msra.mxu3 %v1423_v33 }
 0x666   :  { %1462 = vmatpush.msra.mxu3 %v1422_v17 }
 0x668   :  { %1463 = vmatpush.msra.mxu3 %v1421_v19 }
 0x6b9   :  { %v1349_v20 = vpop.f32.mrf.mxu2 }
 0x6ba   :  { %v1350_v3 = vadd.f32 %v3314_v32, %v1349_v20 }
 0x6bc   :  { %v1367_v37 = vmul.f32 %v1350_v3, %v1350_v3 }
 0x6be   :  { %v1373_v38 = vmul.f32 %v1367_v37, %v1350_v3 }
 0x6c0   :  { %v1379_v46 = vmul.f32 0.044715, %v1373_v38 }
 0x6c1   :  { %v1352_v21 = vpop.f32.mrf.mxu2 }
 0x6c2   :  { %v1385_v28 = vadd.f32 %v1379_v46, %v1350_v3  ;;  %v1353_v13 = vadd.f32 %v3314_v32, %v1352_v21 }
 0x6c4   :  { %v1391_v52 = vmul.f32 0.7978846, %v1385_v28  ;;  %v1368_v36 = vmul.f32 %v1353_v13, %v1353_v13 }
 0x6c6   :  { %3450 = vtanh.f32 %v1391_v52  ;;  %v1374_v47 = vmul.f32 %v1368_v36, %v1353_v13 }
 0x6c8   :  { %v1380_v60 = vmul.f32 0.044715, %v1374_v47 }
 0x6c9   :  { %v1355_v59 = vpop.f32.mrf.mxu2 }
 0x6ca   :  { %v1386_v57 = vadd.f32 %v1380_v60, %v1353_v13  ;;  %v1356_v39 = vadd.f32 %v3314_v32, %v1355_v59  ;;  %v3315_v60 = vld [vmem:[%s5325_s6 + $0xaa] ss:$0 sm:$0xff] }
 0x6cc   :  { %v3451_v8 = vpop.eup %3450  ;;  %v1369_v56 = vmul.f32 %v1356_v39, %v1356_v39  ;;  %v1392_v48 = vmul.f32 0.7978846, %v1386_v57 }
 0x6cd   :  { %v1403_v23 = vadd.f32 1.0, %v3451_v8 }
 0x6ce   :  { %v1375_v29 = vmul.f32 %v1369_v56, %v1356_v39  ;;  %3452 = vtanh.f32 %v1392_v48 }
 0x6cf   :  { %v1409_v4 = vmul.f32 0.5, %v1403_v23 }
 0x6d0   :  { %v1381_v44 = vmul.f32 0.044715, %v1375_v29 }
 0x6d1   :  { %v1415_v51 = vmul.f32 %v1409_v4, %v1350_v3 }
 0x6d2   :  { %v1387_v41 = vadd.f32 %v1381_v44, %v1356_v39 }
 0x6d3   :  { %3151 = vmatmul.msk.f32.vlgmr.msra.gmra.mxu3 %vm1429_vm12, %v1415_v51 }
 0x6d4   :  { %v3453_v0 = vpop.eup %3452  ;;  %v1393_v6 = vmul.f32 0.7978846, %v1387_v41 }
 0x6d5   :  { %v1404_v53 = vadd.f32 1.0, %v3453_v0 }
 0x6d6   :  { %v1358_v40 = vpop.f32.mrf.mxu2  ;;  %3454 = vtanh.f32 %v1393_v6 }
 0x6d7   :  { %v1359_v62 = vadd.f32 %v3314_v32, %v1358_v40  ;;  %v1410_v14 = vmul.f32 0.5, %v1404_v53 }
 0x6d9   :  { %v1370_v15 = vmul.f32 %v1359_v62, %v1359_v62  ;;  %v1416_v7 = vmul.f32 %v1410_v14, %v1353_v13 }
 0x6db   :  { %v1376_v18 = vmul.f32 %v1370_v15, %v1359_v62  ;;  %3152 = vmatmul.msk.f32.gmra.mxu3 %vm1429_vm12, %v1416_v7 }
 0x6dc   :  { %v3455_v31 = vpop.eup %3454 }
 0x6dd   :  { %v1382_v10 = vmul.f32 0.044715, %v1376_v18  ;;  %v1405_v9 = vadd.f32 1.0, %v3455_v31 }
 0x6de   :  { %v1361_v55 = vpop.f32.mrf.mxu2 }
 0x6df   :  { %v1388_v26 = vadd.f32 %v1382_v10, %v1359_v62  ;;  %v1362_v35 = vadd.f32 %v3314_v32, %v1361_v55  ;;  %v1411_v2 = vmul.f32 0.5, %v1405_v9 }
 0x6e1   :  { %v1371_v54 = vmul.f32 %v1362_v35, %v1362_v35  ;;  %v1417_v43 = vmul.f32 %v1411_v2, %v1356_v39  ;;  %v1394_v1 = vmul.f32 0.7978846, %v1388_v26 }
 0x6e3   :  { %v1377_v34 = vmul.f32 %v1371_v54, %v1362_v35  ;;  %3153 = vmatmul.msk.f32.gmra.mxu3 %vm1429_vm12, %v1417_v43  ;;  %3456 = vtanh.f32 %v1394_v1 }
 0x6e5   :  { %v1383_v25 = vmul.f32 0.044715, %v1377_v34 }
 0x6e6   :  { %v1364_v11 = vpop.f32.mrf.mxu2 }
 0x6e7   :  { %v1389_v24 = vadd.f32 %v1383_v25, %v1362_v35  ;;  %v1365_v30 = vadd.f32 %v3314_v32, %v1364_v11 }
 0x6e9   :  { %v3457_v16 = vpop.eup %3456  ;;  %v1372_v22 = vmul.f32 %v1365_v30, %v1365_v30  ;;  %v1395_v61 = vmul.f32 0.7978846, %v1389_v24 }
 0x6ea   :  { %v1406_v33 = vadd.f32 1.0, %v3457_v16 }
 0x6eb   :  { %v1378_v17 = vmul.f32 %v1372_v22, %v1365_v30  ;;  %3458 = vtanh.f32 %v1395_v61 }
 0x6ec   :  { %v1412_v19 = vmul.f32 0.5, %v1406_v33 }
 0x6ed   :  { %v1384_v20 = vmul.f32 0.044715, %v1378_v17 }
 0x6ee   :  { %v1418_v3 = vmul.f32 %v1412_v19, %v1359_v62 }
 0x6ef   :  { %v1390_v37 = vadd.f32 %v1384_v20, %v1365_v30 }
 0x6f0   :  { %3154 = vmatmul.msk.f32.gmra.mxu3 %vm1429_vm12, %v1418_v3 }
 0x6f1   :  { %v3459_v38 = vpop.eup %3458  ;;  %v1396_v46 = vmul.f32 0.7978846, %v1390_v37 }
 0x6f2   :  { %v1407_v21 = vadd.f32 1.0, %v3459_v38 }
 0x6f3   :  { %3460 = vtanh.f32 %v1396_v46 }
 0x6f4   :  { %v1413_v28 = vmul.f32 0.5, %v1407_v21 }
 0x6f6   :  { %v1419_v13 = vmul.f32 %v1413_v28, %v1362_v35  ;;  %v3160_v28 = vld [vmem:[%s5321_s2 + $0x38] sm:$0xff] }
 0x6f7   :  { %1685 = vmatpush.msra.mxu1 %v3160_v28 }
 0x6f8   :  { %3155 = vmatmul.msk.f32.gmra.mxu3 %vm1429_vm12, %v1419_v13  ;;  %v3159_v13 = vld [vmem:[%s5321_s2 + $0x30] sm:$0xff] }
 0x6f9   :  { %v3461_v32 = vpop.eup %3460  ;;  %1686 = vmatpush.msra.mxu1 %v3159_v13 }
 0x6fa   :  { %v1408_v52 = vadd.f32 1.0, %v3461_v32  ;;  %v3158_v32 = vld [vmem:[%s5321_s2 + $0x28] sm:$0xff] }
 0x6fb   :  { %1687 = vmatpush.msra.mxu1 %v3158_v32 }
 0x6fc   :  { %v1414_v36 = vmul.f32 0.5, %v1408_v52  ;;  %v3157_v52 = vld [vmem:[%s5321_s2 + $0x20] sm:$0xff] }
 0x6fd   :  { %1688 = vmatpush.msra.mxu1 %v3157_v52 }
 0x6fe   :  { %v1420_v47 = vmul.f32 %v1414_v36, %v1365_v30 }
 0x700   :  { %3156 = vmatmul.msk.f32.gmra.mxu3 %vm1429_vm12, %v1420_v47 }
 0x756   :  { %v1465_v59 = vpop.f32.mrf.mxu3 }
 0x757   :  { %v1483_v57 = vadd.f32 %v1465_v59, %v4342_v49 }
 0x759   :  { %v4502_v39 = vadd.f32 %v3315_v60, %v1483_v57 }
 0x75b   :  { %v1502_v8 = vsel %vm138_vm1, %v4502_v39, 0.0 }
 0x75c   :  { %1503 = vadd.xlane.f32.xlu0 %v1502_v8 }
 0x75e   :  { %v1468_v56 = vpop.f32.mrf.mxu3 }
 0x75f   :  { %v1484_v48 = vadd.f32 %v1468_v56, %v4347_v58 }
 0x761   :  { %v4507_v23 = vadd.f32 %v3315_v60, %v1484_v48 }
 0x763   :  { %v1505_v29 = vsel %vm138_vm1, %v4507_v23, 0.0 }
 0x764   :  { %1506 = vadd.xlane.f32.xlu2 %v1505_v29 }
 0x766   :  { %v1471_v4 = vpop.f32.mrf.mxu3 }
 0x767   :  { %v1485_v44 = vadd.f32 %v1471_v4, %v4352_v45 }
 0x769   :  { %v4512_v51 = vadd.f32 %v3315_v60, %v1485_v44 }
 0x76b   :  { %v1508_v49 = vsel %vm138_vm1, %v4512_v51, 0.0 }
 0x76c   :  { %1509 = vadd.xlane.f32.xlu1 %v1508_v49 }
 0x773   :  { %v1474_v41 = vpop.f32.mrf.mxu3 }
 0x774   :  { %v1486_v0 = vadd.f32 %v1474_v41, %v4357_v27 }
 0x776   :  { %v4517_v6 = vadd.f32 %v3315_v60, %v1486_v0 }
 0x778   :  { %v1511_v58 = vsel %vm138_vm1, %v4517_v6, 0.0 }
 0x779   :  { %1512 = vadd.xlane.f32.xlu0 %v1511_v58 }
 0x77b   :  { %v1477_v53 = vpop.f32.mrf.mxu3 }
 0x77c   :  { %v1487_v40 = vadd.f32 %v1477_v53, %v4362_v50 }
 0x77e   :  { %v4522_v62 = vadd.f32 %v3315_v60, %v1487_v40 }
 0x780   :  { %v1514_v45 = vsel %vm138_vm1, %v4522_v62, 0.0 }
 0x781   :  { %1515 = vadd.xlane.f32.xlu2 %v1514_v45  ;;  %v4591_v45 = vld [vmem:[%s5325_s6 + $0xab] ss:$0 sm:$0xff] }
 0x783   :  { %v1480_v14 = vpop.f32.mrf.mxu3 }
 0x784   :  { %v1488_v15 = vadd.f32 %v1480_v14, %v4367_v12 }
 0x786   :  { %v4527_v7 = vadd.f32 %v3315_v60, %v1488_v15 }
 0x788   :  { %v1517_v27 = vsel %vm138_vm1, %v4527_v7, 0.0 }
 0x789   :  { %1518 = vadd.xlane.f32.xlu1 %v1517_v27 }
 0x7cf   :  { %v1504_v18 = vpop.xlane.xlu0 %1503 }
 0x7d0   :  { %v1520_v31 = vmul.f32 %v1504_v18, %v3795_v42  ;;  %v4597_v18 = vld [vmem:[%s5325_s6 + $0xac] ss:$0 sm:$0xff] }
 0x7d2   :  { %v4533_v50 = vsub.f32 %v4502_v39, %v1520_v31 }
 0x7d4   :  { %v1532_v10 = vmul.f32 %v4533_v50, %v4533_v50 }
 0x7d6   :  { %v1538_v9 = vsel %vm138_vm1, %v1532_v10, 0.0 }
 0x7d7   :  { %v1507_v55 = vpop.xlane.xlu2 %1506  ;;  %1539 = vadd.xlane.f32.xlu0 %v1538_v9 }
 0x7d8   :  { %v1521_v12 = vmul.f32 %v1507_v55, %v3795_v42 }
 0x7da   :  { %v4540_v26 = vsub.f32 %v4507_v23, %v1521_v12 }
 0x7dc   :  { %v1533_v35 = vmul.f32 %v4540_v26, %v4540_v26 }
 0x7de   :  { %v1541_v2 = vsel %vm138_vm1, %v1533_v35, 0.0 }
 0x7df   :  { %1542 = vadd.xlane.f32.xlu2 %v1541_v2  ;;  %v1510_v54 = vpop.xlane.xlu1 %1509 }
 0x7e0   :  { %v1522_v43 = vmul.f32 %v1510_v54, %v3795_v42 }
 0x7e2   :  { %v4547_v1 = vsub.f32 %v4512_v51, %v1522_v43 }
 0x7e4   :  { %v1534_v34 = vmul.f32 %v4547_v1, %v4547_v1 }
 0x7e6   :  { %v1544_v25 = vsel %vm138_vm1, %v1534_v34, 0.0 }
 0x7e7   :  { %1545 = vadd.xlane.f32.xlu1 %v1544_v25 }
 0x7ec   :  { %v1513_v11 = vpop.xlane.xlu0 %1512 }
 0x7ed   :  { %v1523_v24 = vmul.f32 %v1513_v11, %v3795_v42 }
 0x7ef   :  { %v4554_v30 = vsub.f32 %v4517_v6, %v1523_v24 }
 0x7f1   :  { %v1535_v16 = vmul.f32 %v4554_v30, %v4554_v30 }
 0x7f3   :  { %v1547_v22 = vsel %vm138_vm1, %v1535_v16, 0.0 }
 0x7f4   :  { %1548 = vadd.xlane.f32.xlu0 %v1547_v22  ;;  %v1516_v61 = vpop.xlane.xlu2 %1515 }
 0x7f5   :  { %v1524_v33 = vmul.f32 %v1516_v61, %v3795_v42 }
 0x7f7   :  { %v4561_v17 = vsub.f32 %v4522_v62, %v1524_v33 }
 0x7f9   :  { %v1536_v19 = vmul.f32 %v4561_v17, %v4561_v17 }
 0x7fb   :  { %v1550_v20 = vsel %vm138_vm1, %v1536_v19, 0.0 }
 0x7fc   :  { %1551 = vadd.xlane.f32.xlu2 %v1550_v20  ;;  %v1519_v3 = vpop.xlane.xlu1 %1518 }
 0x7fd   :  { %v1525_v37 = vmul.f32 %v1519_v3, %v3795_v42 }
 0x7ff   :  { %v4568_v38 = vsub.f32 %v4527_v7, %v1525_v37 }
 0x801   :  { %v1537_v46 = vmul.f32 %v4568_v38, %v4568_v38 }
 0x803   :  { %v1553_v21 = vsel %vm138_vm1, %v1537_v46, 0.0 }
 0x804   :  { %1554 = vadd.xlane.f32.xlu1 %v1553_v21 }
 0x84a   :  { %v1540_v36 = vpop.xlane.xlu0 %1539 }
 0x84b   :  { %v1556_v47 = vmul.f32 %v1540_v36, %v3795_v42 }
 0x84d   :  { %v1562_v60 = vadd.f32 1e-12, %v1556_v47 }
 0x84f   :  { %3462 = vrsqrt.f32 %v1562_v60  ;;  %vm1574_vm14 = vweird.f32 %v1562_v60 }
 0x852   :  { %v1543_v59 = vpop.xlane.xlu2 %1542 }
 0x853   :  { %v1557_v57 = vmul.f32 %v1543_v59, %v3795_v42 }
 0x855   :  { %v3463_v8 = vpop.eup %3462  ;;  %v1563_v56 = vadd.f32 1e-12, %v1557_v57 }
 0x856   :  { %v1569_v48 = vmul.f32 %v3463_v8, %v1562_v60  ;;  %vm1575_vm13 = vweird.f32 %v3463_v8 }
 0x857   :  { %3464 = vrsqrt.f32 %v1563_v56  ;;  %vm1576_vm15 = vmor %vm1574_vm14, %vm1575_vm13  ;;  %vm1584_vm2 = vweird.f32 %v1563_v56 }
 0x858   :  { %v1570_v29 = vmul.f32 %v3463_v8, %v1569_v48 }
 0x85a   :  { %v1571_v4 = vmul.f32 0.5, %v1570_v29  ;;  %v1546_v44 = vpop.xlane.xlu1 %1545 }
 0x85b   :  { %v1558_v49 = vmul.f32 %v1546_v44, %v3795_v42 }
 0x85c   :  { %v1572_v41 = vsub.f32 1.5, %v1571_v4 }
 0x85d   :  { %v3465_v0 = vpop.eup %3464  ;;  %v1564_v58 = vadd.f32 1e-12, %v1558_v49 }
 0x85e   :  { %v1573_v53 = vmul.f32 %v3463_v8, %v1572_v41  ;;  %v1579_v40 = vmul.f32 %v3465_v0, %v1563_v56  ;;  %vm1585_vm0 = vweird.f32 %v3465_v0 }
 0x85f   :  { %3466 = vrsqrt.f32 %v1564_v58  ;;  %vm1586_vm3 = vmor %vm1584_vm2, %vm1585_vm0  ;;  %vm1594_vm5 = vweird.f32 %v1564_v58 }
 0x860   :  { %v1577_v14 = vsel %vm1576_vm15, %v3463_v8, %v1573_v53  ;;  %v1580_v15 = vmul.f32 %v3465_v0, %v1579_v40 }
 0x861   :  { %v1628_v27 = vmul.f32 %v1577_v14, %v4533_v50 }
 0x862   :  { %v1581_v31 = vmul.f32 0.5, %v1580_v15 }
 0x863   :  { %v1635_v10 = vmul.f32 %v4591_v45, %v1628_v27 }
 0x864   :  { %v1582_v9 = vsub.f32 1.5, %v1581_v31 }
 0x865   :  { %v3467_v55 = vpop.eup %3466  ;;  %v1642_v12 = vadd.f32 %v4597_v18, %v1635_v10 }
 0x866   :  { %v1583_v35 = vmul.f32 %v3465_v0, %v1582_v9  ;;  %v1589_v2 = vmul.f32 %v3467_v55, %v1564_v58  ;;  %vm1595_vm4 = vweird.f32 %v3467_v55 }
 0x867   :  { %3161 = vmatmul.msk.f32.vlgmr.msra.gmra.mxu1 %vm138_vm1, %v1642_v12  ;;  %v1549_v50 = vpop.xlane.xlu0 %1548  ;;  %vm1596_vm6 = vmor %vm1594_vm5, %vm1595_vm4 }
 0x868   :  { %v1587_v54 = vsel %vm1586_vm3, %v3465_v0, %v1583_v35  ;;  %v1590_v43 = vmul.f32 %v3467_v55, %v1589_v2  ;;  %v1559_v34 = vmul.f32 %v1549_v50, %v3795_v42 }
 0x869   :  { %v1629_v25 = vmul.f32 %v1587_v54, %v4540_v26 }
 0x86a   :  { %v1591_v11 = vmul.f32 0.5, %v1590_v43  ;;  %v1565_v24 = vadd.f32 1e-12, %v1559_v34 }
 0x86b   :  { %v1636_v16 = vmul.f32 %v4591_v45, %v1629_v25 }
 0x86c   :  { %v1592_v22 = vsub.f32 1.5, %v1591_v11  ;;  %3468 = vrsqrt.f32 %v1565_v24  ;;  %vm1604_vm9 = vweird.f32 %v1565_v24 }
 0x86d   :  { %v1643_v61 = vadd.f32 %v4597_v18, %v1636_v16 }
 0x86e   :  { %v1593_v33 = vmul.f32 %v3467_v55, %v1592_v22 }
 0x86f   :  { %3162 = vmatmul.msk.f32.gmra.mxu1 %vm138_vm1, %v1643_v61  ;;  %v1552_v19 = vpop.xlane.xlu2 %1551 }
 0x870   :  { %v1597_v20 = vsel %vm1596_vm6, %v3467_v55, %v1593_v33  ;;  %v1560_v3 = vmul.f32 %v1552_v19, %v3795_v42 }
 0x871   :  { %v1630_v26 = vmul.f32 %v1597_v20, %v4547_v1 }
 0x872   :  { %v3469_v37 = vpop.eup %3468  ;;  %v1566_v46 = vadd.f32 1e-12, %v1560_v3 }
 0x873   :  { %v1599_v21 = vmul.f32 %v3469_v37, %v1565_v24  ;;  %v1637_v28 = vmul.f32 %v4591_v45, %v1630_v26  ;;  %vm1605_vm8 = vweird.f32 %v3469_v37 }
 0x874   :  { %3470 = vrsqrt.f32 %v1566_v46  ;;  %vm1606_vm10 = vmor %vm1604_vm9, %vm1605_vm8  ;;  %vm1614_vm13 = vweird.f32 %v1566_v46 }
 0x875   :  { %v1600_v13 = vmul.f32 %v3469_v37, %v1599_v21  ;;  %v1644_v32 = vadd.f32 %v4597_v18, %v1637_v28 }
 0x877   :  { %v1601_v52 = vmul.f32 0.5, %v1600_v13  ;;  %3163 = vmatmul.msk.f32.gmra.mxu1 %vm138_vm1, %v1644_v32  ;;  %v1555_v36 = vpop.xlane.xlu1 %1554  ;;  %v4657_v13 = vld [vmem:[%s5325_s6 + $0x38] sm:$0xff] }
 0x878   :  { %v1561_v47 = vmul.f32 %v1555_v36, %v3795_v42  ;;  %v4664_v36 = vld [vmem:[%s5325_s6 + $0x40] sm:$0xff] }
 0x879   :  { %v1602_v60 = vsub.f32 1.5, %v1601_v52 }
 0x87a   :  { %v3471_v59 = vpop.eup %3470  ;;  %v1567_v57 = vadd.f32 1e-12, %v1561_v47 }
 0x87b   :  { %v1603_v1 = vmul.f32 %v3469_v37, %v1602_v60  ;;  %v1609_v8 = vmul.f32 %v3471_v59, %v1566_v46  ;;  %vm1615_vm11 = vweird.f32 %v3471_v59  ;;  %v4650_v46 = vld [vmem:[%s5325_s6 + $0x30] sm:$0xff] }
 0x87c   :  { %3472 = vrsqrt.f32 %v1567_v57  ;;  %vm1616_vm14 = vmor %vm1614_vm13, %vm1615_vm11  ;;  %vm1624_vm0 = vweird.f32 %v1567_v57 }
 0x87d   :  { %v1607_v56 = vsel %vm1606_vm10, %v3469_v37, %v1603_v1  ;;  %v1610_v48 = vmul.f32 %v3471_v59, %v1609_v8 }
 0x87e   :  { %v1631_v29 = vmul.f32 %v1607_v56, %v4554_v30 }
 0x87f   :  { %v1611_v4 = vmul.f32 0.5, %v1610_v48  ;;  %v4682_v48 = vld [vmem:[%s5325_s6 + $0x50] sm:$0xff] }
 0x880   :  { %v1638_v44 = vmul.f32 %v4591_v45, %v1631_v29 }
 0x881   :  { %v1612_v49 = vsub.f32 1.5, %v1611_v4 }
 0x882   :  { %v3473_v41 = vpop.eup %3472  ;;  %v1645_v0 = vadd.f32 %v4597_v18, %v1638_v44 }
 0x883   :  { %v1613_v58 = vmul.f32 %v3471_v59, %v1612_v49  ;;  %v1619_v53 = vmul.f32 %v3473_v41, %v1567_v57  ;;  %vm1625_vm15 = vweird.f32 %v3473_v41 }
 0x884   :  { %3164 = vmatmul.msk.f32.gmra.mxu1 %vm138_vm1, %v1645_v0  ;;  %vm1626_vm2 = vmor %vm1624_vm0, %vm1625_vm15 }
 0x885   :  { %v1617_v40 = vsel %vm1616_vm14, %v3471_v59, %v1613_v58  ;;  %v1620_v14 = vmul.f32 %v3473_v41, %v1619_v53  ;;  %v4672_v59 = vld [vmem:[%s5325_s6 + $0x48] sm:$0xff]  ;;  %v4692_v58 = vld [vmem:[%s5325_s6 + $0x58] sm:$0xff] }
 0x886   :  { %v1632_v15 = vmul.f32 %v1617_v40, %v4561_v17  ;;  %v3318_v17 = vld [vmem:[%s5326_s7 + $0x1] ss:$0 sm:$0xff] }
 0x887   :  { %v1621_v27 = vmul.f32 0.5, %v1620_v14 }
 0x888   :  { %v1639_v30 = vmul.f32 %v4591_v45, %v1632_v15 }
 0x889   :  { %v1622_v31 = vsub.f32 1.5, %v1621_v27 }
 0x88a   :  { %v1646_v10 = vadd.f32 %v4597_v18, %v1639_v30 }
 0x88b   :  { %v1623_v9 = vmul.f32 %v3473_v41, %v1622_v31  ;;  %v4701_v31 = vld [vmem:[%s5325_s6 + $0x60] sm:$0xff] }
 0x88c   :  { %3165 = vmatmul.msk.f32.gmra.mxu1 %vm138_vm1, %v1646_v10 }
 0x88d   :  { %v1627_v55 = vsel %vm1626_vm2, %v3473_v41, %v1623_v9 }
 0x88e   :  { %v1633_v12 = vmul.f32 %v1627_v55, %v4568_v38  ;;  %v4710_v55 = vld [vmem:[%s5325_s6 + $0x68] sm:$0xff] }
 0x890   :  { %v1640_v35 = vmul.f32 %v4591_v45, %v1633_v12 }
 0x892   :  { %v1647_v2 = vadd.f32 %v4597_v18, %v1640_v35 }
 0x894   :  { %3166 = vmatmul.msk.f32.gmra.mxu1 %vm138_vm1, %v1647_v2  ;;  %v4719_v2 = vld [vmem:[%s5325_s6 + $0x70] sm:$0xff] }
 0x8e4   :  { %v1690_v50 = vpop.f32.mrf.mxu1 }
 0x8e5   :  { %v1691_v54 = vadd.f32 %v3318_v17, %v1690_v50 }
 0x8e7   :  { %1726 = vrot.lane.b32.xlu1 %v1691_v54, %s3644_s25  ;;  %v1708_v26 = vmul.f32 0.35355338, %v1691_v54 }
 0x8e9   :  { %v1711_v21 = vmul.f32 %v4650_v46, %v1708_v26  ;;  %v1714_v57 = vmul.f32 %v4672_v59, %v1708_v26  ;;  %v1717_v10 = vmul.f32 %v4701_v31, %v1708_v26 }
 0x8ec   :  { %v1693_v43 = vpop.f32.mrf.mxu1 }
 0x8ed   :  { %v1694_v34 = vadd.f32 %v3318_v17, %v1693_v43 }
 0x8ef   :  { %1728 = vrot.lane.b32.xlu2 %v1694_v34, %s3644_s25  ;;  %v1709_v28 = vmul.f32 0.35355338, %v1694_v34 }
 0x8f1   :  { %v1712_v32 = vmul.f32 %v4657_v13, %v1709_v28  ;;  %v1715_v29 = vmul.f32 %v4682_v48, %v1709_v28  ;;  %v1718_v12 = vmul.f32 %v4710_v55, %v1709_v28 }
 0x8f4   :  { %v1696_v25 = vpop.f32.mrf.mxu1 }
 0x8f5   :  { %v1697_v38 = vadd.f32 %v3318_v17, %v1696_v25  ;;  %v4737_v25 = vld [vmem:[%s5325_s6 + $0x80] sm:$0xff] }
 0x8f7   :  { %1730 = vrot.lane.b32.xlu0 %v1697_v38, %s3644_s25  ;;  %v3293_v33 = vpack.i.bf16 %v1694_v34, %v1697_v38  ;;  %v1710_v52 = vmul.f32 0.35355338, %v1697_v38  ;;  %v1721_v38 = vmul.f32 %v4737_v25, %v1709_v28 }
 0x8f9   :  { %v1713_v47 = vmul.f32 %v4664_v36, %v1710_v52  ;;  %v1716_v53 = vmul.f32 %v4692_v58, %v1710_v52 }
 0x901   :  { %v1699_v45 = vpop.f32.mrf.mxu1 }
 0x902   :  { %v4631_v18 = vadd.f32 %v3318_v17, %v1699_v45 }
 0x904   :  { %2096 = vrot.lane.b32.xlu2 %v4631_v18, %s3644_s25  ;;  %v2078_v8 = vmul.f32 0.35355338, %v4631_v18 }
 0x906   :  { %v2081_v4 = vmul.f32 %v4650_v46, %v2078_v8  ;;  %v2084_v35 = vmul.f32 %v4672_v59, %v2078_v8  ;;  %v2087_v45 = vmul.f32 %v4701_v31, %v2078_v8 }
 0x909   :  { %v1702_v11 = vpop.f32.mrf.mxu1 }
 0x90a   :  { %v4635_v24 = vadd.f32 %v3318_v17, %v1702_v11  ;;  %v4746_v11 = vld [vmem:[%s5325_s6 + $0x88] sm:$0xff] }
 0x90c   :  { %v3303_v16 = vpack.i.bf16 %v4631_v18, %v4635_v24  ;;  %v2079_v41 = vmul.f32 0.35355338, %v4635_v24 }
 0x90e   :  { %v2082_v40 = vmul.f32 %v4657_v13, %v2079_v41  ;;  %v2085_v50 = vmul.f32 %v4682_v48, %v2079_v41 }
 0x911   :  { %v1705_v22 = vpop.f32.mrf.mxu1 }
 0x912   :  { %v1706_v61 = vadd.f32 %v3318_v17, %v1705_v22  ;;  %v1719_v17 = vmul.f32 %v4719_v2, %v1710_v52  ;;  %v1722_v22 = vmul.f32 %v4746_v11, %v1710_v52 }
 0x914   :  { %2100 = vrot.lane.b32.xlu0 %v1706_v61, %s3644_s25  ;;  %v3298_v19 = vpack.i.bf16 %v1706_v61, %v1691_v54  ;;  %v2080_v30 = vmul.f32 0.35355338, %v1706_v61  ;;  %v4728_v54 = vld [vmem:[%s5325_s6 + $0x78] sm:$0xff]  ;;  %v2088_v61 = vmul.f32 %v4710_v55, %v2079_v41 }
 0x915   :  { %v1720_v43 = vmul.f32 %v4728_v54, %v1708_v26 }
 0x916   :  { %v2083_v9 = vmul.f32 %v4664_v36, %v2080_v30  ;;  %v2086_v34 = vmul.f32 %v4692_v58, %v2080_v30 }
 0x91c   :  { %2098 = vrot.lane.b32.xlu0 %v4635_v24, %s3644_s25 }
 0x924   :  { %3294 = vrot.lane.b32.xlu0 %v3293_v33, %s3645_s26  ;;  %v2089_v33 = vmul.f32 %v4719_v2, %v2080_v30 }
 0x92c   :  { %3299 = vrot.lane.b32.xlu0 %v3298_v19, %s3645_s26  ;;  %v2090_v19 = vmul.f32 %v4728_v54, %v2078_v8 }
 0x949   :  { %v1729_v3 = vpop.permute.xlu2 %1728 }
 0x959   :  { %v1727_v37 = vpop.permute.xlu1 %1726 }
 0x95e   :  { %v2097_v56 = vpop.permute.xlu2 %2096 }
 0x969   :  { %v1731_v20 = vpop.permute.xlu0 %1730 }
 0x96a   :  { %3167 = vmatpush.xpose.msk.msra.mxu0 %vm138_vm1, %v1731_v20  ;;  %v2091_v20 = vmul.f32 %v4737_v25, %v2079_v41 }
 0x96e   :  { %3168 = vmatpush.xpose.msk.msra.mxu0 %vm138_vm1, %v1729_v3  ;;  %v2092_v3 = vmul.f32 %v4746_v11, %v2080_v30 }
 0x972   :  { %3169 = vmatpush.xpose.msk.msra.mxu0 %vm138_vm1, %v1727_v37 }
 0x975   :  { %3170 = vmatmul.msk.f32.vlgmr.msra.gmra.mxu0 %vm138_vm1, %v1711_v21 }
 0x97d   :  { %3171 = vmatmul.msk.f32.gmra.mxu0 %vm138_vm1, %v1712_v32 }
 0x985   :  { %3172 = vmatmul.msk.f32.gmra.mxu0 %vm138_vm1, %v1713_v47 }
 0x986   :  { %v2101_v60 = vpop.permute.xlu0 %2100 }
 0x987   :  { %3194 = vmatpush.xpose.msk.msrb.mxu3 %vm138_vm1, %v2101_v60 }
 0x98d   :  { %3173 = vmatmul.msk.f32.gmra.mxu0 %vm138_vm1, %v1714_v57 }
 0x98e   :  { %v2099_v1 = vpop.permute.xlu0 %2098 }
 0x98f   :  { %3195 = vmatpush.xpose.msk.msrb.mxu3 %vm138_vm1, %v2099_v1 }
 0x993   :  { %3196 = vmatpush.xpose.msk.msrb.mxu3 %vm138_vm1, %v2097_v56 }
 0x995   :  { %3174 = vmatmul.msk.f32.gmra.mxu0 %vm138_vm1, %v1715_v29 }
 0x996   :  { %3197 = vmatmul.msk.f32.vlgmr.msrb.gmra.mxu3 %vm138_vm1, %v2081_v4  ;;  %v3295_v44 = vpop.permute.xlu0 %3294 }
 0x997   :  { %v3296_v49 = vunpack.i.l.bf16 %v3295_v44  ;;  %v3297_v0 = vunpack.i.h.bf16 %v3295_v44 }
 0x999   :  { %1993 = vmatpush.msrb.mxu2 %v3296_v49 }
 0x99b   :  { %1994 = vmatpush.msrb.mxu2 %v3297_v0 }
 0x99d   :  { %3175 = vmatmul.msk.f32.gmra.mxu0 %vm138_vm1, %v1716_v53 }
 0x99e   :  { %3198 = vmatmul.msk.f32.gmra.mxu3 %vm138_vm1, %v2082_v40  ;;  %v3300_v14 = vpop.permute.xlu0 %3299 }
 0x99f   :  { %v3302_v15 = vunpack.i.h.bf16 %v3300_v14  ;;  %v3301_v27 = vunpack.i.l.bf16 %v3300_v14 }
 0x9a1   :  { %1995 = vmatpush.msrb.mxu2 %v3301_v27  ;;  %2363 = vmatpush.msrb.mxu1 %v3302_v15 }
 0x9a5   :  { %3176 = vmatmul.msk.f32.gmra.mxu0 %vm138_vm1, %v1717_v10 }
 0x9a6   :  { %3199 = vmatmul.msk.f32.gmra.mxu3 %vm138_vm1, %v2083_v9 }
 0x9ad   :  { %3177 = vmatmul.msk.f32.gmra.mxu0 %vm138_vm1, %v1718_v12 }
 0x9ae   :  { %3200 = vmatmul.msk.f32.gmra.mxu3 %vm138_vm1, %v2084_v35 }
 0x9b5   :  { %3178 = vmatmul.msk.f32.gmra.mxu0 %vm138_vm1, %v1719_v17 }
 0x9b6   :  { %3201 = vmatmul.msk.f32.gmra.mxu3 %vm138_vm1, %v2085_v50 }
 0x9bd   :  { %3179 = vmatmul.msk.f32.gmra.mxu0 %vm138_vm1, %v1720_v43 }
 0x9be   :  { %3202 = vmatmul.msk.f32.gmra.mxu3 %vm138_vm1, %v2086_v34 }
 0x9c5   :  { %3180 = vmatmul.msk.f32.gmra.mxu0 %vm138_vm1, %v1721_v38 }
 0x9c6   :  { %3203 = vmatmul.msk.f32.gmra.mxu3 %vm138_vm1, %v2087_v45 }
 0x9cd   :  { %3181 = vmatmul.msk.f32.gmra.mxu0 %vm138_vm1, %v1722_v22 }
 0x9ce   :  { %3204 = vmatmul.msk.f32.gmra.mxu3 %vm138_vm1, %v2088_v61 }
 0x9d6   :  { %3205 = vmatmul.msk.f32.gmra.mxu3 %vm138_vm1, %v2089_v33 }
 0x9de   :  { %3206 = vmatmul.msk.f32.gmra.mxu3 %vm138_vm1, %v2090_v19 }
 0x9e6   :  { %3207 = vmatmul.msk.f32.gmra.mxu3 %vm138_vm1, %v2091_v20 }
 0x9ee   :  { %3208 = vmatmul.msk.f32.gmra.mxu3 %vm138_vm1, %v2092_v3 }
 0x9f2   :  { %v1791_v26 = vpop.f32.mrf.mxu0 }
 0x9f3   :  { %v4761_v37 = vadd.f32 %v1791_v26, %v4040_v5 }
 0x9f5   :  { %v1827_v21 = vsel %vm470_vm7, %v4761_v37, -inf }
 0x9f6   :  { %1828 = vmax.xlane.f32.xlu1 %v1827_v21 }
 0x9fa   :  { %v1794_v28 = vpop.f32.mrf.mxu0 }
 0x9fb   :  { %v4766_v32 = vadd.f32 %v1794_v28, %v4040_v5 }
 0x9fd   :  { %v1830_v52 = vsel %vm470_vm7, %v4766_v32, -inf }
 0x9fe   :  { %1831 = vmax.xlane.f32.xlu2 %v1830_v52 }
 0xa02   :  { %v1797_v47 = vpop.f32.mrf.mxu0 }
 0xa03   :  { %v4771_v60 = vadd.f32 %v1797_v47, %v4040_v5 }
 0xa05   :  { %v1833_v57 = vsel %vm470_vm7, %v4771_v60, -inf }
 0xa06   :  { %1834 = vmax.xlane.f32.xlu0 %v1833_v57 }
 0xa0a   :  { %v1800_v1 = vpop.f32.mrf.mxu0 }
 0xa0b   :  { %v4776_v8 = vadd.f32 %v1800_v1, %v4040_v5 }
 0xa0d   :  { %v1836_v56 = vsel %vm470_vm7, %v4776_v8, -inf }
 0xa0e   :  { %1837 = vmax.xlane.f32.xlu1 %v1836_v56 }
 0xa12   :  { %v1803_v29 = vpop.f32.mrf.mxu0 }
 0xa13   :  { %v4781_v4 = vadd.f32 %v1803_v29, %v4040_v5 }
 0xa15   :  { %v1839_v44 = vsel %vm470_vm7, %v4781_v4, -inf }
 0xa16   :  { %1840 = vmax.xlane.f32.xlu1 %v1839_v44 }
 0xa19   :  { %v2161_v49 = vpop.f32.mrf.mxu3 }
 0xa1a   :  { %v4786_v41 = vadd.f32 %v2161_v49, %v4040_v5  ;;  %v1806_v0 = vpop.f32.mrf.mxu0 }
 0xa1b   :  { %v4789_v53 = vadd.f32 %v1806_v0, %v4040_v5 }
 0xa1c   :  { %v2197_v40 = vsel %vm470_vm7, %v4786_v41, -inf }
 0xa1d   :  { %2198 = vmax.xlane.f32.xlu2 %v2197_v40  ;;  %v1842_v14 = vsel %vm470_vm7, %v4789_v53, -inf }
 0xa1e   :  { %1843 = vmax.xlane.f32.xlu0 %v1842_v14 }
 0xa21   :  { %v2164_v15 = vpop.f32.mrf.mxu3 }
 0xa22   :  { %v4796_v27 = vadd.f32 %v2164_v15, %v4040_v5  ;;  %v1809_v30 = vpop.f32.mrf.mxu0 }
 0xa23   :  { %v4799_v10 = vadd.f32 %v1809_v30, %v4040_v5 }
 0xa24   :  { %v2200_v9 = vsel %vm470_vm7, %v4796_v27, -inf }
 0xa25   :  { %2201 = vmax.xlane.f32.xlu2 %v2200_v9  ;;  %v1845_v12 = vsel %vm470_vm7, %v4799_v10, -inf }
 0xa26   :  { %1846 = vmax.xlane.f32.xlu0 %v1845_v12 }
 0xa29   :  { %v2167_v35 = vpop.f32.mrf.mxu3 }
 0xa2a   :  { %v4806_v17 = vadd.f32 %v2167_v35, %v4040_v5  ;;  %v1812_v50 = vpop.f32.mrf.mxu0 }
 0xa2b   :  { %v4809_v43 = vadd.f32 %v1812_v50, %v4040_v5 }
 0xa2c   :  { %v2203_v34 = vsel %vm470_vm7, %v4806_v17, -inf }
 0xa2d   :  { %2204 = vmax.xlane.f32.xlu2 %v2203_v34  ;;  %v1848_v38 = vsel %vm470_vm7, %v4809_v43, -inf }
 0xa2e   :  { %1849 = vmax.xlane.f32.xlu0 %v1848_v38 }
 0xa2f   :  { %3304 = vrot.lane.b32.xlu1 %v3303_v16, %s3645_s26 }
 0xa31   :  { %v2170_v45 = vpop.f32.mrf.mxu3 }
 0xa32   :  { %v4820_v22 = vadd.f32 %v2170_v45, %v4040_v5  ;;  %v1815_v61 = vpop.f32.mrf.mxu0 }
 0xa33   :  { %v4856_v14 = vadd.f32 %v1815_v61, %v4040_v5 }
 0xa34   :  { %v2206_v33 = vsel %vm470_vm7, %v4820_v22, -inf }
 0xa35   :  { %2207 = vmax.xlane.f32.xlu2 %v2206_v33  ;;  %v1851_v9 = vsel %vm470_vm7, %v4856_v14, -inf }
 0xa39   :  { %v2173_v19 = vpop.f32.mrf.mxu3 }
 0xa3a   :  { %v4825_v20 = vadd.f32 %v2173_v19, %v4040_v5  ;;  %v1818_v3 = vpop.f32.mrf.mxu0 }
 0xa3b   :  { %v4830_v18 = vadd.f32 %v1818_v3, %v4040_v5 }
 0xa3c   :  { %v2209_v26 = vsel %vm470_vm7, %v4825_v20, -inf }
 0xa3d   :  { %2210 = vmax.xlane.f32.xlu2 %v2209_v26  ;;  %v1854_v52 = vsel %vm470_vm7, %v4830_v18, -inf }
 0xa41   :  { %v2176_v24 = vpop.f32.mrf.mxu3 }
 0xa42   :  { %v4833_v16 = vadd.f32 %v2176_v24, %v4040_v5  ;;  %v1821_v21 = vpop.f32.mrf.mxu0 }
 0xa43   :  { %v4840_v47 = vadd.f32 %v1821_v21, %v4040_v5 }
 0xa44   :  { %v2212_v28 = vsel %vm470_vm7, %v4833_v16, -inf }
 0xa45   :  { %2213 = vmax.xlane.f32.xlu0 %v2212_v28  ;;  %1855 = vmax.xlane.f32.xlu2 %v1854_v52  ;;  %v1857_v29 = vsel %vm470_vm7, %v4840_v47, -inf }
 0xa49   :  { %v2179_v57 = vpop.f32.mrf.mxu3 }
 0xa4a   :  { %v4843_v1 = vadd.f32 %v2179_v57, %v4040_v5  ;;  %v1824_v44 = vpop.f32.mrf.mxu0 }
 0xa4b   :  { %v4850_v49 = vadd.f32 %v1824_v44, %v4040_v5 }
 0xa4c   :  { %v2215_v56 = vsel %vm470_vm7, %v4843_v1, -inf }
 0xa4d   :  { %2216 = vmax.xlane.f32.xlu0 %v2215_v56  ;;  %1858 = vmax.xlane.f32.xlu2 %v1857_v29  ;;  %v1860_v30 = vsel %vm470_vm7, %v4850_v49, -inf }
 0xa51   :  { %v2182_v0 = vpop.f32.mrf.mxu3 }
 0xa52   :  { %v4853_v40 = vadd.f32 %v2182_v0, %v4040_v5 }
 0xa54   :  { %v2218_v15 = vsel %vm470_vm7, %v4853_v40, -inf }
 0xa55   :  { %2219 = vmax.xlane.f32.xlu0 %v2218_v15  ;;  %1861 = vmax.xlane.f32.xlu2 %v1860_v30 }
 0xa59   :  { %v2185_v12 = vpop.f32.mrf.mxu3  ;;  %1852 = vmax.xlane.f32.xlu1 %v1851_v9 }
 0xa5a   :  { %v4865_v35 = vadd.f32 %v2185_v12, %v4040_v5 }
 0xa5c   :  { %v2221_v50 = vsel %vm470_vm7, %v4865_v35, -inf }
 0xa5d   :  { %2222 = vmax.xlane.f32.xlu0 %v2221_v50 }
 0xa61   :  { %v2188_v34 = vpop.f32.mrf.mxu3 }
 0xa62   :  { %v4870_v38 = vadd.f32 %v2188_v34, %v4040_v5 }
 0xa64   :  { %v2224_v45 = vsel %vm470_vm7, %v4870_v38, -inf }
 0xa65   :  { %2225 = vmax.xlane.f32.xlu2 %v2224_v45 }
 0xa69   :  { %v2191_v61 = vpop.f32.mrf.mxu3  ;;  %v1829_v33 = vpop.xlane.xlu1 %1828 }
 0xa6a   :  { %v4875_v19 = vadd.f32 %v2191_v61, %v4040_v5  ;;  %v1863_v3 = vsub.f32 %v4761_v37, %v1829_v33 }
 0xa6c   :  { %v1875_v26 = vmul.f32 1.442695, %v1863_v3  ;;  %v2227_v24 = vsel %vm470_vm7, %v4875_v19, -inf }
 0xa6d   :  { %2228 = vmax.xlane.f32.xlu0 %v2227_v24 }
 0xa6e   :  { %3474 = vpow2.f32 %v1875_v26 }
 0xa71   :  { %v1832_v21 = vpop.xlane.xlu2 %1831 }
 0xa72   :  { %v1864_v28 = vsub.f32 %v4766_v32, %v1832_v21 }
 0xa74   :  { %v3475_v52 = vpop.eup %3474  ;;  %v1877_v57 = vmul.f32 1.442695, %v1864_v28 }
 0xa75   :  { %3182 = vmatmul.msk.f32.vlgmr.msrb.gmra.mxu2 %vm470_vm7, %v3475_v52  ;;  %v1899_v56 = vsel %vm470_vm7, %v3475_v52, 0.0 }
 0xa76   :  { %3476 = vpow2.f32 %v1877_v57  ;;  %1900 = vadd.xlane.f32.xlu2 %v1899_v56 }
 0xa79   :  { %v1835_v29 = vpop.xlane.xlu0 %1834 }
 0xa7a   :  { %v1865_v37 = vsub.f32 %v4771_v60, %v1835_v29 }
 0xa7c   :  { %v3477_v44 = vpop.eup %3476  ;;  %v1879_v0 = vmul.f32 1.442695, %v1865_v37 }
 0xa7d   :  { %3183 = vmatmul.msk.f32.gmra.mxu2 %vm470_vm7, %v3477_v44  ;;  %v1902_v15 = vsel %vm470_vm7, %v3477_v44, 0.0 }
 0xa7e   :  { %3478 = vpow2.f32 %v1879_v0  ;;  %1903 = vadd.xlane.f32.xlu1 %v1902_v15 }
 0xa81   :  { %v1838_v32 = vpop.xlane.xlu1 %1837 }
 0xa82   :  { %v1866_v30 = vsub.f32 %v4776_v8, %v1838_v32 }
 0xa84   :  { %v3479_v9 = vpop.eup %3478  ;;  %v1881_v12 = vmul.f32 1.442695, %v1866_v30 }
 0xa85   :  { %3184 = vmatmul.msk.f32.gmra.mxu2 %vm470_vm7, %v3479_v9 }
 0xa86   :  { %3480 = vpow2.f32 %v1881_v12 }
 0xa89   :  { %v1841_v50 = vpop.xlane.xlu1 %1840 }
 0xa8a   :  { %v1867_v34 = vsub.f32 %v4781_v4, %v1841_v50 }
 0xa8c   :  { %v3481_v60 = vpop.eup %3480  ;;  %v1883_v45 = vmul.f32 1.442695, %v1867_v34 }
 0xa8d   :  { %3185 = vmatmul.msk.f32.gmra.mxu2 %vm470_vm7, %v3481_v60  ;;  %v1908_v61 = vsel %vm470_vm7, %v3481_v60, 0.0 }
 0xa8e   :  { %3482 = vpow2.f32 %v1883_v45  ;;  %1909 = vadd.xlane.f32.xlu1 %v1908_v61 }
 0xa90   :  { %v2199_v33 = vpop.xlane.xlu2 %2198 }
 0xa91   :  { %v1844_v3 = vpop.xlane.xlu0 %1843  ;;  %v2233_v4 = vsub.f32 %v4786_v41, %v2199_v33 }
 0xa92   :  { %v1868_v8 = vsub.f32 %v4789_v53, %v1844_v3  ;;  %v1905_v3 = vsel %vm470_vm7, %v3479_v9, 0.0 }
 0xa93   :  { %v2245_v29 = vmul.f32 1.442695, %v2233_v4 }
 0xa94   :  { %v3483_v26 = vpop.eup %3482  ;;  %v1885_v24 = vmul.f32 1.442695, %v1868_v8 }
 0xa95   :  { %3186 = vmatmul.msk.f32.gmra.mxu2 %vm470_vm7, %v3483_v26  ;;  %v1911_v21 = vsel %vm470_vm7, %v3483_v26, 0.0 }
 0xa96   :  { %3484 = vpow2.f32 %v1885_v24  ;;  %1912 = vadd.xlane.f32.xlu0 %v1911_v21 }
 0xa98   :  { %v2202_v28 = vpop.xlane.xlu2 %2201 }
 0xa99   :  { %v1847_v52 = vpop.xlane.xlu0 %1846  ;;  %v2234_v53 = vsub.f32 %v4796_v27, %v2202_v28 }
 0xa9a   :  { %v1869_v57 = vsub.f32 %v4799_v10, %v1847_v52 }
 0xa9b   :  { %v2247_v12 = vmul.f32 1.442695, %v2234_v53 }
 0xa9c   :  { %v4896_v56 = vpop.eup %3484  ;;  %v1887_v37 = vmul.f32 1.442695, %v1869_v57 }
 0xa9d   :  { %3187 = vmatmul.msk.f32.gmra.mxu2 %vm470_vm7, %v4896_v56 }
 0xa9e   :  { %3486 = vpow2.f32 %v1887_v37 }
 0xa9f   :  { %3488 = vpow2.f32 %v2245_v29 }
 0xaa0   :  { %v2205_v44 = vpop.xlane.xlu2 %2204 }
 0xaa1   :  { %v1850_v0 = vpop.xlane.xlu0 %1849  ;;  %v3305_v15 = vpop.permute.xlu1 %3304  ;;  %v2235_v27 = vsub.f32 %v4806_v17, %v2205_v44 }
 0xaa2   :  { %v1870_v41 = vsub.f32 %v4809_v43, %v1850_v0  ;;  %v3306_v32 = vunpack.i.l.bf16 %v3305_v15  ;;  %v3307_v50 = vunpack.i.h.bf16 %v3305_v15 }
 0xaa3   :  { %v2249_v61 = vmul.f32 1.442695, %v2235_v27 }
 0xaa4   :  { %v3487_v30 = vpop.eup %3486  ;;  %v1889_v10 = vmul.f32 1.442695, %v1870_v41  ;;  %2364 = vmatpush.msrb.mxu1 %v3306_v32 }
 0xaa5   :  { %3188 = vmatmul.msk.f32.gmra.mxu2 %vm470_vm7, %v3487_v30  ;;  %v1917_v34 = vsel %vm470_vm7, %v3487_v30, 0.0  ;;  %v4904_v60 = vpop.eup %3488 }
 0xaa6   :  { %3490 = vpow2.f32 %v1889_v10  ;;  %1918 = vadd.xlane.f32.xlu0 %v1917_v34  ;;  %2365 = vmatpush.msrb.mxu1 %v3307_v50 }
 0xaa7   :  { %3209 = vmatmul.msk.f32.vlgmr.msrb.gmra.mxu1 %vm470_vm7, %v4904_v60  ;;  %3492 = vpow2.f32 %v2247_v12 }
 0xaa8   :  { %v2208_v43 = vpop.xlane.xlu2 %2207  ;;  %3494 = vpow2.f32 %v2249_v61 }
 0xaa9   :  { %v2236_v26 = vsub.f32 %v4820_v22, %v2208_v43  ;;  %v1914_v43 = vsel %vm470_vm7, %v4896_v56, 0.0  ;;  %v2269_v56 = vsel %vm470_vm7, %v4904_v60, 0.0 }
 0xaab   :  { %v2251_v24 = vmul.f32 1.442695, %v2236_v26 }
 0xaac   :  { %v3491_v45 = vpop.eup %3490 }
 0xaad   :  { %3189 = vmatmul.msk.f32.gmra.mxu2 %vm470_vm7, %v3491_v45  ;;  %v1920_v33 = vsel %vm470_vm7, %v3491_v45, 0.0  ;;  %v4912_v8 = vpop.eup %3492  ;;  %3496 = vpow2.f32 %v2251_v24 }
 0xaae   :  { %1921 = vadd.xlane.f32.xlu2 %v1920_v33  ;;  %1906 = vadd.xlane.f32.xlu0 %v1905_v3  ;;  %v4917_v21 = vpop.eup %3494 }
 0xaaf   :  { %3210 = vmatmul.msk.f32.gmra.mxu1 %vm470_vm7, %v4912_v8 }
 0xab0   :  { %v2211_v17 = vpop.xlane.xlu2 %2210 }
 0xab1   :  { %v2237_v9 = vsub.f32 %v4825_v20, %v2211_v17 }
 0xab3   :  { %v2253_v29 = vmul.f32 1.442695, %v2237_v9  ;;  %v4923_v37 = vpop.eup %3496 }
 0xab7   :  { %3211 = vmatmul.msk.f32.gmra.mxu1 %vm470_vm7, %v4917_v21 }
 0xab8   :  { %v2214_v4 = vpop.xlane.xlu0 %2213  ;;  %v1856_v28 = vpop.xlane.xlu2 %1855 }
 0xab9   :  { %v1872_v52 = vsub.f32 %v4830_v18, %v1856_v28  ;;  %v2238_v22 = vsub.f32 %v4833_v16, %v2214_v4 }
 0xabb   :  { %v1893_v57 = vmul.f32 1.442695, %v1872_v52  ;;  %v2255_v41 = vmul.f32 1.442695, %v2238_v22 }
 0xabd   :  { %3498 = vpow2.f32 %v1893_v57 }
 0xabe   :  { %3500 = vpow2.f32 %v2253_v29  ;;  %v2272_v29 = vsel %vm470_vm7, %v4912_v8, 0.0 }
 0xabf   :  { %3212 = vmatmul.msk.f32.gmra.mxu1 %vm470_vm7, %v4923_v37 }
 0xac0   :  { %v2217_v53 = vpop.xlane.xlu0 %2216  ;;  %v1859_v44 = vpop.xlane.xlu2 %1858 }
 0xac1   :  { %v2239_v0 = vsub.f32 %v4843_v1, %v2217_v53  ;;  %v1873_v61 = vsub.f32 %v4840_v47, %v1859_v44 }
 0xac3   :  { %v2257_v20 = vmul.f32 1.442695, %v2239_v0  ;;  %v3499_v15 = vpop.eup %3498  ;;  %v1895_v3 = vmul.f32 1.442695, %v1873_v61 }
 0xac4   :  { %v1926_v18 = vsel %vm470_vm7, %v3499_v15, 0.0  ;;  %v4930_v32 = vpop.eup %3500 }
 0xac5   :  { %3502 = vpow2.f32 %v2257_v20  ;;  %1927 = vadd.xlane.f32.xlu2 %v1926_v18 }
 0xac6   :  { %3504 = vpow2.f32 %v2255_v41  ;;  %v2278_v41 = vsel %vm470_vm7, %v4923_v37, 0.0 }
 0xac7   :  { %3213 = vmatmul.msk.f32.gmra.mxu1 %vm470_vm7, %v4930_v32 }
 0xac8   :  { %v1862_v30 = vpop.xlane.xlu2 %1861  ;;  %v2220_v10 = vpop.xlane.xlu0 %2219 }
 0xac9   :  { %v1874_v16 = vsub.f32 %v4850_v49, %v1862_v30  ;;  %v2240_v49 = vsub.f32 %v4853_v40, %v2220_v10  ;;  %v2281_v30 = vsel %vm470_vm7, %v4930_v32, 0.0 }
 0xacb   :  { %v3503_v12 = vpop.eup %3502  ;;  %v1897_v50 = vmul.f32 1.442695, %v1874_v16 }
 0xacc   :  { %v1853_v1 = vpop.xlane.xlu1 %1852  ;;  %v2287_v34 = vsel %vm470_vm7, %v3503_v12, 0.0  ;;  %v4939_v45 = vpop.eup %3504 }
 0xacd   :  { %v1871_v27 = vsub.f32 %v4856_v14, %v1853_v1  ;;  %2288 = vadd.xlane.f32.xlu0 %v2287_v34  ;;  %3506 = vpow2.f32 %v1897_v50  ;;  %1915 = vadd.xlane.f32.xlu2 %v1914_v43  ;;  %v2259_v14 = vmul.f32 1.442695, %v2240_v49  ;;  %v2284_v10 = vsel %vm470_vm7, %v4939_v45, 0.0 }
 0xacf   :  { %v1891_v33 = vmul.f32 1.442695, %v1871_v27  ;;  %3214 = vmatmul.msk.f32.gmra.mxu1 %vm470_vm7, %v4939_v45 }
 0xad0   :  { %v2223_v17 = vpop.xlane.xlu0 %2222 }
 0xad1   :  { %3508 = vpow2.f32 %v1891_v33  ;;  %v2241_v47 = vsub.f32 %v4865_v35, %v2223_v17 }
 0xad2   :  { %3510 = vpow2.f32 %v1895_v3 }
 0xad3   :  { %v3507_v26 = vpop.eup %3506  ;;  %3512 = vpow2.f32 %v2259_v14  ;;  %v2261_v52 = vmul.f32 1.442695, %v2241_v47 }
 0xad4   :  { %v1932_v24 = vsel %vm470_vm7, %v3507_v26, 0.0 }
 0xad5   :  { %2270 = vadd.xlane.f32.xlu2 %v2269_v56  ;;  %1933 = vadd.xlane.f32.xlu0 %v1932_v24 }
 0xad7   :  { %v3509_v9 = vpop.eup %3508  ;;  %3215 = vmatmul.msk.f32.gmra.mxu1 %vm470_vm7, %v3503_v12  ;;  %v2275_v12 = vsel %vm470_vm7, %v4917_v21, 0.0 }
 0xad8   :  { %v2226_v40 = vpop.xlane.xlu2 %2225  ;;  %3190 = vmatmul.msk.f32.gmra.mxu2 %vm470_vm7, %v3509_v9  ;;  %v1923_v4 = vsel %vm470_vm7, %v3509_v9, 0.0  ;;  %v3511_v57 = vpop.eup %3510 }
 0xad9   :  { %v2242_v28 = vsub.f32 %v4870_v38, %v2226_v40  ;;  %1924 = vadd.xlane.f32.xlu1 %v1923_v4  ;;  %v3513_v22 = vpop.eup %3512  ;;  %v1929_v53 = vsel %vm470_vm7, %v3511_v57, 0.0  ;;  %v3224_v4 = vld [vmem:[%s5322_s3 + $0x38] sm:$0xff] }
 0xada   :  { %v2290_v32 = vsel %vm470_vm7, %v3513_v22, 0.0  ;;  %2483 = vmatpush.msrb.mxu0 %v3224_v4 }
 0xadb   :  { %v2263_v60 = vmul.f32 1.442695, %v2242_v28  ;;  %v3223_v28 = vld [vmem:[%s5322_s3 + $0x30] sm:$0xff] }
 0xadc   :  { %2484 = vmatpush.msrb.mxu0 %v3223_v28 }
 0xadd   :  { %3514 = vpow2.f32 %v2263_v60  ;;  %2273 = vadd.xlane.f32.xlu0 %v2272_v29 }
 0xade   :  { %3516 = vpow2.f32 %v2261_v52  ;;  %v3222_v52 = vld [vmem:[%s5322_s3 + $0x28] sm:$0xff] }
 0xadf   :  { %3216 = vmatmul.msk.f32.gmra.mxu1 %vm470_vm7, %v3513_v22  ;;  %2485 = vmatpush.msrb.mxu0 %v3222_v52  ;;  %v3221_v22 = vld [vmem:[%s5322_s3 + $0x20] sm:$0xff] }
 0xae0   :  { %v2229_v35 = vpop.xlane.xlu0 %2228  ;;  %3191 = vmatmul.msk.f32.gmra.mxu2 %vm470_vm7, %v3499_v15  ;;  %v2194_v15 = vpop.f32.mrf.mxu3 }
 0xae1   :  { %v2243_v38 = vsub.f32 %v4875_v19, %v2229_v35  ;;  %1930 = vadd.xlane.f32.xlu1 %v1929_v53  ;;  %v4965_v19 = vadd.f32 %v2194_v15, %v4040_v5  ;;  %2486 = vmatpush.msrb.mxu0 %v3221_v22 }
 0xae3   :  { %v3515_v44 = vpop.eup %3514  ;;  %v2265_v0 = vmul.f32 1.442695, %v2243_v38  ;;  %v2230_v37 = vsel %vm470_vm7, %v4965_v19, -inf }
 0xae4   :  { %v2296_v20 = vsel %vm470_vm7, %v3515_v44, 0.0  ;;  %v3517_v8 = vpop.eup %3516 }
 0xae5   :  { %3518 = vpow2.f32 %v2265_v0  ;;  %2297 = vadd.xlane.f32.xlu2 %v2296_v20  ;;  %v2293_v5 = vsel %vm470_vm7, %v3517_v8, 0.0 }
 0xae7   :  { %3217 = vmatmul.msk.f32.gmra.mxu1 %vm470_vm7, %v3517_v8 }
 0xae8   :  { %3192 = vmatmul.msk.f32.gmra.mxu2 %vm470_vm7, %v3511_v57 }
 0xae9   :  { %2279 = vadd.xlane.f32.xlu1 %v2278_v41  ;;  %v1901_v61 = vpop.xlane.xlu2 %1900 }
 0xaeb   :  { %v3519_v18 = vpop.eup %3518 }
 0xaec   :  { %v2299_v16 = vsel %vm470_vm7, %v3519_v18, 0.0 }
 0xaed   :  { %2282 = vadd.xlane.f32.xlu2 %v2281_v30  ;;  %2300 = vadd.xlane.f32.xlu0 %v2299_v16 }
 0xaef   :  { %3218 = vmatmul.msk.f32.gmra.mxu1 %vm470_vm7, %v3515_v44 }
 0xaf0   :  { %3193 = vmatmul.msk.f32.gmra.mxu2 %vm470_vm7, %v3507_v26 }
 0xaf1   :  { %2231 = vmax.xlane.f32.xlu1 %v2230_v37  ;;  %v1904_v17 = vpop.xlane.xlu1 %1903 }
 0xaf5   :  { %2276 = vadd.xlane.f32.xlu2 %v2275_v12  ;;  %2294 = vadd.xlane.f32.xlu0 %v2293_v5 }
 0xaf7   :  { %3219 = vmatmul.msk.f32.gmra.mxu1 %vm470_vm7, %v3519_v18 }
 0xaf8   :  { %v1997_v50 = vpop.f32.mrf.mxu2 }
 0xaf9   :  { %2291 = vadd.xlane.f32.xlu1 %v2290_v32 }
 0xb00   :  { %v4981_v1 = vpop.f32.mrf.mxu2 }
 0xb01   :  { %2285 = vadd.xlane.f32.xlu1 %v2284_v10  ;;  %v1910_v47 = vpop.xlane.xlu1 %1909 }
 0xb02   :  { %3520 = vrcp.f32 %v1910_v47 }
 0xb03   :  { %3522 = vrcp.f32 %v1901_v61 }
 0xb08   :  { %v4983_v34 = vpop.f32.mrf.mxu2  ;;  %v3521_v15 = vpop.eup %3520 }
 0xb09   :  { %v1913_v33 = vpop.xlane.xlu0 %1912  ;;  %v3523_v30 = vpop.eup %3522 }
 0xb0a   :  { %v2045_v32 = vmul.f32 %v3523_v30, %v1997_v50 }
 0xb0c   :  { %v2057_v4 = vmul.f32 %v4650_v46, %v2045_v32 }
 0xb10   :  { %v2006_v21 = vpop.f32.mrf.mxu2 }
 0xb11   :  { %v2048_v16 = vmul.f32 %v3521_v15, %v2006_v21 }
 0xb13   :  { %v2060_v61 = vmul.f32 %v4672_v59, %v2048_v16 }
 0xb15   :  { %v2069_v22 = vadd.f32 %v2060_v61, %v2057_v4 }
 0xb18   :  { %v2009_v3 = vpop.f32.mrf.mxu2 }
 0xb19   :  { %v1919_v14 = vpop.xlane.xlu0 %1918 }
 0xb1a   :  { %3524 = vrcp.f32 %v1919_v14 }
 0xb1b   :  { %3526 = vrcp.f32 %v1913_v33 }
 0xb20   :  { %v4993_v24 = vpop.f32.mrf.mxu2  ;;  %v3525_v12 = vpop.eup %3524 }
 0xb21   :  { %v1922_v26 = vpop.xlane.xlu2 %1921  ;;  %v1907_v9 = vpop.xlane.xlu0 %1906 }
 0xb22   :  { %v3527_v14 = vpop.eup %3526 }
 0xb24   :  { %v4985_v27 = vpop.f32.mrf.mxu1 }
 0xb28   :  { %v2015_v57 = vpop.f32.mrf.mxu2 }
 0xb29   :  { %v2051_v10 = vmul.f32 %v3525_v12, %v2015_v57 }
 0xb2b   :  { %v2063_v28 = vmul.f32 %v4701_v31, %v2051_v10 }
 0xb2c   :  { %v4987_v43 = vpop.f32.mrf.mxu1 }
 0xb2d   :  { %v2072_v12 = vadd.f32 %v2069_v22, %v2063_v28 }
 0xb30   :  { %v2018_v44 = vpop.f32.mrf.mxu2 }
 0xb34   :  { %v4989_v49 = vpop.f32.mrf.mxu1 }
 0xb38   :  { %v1928_v56 = vpop.xlane.xlu2 %1927 }
 0xb39   :  { %3528 = vrcp.f32 %v1928_v56  ;;  %v2049_v56 = vmul.f32 %v3527_v14, %v2009_v3 }
 0xb3a   :  { %3530 = vrcp.f32 %v1904_v17 }
 0xb3b   :  { %3532 = vrcp.f32 %v1922_v26  ;;  %v2061_v3 = vmul.f32 %v4682_v48, %v2049_v56 }
 0xb3c   :  { %v4991_v45 = vpop.f32.mrf.mxu1 }
 0xb3f   :  { %v3529_v52 = vpop.eup %3528 }
 0xb40   :  { %v1916_v60 = vpop.xlane.xlu2 %1915  ;;  %v5006_v29 = vpop.xlane.xlu0 %2288 }
 0xb41   :  { %3534 = vrcp.f32 %v1916_v60  ;;  %v3531_v33 = vpop.eup %3530 }
 0xb42   :  { %3536 = vrcp.f32 %v1907_v9  ;;  %v3533_v26 = vpop.eup %3532  ;;  %v2046_v16 = vmul.f32 %v3531_v33, %v4981_v1 }
 0xb43   :  { %v2052_v32 = vmul.f32 %v3533_v26, %v2018_v44 }
 0xb44   :  { %v4995_v40 = vpop.f32.mrf.mxu1  ;;  %v2058_v4 = vmul.f32 %v4657_v13, %v2046_v16 }
 0xb47   :  { %v3535_v61 = vpop.eup %3534 }
 0xb48   :  { %v2271_v38 = vpop.xlane.xlu2 %2270  ;;  %v5013_v0 = vpop.xlane.xlu0 %1933  ;;  %v2050_v28 = vmul.f32 %v3535_v61, %v4993_v24 }
 0xb4c   :  { %v1925_v35 = vpop.xlane.xlu1 %1924  ;;  %v5011_v53 = vpop.f32.mrf.mxu1 }
 0xb50   :  { %v2274_v5 = vpop.xlane.xlu0 %2273 }
 0xb54   :  { %v1931_v20 = vpop.xlane.xlu1 %1930  ;;  %v5015_v8 = vpop.f32.mrf.mxu1 }
 0xb55   :  { %3538 = vrcp.f32 %v1931_v20  ;;  %v3537_v20 = vpop.eup %3536 }
 0xb56   :  { %3540 = vrcp.f32 %v1925_v35  ;;  %v2070_v35 = vadd.f32 %v2061_v3, %v2058_v4  ;;  %v2047_v33 = vmul.f32 %v3537_v20, %v4983_v34 }
 0xb58   :  { %v5017_v41 = vpop.xlane.xlu2 %2297 }
 0xb5b   :  { %v2021_v18 = vpop.f32.mrf.mxu2  ;;  %v3539_v1 = vpop.eup %3538 }
 0xb5c   :  { %v2280_v37 = vpop.xlane.xlu1 %2279  ;;  %v5019_v47 = vpop.f32.mrf.mxu1 }
 0xb5d   :  { %3542 = vrcp.f32 %v2280_v37 }
 0xb60   :  { %v2283_v17 = vpop.xlane.xlu2 %2282  ;;  %v5024_v15 = vpop.xlane.xlu0 %2300 }
 0xb63   :  { %v2024_v21 = vpop.f32.mrf.mxu2 }
 0xb64   :  { %v2054_v50 = vmul.f32 %v3529_v52, %v2024_v21  ;;  %v2232_v57 = vpop.xlane.xlu1 %2231  ;;  %v5030_v14 = vpop.f32.mrf.mxu1 }
 0xb65   :  { %v2244_v30 = vsub.f32 %v4965_v19, %v2232_v57  ;;  %v2064_v19 = vmul.f32 %v4710_v55, %v2052_v32  ;;  %v3541_v21 = vpop.eup %3540 }
 0xb66   :  { %v2066_v60 = vmul.f32 %v4728_v54, %v2054_v50  ;;  %v3543_v13 = vpop.eup %3542 }
 0xb67   :  { %v2267_v10 = vmul.f32 1.442695, %v2244_v30  ;;  %v2073_v22 = vadd.f32 %v2070_v35, %v2064_v19 }
 0xb68   :  { %v2075_v9 = vadd.f32 %v2072_v12, %v2066_v60  ;;  %v2277_v56 = vpop.xlane.xlu2 %2276  ;;  %v2295_v24 = vpop.xlane.xlu0 %2294 }
 0xb69   :  { %3544 = vpow2.f32 %v2267_v10 }
 0xb6a   :  { %3546 = vrcp.f32 %v2271_v38  ;;  %3225 = vmatmul.msk.f32.vlgmr.msrb.gmra.mxu0 %vm138_vm1, %v2075_v9  ;;  %v2053_v38 = vmul.f32 %v3541_v21, %v2021_v18 }
 0xb6b   :  { %v2027_v44 = vpop.f32.mrf.mxu2  ;;  %3548 = vrcp.f32 %v5006_v29  ;;  %v2062_v29 = vmul.f32 %v4692_v58, %v2050_v28 }
 0xb6c   :  { %v2055_v37 = vmul.f32 %v3539_v1, %v2027_v44  ;;  %v2292_v52 = vpop.xlane.xlu1 %2291  ;;  %3550 = vrcp.f32 %v5013_v0  ;;  %v2418_v0 = vmul.f32 %v3543_v13, %v4991_v45  ;;  %v2065_v16 = vmul.f32 %v4719_v2, %v2053_v38  ;;  %v2394_v12 = vpop.f32.mrf.mxu1 }
 0xb6d   :  { %3552 = vrcp.f32 %v2274_v5  ;;  %v2059_v5 = vmul.f32 %v4664_v36, %v2047_v33 }
 0xb6e   :  { %v2067_v50 = vmul.f32 %v4737_v25, %v2055_v37  ;;  %3554 = vrcp.f32 %v5017_v41  ;;  %v2430_v61 = vmul.f32 %v4672_v59, %v2418_v0 }
 0xb6f   :  { %v3545_v57 = vpop.eup %3544  ;;  %3556 = vrcp.f32 %v2283_v17  ;;  %v2071_v10 = vadd.f32 %v2062_v29, %v2059_v5 }
 0xb70   :  { %v3547_v26 = vpop.eup %3546  ;;  %v2076_v30 = vadd.f32 %v2073_v22, %v2067_v50  ;;  %3220 = vmatmul.msk.f32.gmra.mxu1 %vm470_vm7, %v3545_v57  ;;  %v2302_v34 = vsel %vm470_vm7, %v3545_v57, 0.0  ;;  %3558 = vrcp.f32 %v2277_v56 }
 0xb71   :  { %2303 = vadd.xlane.f32.xlu2 %v2302_v34  ;;  %v3549_v18 = vpop.eup %3548  ;;  %3560 = vrcp.f32 %v2295_v24  ;;  %v2415_v17 = vmul.f32 %v3547_v26, %v4985_v27  ;;  %v2074_v4 = vadd.f32 %v2071_v10, %v2065_v16 }
 0xb72   :  { %3226 = vmatmul.msk.f32.gmra.mxu0 %vm138_vm1, %v2076_v30  ;;  %v3551_v41 = vpop.eup %3550  ;;  %3562 = vrcp.f32 %v2292_v52  ;;  %v2421_v27 = vmul.f32 %v3549_v18, %v5015_v8  ;;  %v3319_v18 = vld [vmem:[%s5325_s6 + $0xad] ss:$0 sm:$0xff] }
 0xb73   :  { %v2030_v32 = vpop.f32.mrf.mxu2  ;;  %v3553_v60 = vpop.eup %3552  ;;  %v2427_v44 = vmul.f32 %v4650_v46, %v2415_v17 }
 0xb74   :  { %v2056_v3 = vmul.f32 %v3551_v41, %v2030_v32  ;;  %v2286_v45 = vpop.xlane.xlu1 %2285  ;;  %v3555_v9 = vpop.eup %3554  ;;  %v2416_v22 = vmul.f32 %v3553_v60, %v4987_v43  ;;  %v2433_v46 = vmul.f32 %v4701_v31, %v2421_v27  ;;  %v3616_v31 = vld [vmem:[%s5325_s6 + $0x38] sm:$0xff] }
 0xb75   :  { %3564 = vrcp.f32 %v2286_v45  ;;  %v3557_v20 = vpop.eup %3556  ;;  %v2424_v35 = vmul.f32 %v3555_v9, %v2394_v12  ;;  %v2439_v21 = vadd.f32 %v2430_v61, %v2427_v44  ;;  %v2397_v57 = vpop.f32.mrf.mxu1 }
 0xb76   :  { %v2068_v19 = vmul.f32 %v4746_v11, %v2056_v3  ;;  %v3559_v1 = vpop.eup %3558  ;;  %3566 = vrcp.f32 %v5024_v15  ;;  %v2419_v33 = vmul.f32 %v3557_v20, %v4995_v40 }
 0xb77   :  { %v3561_v28 = vpop.eup %3560  ;;  %v2417_v59 = vmul.f32 %v3559_v1, %v4989_v49  ;;  %v2436_v8 = vmul.f32 %v4728_v54, %v2424_v35  ;;  %v2442_v50 = vadd.f32 %v2439_v21, %v2433_v46  ;;  %v2428_v54 = vmul.f32 %v3616_v31, %v2416_v22 }
 0xb78   :  { %v2077_v37 = vadd.f32 %v2074_v4, %v2068_v19  ;;  %v3563_v52 = vpop.eup %3562  ;;  %v2423_v38 = vmul.f32 %v3561_v28, %v5030_v14  ;;  %v2431_v40 = vmul.f32 %v4682_v48, %v2419_v33 }
 0xb79   :  { %v2422_v56 = vmul.f32 %v3563_v52, %v5019_v47  ;;  %v2429_v49 = vmul.f32 %v4664_v36, %v2417_v59  ;;  %v2445_v43 = vadd.f32 %v2442_v50, %v2436_v8 }
 0xb7a   :  { %3227 = vmatmul.msk.f32.gmra.mxu0 %vm138_vm1, %v2077_v37  ;;  %v2440_v30 = vadd.f32 %v2431_v40, %v2428_v54 }
 0xb7b   :  { %v3565_v13 = vpop.eup %3564  ;;  %v2434_v47 = vmul.f32 %v4710_v55, %v2422_v56 }
 0xb7c   :  { %v2420_v15 = vmul.f32 %v3565_v13, %v5011_v53  ;;  %v3567_v26 = vpop.eup %3566  ;;  %v2435_v53 = vmul.f32 %v4719_v2, %v2423_v38 }
 0xb7d   :  { %v2425_v14 = vmul.f32 %v3567_v26, %v2397_v57 }
 0xb7e   :  { %v2432_v24 = vmul.f32 %v4692_v58, %v2420_v15  ;;  %v2443_v58 = vadd.f32 %v2440_v30, %v2434_v47  ;;  %v3233_v30 = vld [vmem:[%s5323_s4 + $0x30] sm:$0xff] }
 0xb7f   :  { %v2437_v36 = vmul.f32 %v4737_v25, %v2425_v14 }
 0xb80   :  { %v2441_v29 = vadd.f32 %v2432_v24, %v2429_v49 }
 0xb81   :  { %v2446_v34 = vadd.f32 %v2443_v58, %v2437_v36  ;;  %v3231_v36 = vld [vmem:[%s5323_s4 + $0x20] sm:$0xff] }
 0xb82   :  { %3228 = vmatmul.msk.f32.gmra.mxu0 %vm138_vm1, %v2445_v43  ;;  %v2444_v48 = vadd.f32 %v2441_v29, %v2435_v53  ;;  %v3234_v29 = vld [vmem:[%s5323_s4 + $0x38] sm:$0xff] }
 0xb83   :  { %2702 = vmatpush.msra.mxu2 %v3234_v29 }
 0xb85   :  { %2703 = vmatpush.msra.mxu2 %v3233_v30 }
 0xb8a   :  { %3229 = vmatmul.msk.f32.gmra.mxu0 %vm138_vm1, %v2446_v34 }
 0xbe4   :  { %v2304_v0 = vpop.xlane.xlu2 %2303 }
 0xbe5   :  { %3568 = vrcp.f32 %v2304_v0 }
 0xbe7   :  { %v2488_v55 = vpop.f32.mrf.mxu0 }
 0xbe8   :  { %v2506_v2 = vadd.f32 %v2488_v55, %v4502_v39 }
 0xbea   :  { %v5078_v5 = vadd.f32 %v3319_v18, %v2506_v2 }
 0xbeb   :  { %v3569_v41 = vpop.eup %3568 }
 0xbec   :  { %v2519_v16 = vsel %vm138_vm1, %v5078_v5, 0.0 }
 0xbed   :  { %2520 = vadd.xlane.f32.xlu1 %v2519_v16  ;;  %v2400_v25 = vpop.f32.mrf.mxu1 }
 0xbee   :  { %v2426_v17 = vmul.f32 %v3569_v41, %v2400_v25 }
 0xbef   :  { %v2491_v12 = vpop.f32.mrf.mxu0 }
 0xbf0   :  { %v2438_v32 = vmul.f32 %v4746_v11, %v2426_v17  ;;  %v2507_v60 = vadd.f32 %v2491_v12, %v4507_v23 }
 0xbf2   :  { %v2447_v10 = vadd.f32 %v2444_v48, %v2438_v32  ;;  %v5084_v3 = vadd.f32 %v3319_v18, %v2507_v60  ;;  %v3232_v48 = vld [vmem:[%s5323_s4 + $0x28] sm:$0xff] }
 0xbf3   :  { %2704 = vmatpush.msra.mxu2 %v3232_v48 }
 0xbf4   :  { %3230 = vmatmul.msk.f32.gmra.mxu0 %vm138_vm1, %v2447_v10  ;;  %v2522_v39 = vsel %vm138_vm1, %v5084_v3, 0.0 }
 0xbf5   :  { %2523 = vadd.xlane.f32.xlu0 %v2522_v39  ;;  %2705 = vmatpush.msra.mxu2 %v3231_v36 }
 0xbf7   :  { %v2494_v45 = vpop.f32.mrf.mxu0 }
 0xbf8   :  { %v2508_v9 = vadd.f32 %v2494_v45, %v4512_v51 }
 0xbfa   :  { %v2515_v61 = vadd.f32 %v3319_v18, %v2508_v9 }
 0xbfc   :  { %v2525_v20 = vsel %vm138_vm1, %v2515_v61, 0.0 }
 0xbfd   :  { %2526 = vadd.xlane.f32.xlu2 %v2525_v20 }
 0xbff   :  { %v2497_v4 = vpop.f32.mrf.mxu0 }
 0xc00   :  { %v2509_v11 = vadd.f32 %v2497_v4, %v4517_v6 }
 0xc02   :  { %v5092_v23 = vadd.f32 %v3319_v18, %v2509_v11  ;;  %v5160_v11 = vld [vmem:[%s5325_s6 + $0xaf] ss:$0 sm:$0xff] }
 0xc04   :  { %v2528_v19 = vsel %vm138_vm1, %v5092_v23, 0.0 }
 0xc05   :  { %2529 = vadd.xlane.f32.xlu1 %v2528_v19 }
 0xc07   :  { %v2500_v1 = vpop.f32.mrf.mxu0 }
 0xc08   :  { %v2510_v44 = vadd.f32 %v2500_v1, %v4522_v62 }
 0xc0a   :  { %v5097_v27 = vadd.f32 %v3319_v18, %v2510_v44 }
 0xc0c   :  { %v2531_v51 = vsel %vm138_vm1, %v5097_v27, 0.0 }
 0xc0d   :  { %2532 = vadd.xlane.f32.xlu0 %v2531_v51 }
 0xc60   :  { %v2521_v35 = vpop.xlane.xlu1 %2520 }
 0xc61   :  { %v2537_v28 = vmul.f32 %v2521_v35, %v3795_v42 }
 0xc63   :  { %v5103_v6 = vsub.f32 %v5078_v5, %v2537_v28 }
 0xc65   :  { %v2549_v37 = vmul.f32 %v5103_v6, %v5103_v6 }
 0xc67   :  { %v2555_v52 = vsel %vm138_vm1, %v2549_v37, 0.0 }
 0xc68   :  { %v2524_v21 = vpop.xlane.xlu0 %2523  ;;  %2556 = vadd.xlane.f32.xlu2 %v2555_v52 }
 0xc69   :  { %v2538_v62 = vmul.f32 %v2524_v21, %v3795_v42 }
 0xc6b   :  { %v5110_v33 = vsub.f32 %v5084_v3, %v2538_v62 }
 0xc6d   :  { %v2550_v59 = vmul.f32 %v5110_v33, %v5110_v33 }
 0xc6f   :  { %v2558_v13 = vsel %vm138_vm1, %v2550_v59, 0.0 }
 0xc70   :  { %v2527_v22 = vpop.xlane.xlu2 %2526  ;;  %2559 = vadd.xlane.f32.xlu1 %v2558_v13 }
 0xc71   :  { %v2539_v46 = vmul.f32 %v2527_v22, %v3795_v42  ;;  %v2503_v38 = vpop.f32.mrf.mxu0 }
 0xc72   :  { %v2511_v15 = vadd.f32 %v2503_v38, %v4527_v7 }
 0xc73   :  { %v5116_v8 = vsub.f32 %v2515_v61, %v2539_v46  ;;  %v5155_v61 = vld [vmem:[%s5325_s6 + $0xae] ss:$0 sm:$0xff] }
 0xc74   :  { %v2518_v49 = vadd.f32 %v3319_v18, %v2511_v15 }
 0xc75   :  { %v2551_v56 = vmul.f32 %v5116_v8, %v5116_v8 }
 0xc76   :  { %v2534_v54 = vsel %vm138_vm1, %v2518_v49, 0.0 }
 0xc77   :  { %v2561_v50 = vsel %vm138_vm1, %v2551_v56, 0.0 }
 0xc78   :  { %v2530_v57 = vpop.xlane.xlu1 %2529  ;;  %2562 = vadd.xlane.f32.xlu0 %v2561_v50 }
 0xc79   :  { %v2540_v40 = vmul.f32 %v2530_v57, %v3795_v42 }
 0xc7b   :  { %v5124_v24 = vsub.f32 %v5092_v23, %v2540_v40 }
 0xc7d   :  { %v2552_v26 = vmul.f32 %v5124_v24, %v5124_v24 }
 0xc7f   :  { %v2564_v31 = vsel %vm138_vm1, %v2552_v26, 0.0 }
 0xc80   :  { %2565 = vadd.xlane.f32.xlu2 %v2564_v31  ;;  %v2533_v43 = vpop.xlane.xlu0 %2532  ;;  %2535 = vadd.xlane.f32.xlu0 %v2534_v54 }
 0xc81   :  { %v2541_v7 = vmul.f32 %v2533_v43, %v3795_v42 }
 0xc83   :  { %v5132_v14 = vsub.f32 %v5097_v27, %v2541_v7 }
 0xc85   :  { %v2553_v47 = vmul.f32 %v5132_v14, %v5132_v14 }
 0xc87   :  { %v2567_v53 = vsel %vm138_vm1, %v2553_v47, 0.0 }
 0xc88   :  { %2568 = vadd.xlane.f32.xlu1 %v2567_v53 }
 0xcdb   :  { %v2557_v58 = vpop.xlane.xlu2 %2556 }
 0xcdc   :  { %v2573_v34 = vmul.f32 %v2557_v58, %v3795_v42 }
 0xcde   :  { %v2579_v0 = vadd.f32 1e-12, %v2573_v34 }
 0xce0   :  { %3570 = vrsqrt.f32 %v2579_v0  ;;  %vm2591_vm3 = vweird.f32 %v2579_v0 }
 0xce3   :  { %v2560_v18 = vpop.xlane.xlu1 %2559 }
 0xce4   :  { %v2574_v55 = vmul.f32 %v2560_v18, %v3795_v42 }
 0xce6   :  { %v3571_v2 = vpop.eup %3570  ;;  %v2580_v16 = vadd.f32 1e-12, %v2574_v55 }
 0xce7   :  { %v2586_v41 = vmul.f32 %v3571_v2, %v2579_v0  ;;  %vm2592_vm7 = vweird.f32 %v3571_v2 }
 0xce8   :  { %3572 = vrsqrt.f32 %v2580_v16  ;;  %vm2593_vm4 = vmor %vm2591_vm3, %vm2592_vm7  ;;  %vm2601_vm6 = vweird.f32 %v2580_v16 }
 0xce9   :  { %v2587_v25 = vmul.f32 %v3571_v2, %v2586_v41 }
 0xceb   :  { %v2588_v17 = vmul.f32 0.5, %v2587_v25  ;;  %v2563_v12 = vpop.xlane.xlu0 %2562 }
 0xcec   :  { %v2575_v32 = vmul.f32 %v2563_v12, %v3795_v42 }
 0xced   :  { %v2589_v60 = vsub.f32 1.5, %v2588_v17 }
 0xcee   :  { %v3573_v10 = vpop.eup %3572  ;;  %v2581_v39 = vadd.f32 1e-12, %v2575_v32 }
 0xcef   :  { %v2590_v45 = vmul.f32 %v3571_v2, %v2589_v60  ;;  %v2596_v9 = vmul.f32 %v3573_v10, %v2580_v16  ;;  %vm2602_vm5 = vweird.f32 %v3573_v10 }
 0xcf0   :  { %3574 = vrsqrt.f32 %v2581_v39  ;;  %vm2603_vm8 = vmor %vm2601_vm6, %vm2602_vm5  ;;  %vm2611_vm10 = vweird.f32 %v2581_v39 }
 0xcf1   :  { %v2594_v20 = vsel %vm2593_vm4, %v3571_v2, %v2590_v45  ;;  %v2597_v4 = vmul.f32 %v3573_v10, %v2596_v9  ;;  %v3247_v9 = vld [vmem:[%s5324_s5 + $0x70] sm:$0xff] }
 0xcf2   :  { %v2645_v19 = vmul.f32 %v2594_v20, %v5103_v6  ;;  %v3245_v20 = vld [vmem:[%s5324_s5 + $0x60] sm:$0xff] }
 0xcf3   :  { %v2598_v1 = vmul.f32 0.5, %v2597_v4  ;;  %v2566_v44 = vpop.xlane.xlu2 %2565  ;;  %v2536_v51 = vpop.xlane.xlu0 %2535 }
 0xcf4   :  { %v2652_v35 = vmul.f32 %v5155_v61, %v2645_v19  ;;  %v2576_v28 = vmul.f32 %v2566_v44, %v3795_v42  ;;  %v2542_v37 = vmul.f32 %v2536_v51, %v3795_v42  ;;  %v3243_v51 = vld [vmem:[%s5324_s5 + $0x50] sm:$0xff] }
 0xcf5   :  { %v2599_v52 = vsub.f32 1.5, %v2598_v1  ;;  %v3244_v1 = vld [vmem:[%s5324_s5 + $0x58] sm:$0xff] }
 0xcf6   :  { %v3575_v21 = vpop.eup %3574  ;;  %v2659_v62 = vadd.f32 %v5160_v11, %v2652_v35  ;;  %v2582_v59 = vadd.f32 1e-12, %v2576_v28  ;;  %v5167_v13 = vsub.f32 %v2518_v49, %v2542_v37  ;;  %v3242_v35 = vld [vmem:[%s5324_s5 + $0x48] sm:$0xff]  ;;  %v3241_v28 = vld [vmem:[%s5324_s5 + $0x40] sm:$0xff] }
 0xcf7   :  { %v2600_v22 = vmul.f32 %v3573_v10, %v2599_v52  ;;  %v2606_v6 = vmul.f32 %v3575_v21, %v2581_v39  ;;  %vm2612_vm9 = vweird.f32 %v3575_v21  ;;  %v5218_v37 = vld [vmem:[%s5327_s8 + $0x1] ss:$0 sm:$0xff] }
 0xcf8   :  { %3576 = vrsqrt.f32 %v2582_v59  ;;  %3235 = vmatmul.msk.f32.vlgmr.msra.gmra.mxu2 %vm138_vm1, %v2659_v62  ;;  %v2554_v46 = vmul.f32 %v5167_v13, %v5167_v13  ;;  %vm2613_vm11 = vmor %vm2611_vm10, %vm2612_vm9  ;;  %vm2621_vm14 = vweird.f32 %v2582_v59  ;;  %vm2964_vm9 = vcmask 23552  }
 0xcf9   :  { %v2604_v38 = vsel %vm2603_vm8, %v3573_v10, %v2600_v22  ;;  %v2607_v56 = vmul.f32 %v3575_v21, %v2606_v6  ;;  %vm2971_vm8 = vcmask 1042432  }
 0xcfa   :  { %v2646_v15 = vmul.f32 %v2604_v38, %v5110_v33  ;;  %v2570_v50 = vsel %vm138_vm1, %v2554_v46, 0.0 }
 0xcfb   :  { %v2608_v57 = vmul.f32 0.5, %v2607_v56  ;;  %v2569_v40 = vpop.xlane.xlu1 %2568  ;;  %2571 = vadd.xlane.f32.xlu2 %v2570_v50 }
 0xcfc   :  { %v2577_v49 = vmul.f32 %v2569_v40, %v3795_v42  ;;  %v2653_v26 = vmul.f32 %v5155_v61, %v2646_v15 }
 0xcfd   :  { %v2609_v31 = vsub.f32 1.5, %v2608_v57 }
 0xcfe   :  { %v3577_v54 = vpop.eup %3576  ;;  %v2583_v43 = vadd.f32 1e-12, %v2577_v49  ;;  %v2660_v7 = vadd.f32 %v5160_v11, %v2653_v26 }
 0xcff   :  { %v2610_v47 = vmul.f32 %v3575_v21, %v2609_v31  ;;  %v2616_v53 = vmul.f32 %v3577_v54, %v2582_v59  ;;  %vm2622_vm13 = vweird.f32 %v3577_v54 }
 0xd00   :  { %3578 = vrsqrt.f32 %v2583_v43  ;;  %3236 = vmatmul.msk.f32.gmra.mxu2 %vm138_vm1, %v2660_v7  ;;  %vm2623_vm15 = vmor %vm2621_vm14, %vm2622_vm13  ;;  %vm2631_vm2 = vweird.f32 %v2583_v43 }
 0xd01   :  { %v2614_v33 = vsel %vm2613_vm11, %v3575_v21, %v2610_v47  ;;  %v2617_v29 = vmul.f32 %v3577_v54, %v2616_v53 }
 0xd02   :  { %v2647_v30 = vmul.f32 %v2614_v33, %v5116_v8 }
 0xd03   :  { %v2618_v48 = vmul.f32 0.5, %v2617_v29 }
 0xd04   :  { %v2654_v36 = vmul.f32 %v5155_v61, %v2647_v30 }
 0xd05   :  { %v2619_v58 = vsub.f32 1.5, %v2618_v48 }
 0xd06   :  { %v3579_v34 = vpop.eup %3578  ;;  %v2661_v0 = vadd.f32 %v5160_v11, %v2654_v36 }
 0xd07   :  { %v2620_v18 = vmul.f32 %v3577_v54, %v2619_v58  ;;  %v2626_v55 = vmul.f32 %v3579_v34, %v2583_v43  ;;  %vm2632_vm0 = vweird.f32 %v3579_v34 }
 0xd08   :  { %3237 = vmatmul.msk.f32.gmra.mxu2 %vm138_vm1, %v2661_v0  ;;  %vm2633_vm7 = vmor %vm2631_vm2, %vm2632_vm0 }
 0xd09   :  { %v2624_v2 = vsel %vm2623_vm15, %v3577_v54, %v2620_v18  ;;  %v2627_v16 = vmul.f32 %v3579_v34, %v2626_v55 }
 0xd0a   :  { %v2648_v41 = vmul.f32 %v2624_v2, %v5124_v24  ;;  %v3248_v24 = vld [vmem:[%s5324_s5 + $0x78] sm:$0xff] }
 0xd0b   :  { %v2628_v25 = vmul.f32 0.5, %v2627_v16  ;;  %2814 = vmatpush.msra.mxu3 %v3248_v24 }
 0xd0c   :  { %v2655_v8 = vmul.f32 %v5155_v61, %v2648_v41 }
 0xd0d   :  { %v2629_v17 = vsub.f32 1.5, %v2628_v25  ;;  %2815 = vmatpush.msra.mxu3 %v3247_v9 }
 0xd0e   :  { %v2662_v12 = vadd.f32 %v5160_v11, %v2655_v8 }
 0xd0f   :  { %v2630_v32 = vmul.f32 %v3579_v34, %v2629_v17 }
 0xd10   :  { %3238 = vmatmul.msk.f32.gmra.mxu2 %vm138_vm1, %v2662_v12 }
 0xd11   :  { %v2634_v60 = vsel %vm2633_vm7, %v3579_v34, %v2630_v32 }
 0xd12   :  { %v2649_v10 = vmul.f32 %v2634_v60, %v5132_v14  ;;  %v3246_v14 = vld [vmem:[%s5324_s5 + $0x68] sm:$0xff] }
 0xd13   :  { %2816 = vmatpush.msra.mxu3 %v3246_v14 }
 0xd14   :  { %v2656_v39 = vmul.f32 %v5155_v61, %v2649_v10 }
 0xd15   :  { %2817 = vmatpush.msra.mxu3 %v3245_v20 }
 0xd16   :  { %v2663_v45 = vadd.f32 %v5160_v11, %v2656_v39 }
 0xd17   :  { %2818 = vmatpush.msra.mxu3 %v3244_v1 }
 0xd18   :  { %3239 = vmatmul.msk.f32.gmra.mxu2 %vm138_vm1, %v2663_v45 }
 0xd19   :  { %2819 = vmatpush.msra.mxu3 %v3243_v51 }
 0xd1b   :  { %2820 = vmatpush.msra.mxu3 %v3242_v35 }
 0xd1d   :  { %2821 = vmatpush.msra.mxu3 %v3241_v28 }
 0xd6e   :  { %v2572_v4 = vpop.xlane.xlu2 %2571 }
 0xd6f   :  { %v2578_v19 = vmul.f32 %v2572_v4, %v3795_v42 }
 0xd71   :  { %v2584_v44 = vadd.f32 1e-12, %v2578_v19 }
 0xd73   :  { %3580 = vrsqrt.f32 %v2584_v44  ;;  %vm2641_vm4 = vweird.f32 %v2584_v44 }
 0xd79   :  { %v3581_v52 = vpop.eup %3580 }
 0xd7a   :  { %v2636_v21 = vmul.f32 %v3581_v52, %v2584_v44  ;;  %vm2642_vm3 = vweird.f32 %v3581_v52 }
 0xd7b   :  { %v2707_v62 = vpop.f32.mrf.mxu2  ;;  %vm2643_vm5 = vmor %vm2641_vm4, %vm2642_vm3 }
 0xd7c   :  { %v2637_v59 = vmul.f32 %v3581_v52, %v2636_v21  ;;  %v2708_v22 = vadd.f32 %v5218_v37, %v2707_v62 }
 0xd7e   :  { %v2638_v6 = vmul.f32 0.5, %v2637_v59  ;;  %v2725_v46 = vmul.f32 %v2708_v22, %v2708_v22 }
 0xd80   :  { %v2639_v38 = vsub.f32 1.5, %v2638_v6  ;;  %v2731_v56 = vmul.f32 %v2725_v46, %v2708_v22 }
 0xd82   :  { %v2640_v15 = vmul.f32 %v3581_v52, %v2639_v38  ;;  %v2737_v50 = vmul.f32 0.044715, %v2731_v56 }
 0xd83   :  { %v2710_v57 = vpop.f32.mrf.mxu2 }
 0xd84   :  { %v2644_v40 = vsel %vm2643_vm5, %v3581_v52, %v2640_v15  ;;  %v2743_v49 = vadd.f32 %v2737_v50, %v2708_v22  ;;  %v2711_v26 = vadd.f32 %v5218_v37, %v2710_v57 }
 0xd85   :  { %v2650_v31 = vmul.f32 %v2644_v40, %v5167_v13 }
 0xd86   :  { %v2749_v54 = vmul.f32 0.7978846, %v2743_v49  ;;  %v2726_v43 = vmul.f32 %v2711_v26, %v2711_v26 }
 0xd87   :  { %v2657_v7 = vmul.f32 %v5155_v61, %v2650_v31 }
 0xd88   :  { %3582 = vtanh.f32 %v2749_v54  ;;  %v2732_v47 = vmul.f32 %v2726_v43, %v2711_v26 }
 0xd89   :  { %v2664_v53 = vadd.f32 %v5160_v11, %v2657_v7 }
 0xd8a   :  { %v2738_v33 = vmul.f32 0.044715, %v2732_v47 }
 0xd8b   :  { %v2713_v29 = vpop.f32.mrf.mxu2  ;;  %3240 = vmatmul.msk.f32.gmra.mxu2 %vm138_vm1, %v2664_v53 }
 0xd8c   :  { %v2744_v30 = vadd.f32 %v2738_v33, %v2711_v26  ;;  %v2714_v48 = vadd.f32 %v5218_v37, %v2713_v29 }
 0xd8e   :  { %v3583_v36 = vpop.eup %3582  ;;  %v2750_v58 = vmul.f32 0.7978846, %v2744_v30  ;;  %v2727_v34 = vmul.f32 %v2714_v48, %v2714_v48 }
 0xd8f   :  { %v2761_v0 = vadd.f32 1.0, %v3583_v36 }
 0xd90   :  { %3584 = vtanh.f32 %v2750_v58  ;;  %v2733_v13 = vmul.f32 %v2727_v34, %v2714_v48 }
 0xd91   :  { %v2767_v18 = vmul.f32 0.5, %v2761_v0 }
 0xd92   :  { %v2739_v55 = vmul.f32 0.044715, %v2733_v13 }
 0xd93   :  { %v2773_v61 = vmul.f32 %v2767_v18, %v2708_v22  ;;  %v2716_v2 = vpop.f32.mrf.mxu2 }
 0xd94   :  { %v2745_v16 = vadd.f32 %v2739_v55, %v2714_v48  ;;  %v2717_v11 = vadd.f32 %v5218_v37, %v2716_v2 }
 0xd95   :  { %3249 = vmatmul.msk.f32.vlgmr.msra.gmra.mxu3 %vm1429_vm12, %v2773_v61 }
 0xd96   :  { %v3585_v41 = vpop.eup %3584  ;;  %v2751_v25 = vmul.f32 0.7978846, %v2745_v16  ;;  %v2728_v8 = vmul.f32 %v2717_v11, %v2717_v11  ;;  %v2950_v16 = vld [vmem:[%s5329_s10] sm:$0x1] }
 0xd97   :  { %v2762_v17 = vadd.f32 1.0, %v3585_v41  ;;  %v3647_v41 = vmov 0.0  }
 0xd98   :  { %3586 = vtanh.f32 %v2751_v25  ;;  %v2734_v12 = vmul.f32 %v2728_v8, %v2717_v11 }
 0xd99   :  { %v2768_v32 = vmul.f32 0.5, %v2762_v17 }
 0xd9a   :  { %v2740_v60 = vmul.f32 0.044715, %v2734_v12 }
 0xd9b   :  { %v2719_v10 = vpop.f32.mrf.mxu2  ;;  %v2774_v39 = vmul.f32 %v2768_v32, %v2711_v26  ;;  %v3323_v26 = vld [vmem:[%s5325_s6 + $0xb0] ss:$0 sm:$0xff] }
 0xd9c   :  { %v2746_v45 = vadd.f32 %v2740_v60, %v2717_v11  ;;  %v2720_v24 = vadd.f32 %v5218_v37, %v2719_v10 }
 0xd9d   :  { %3250 = vmatmul.msk.f32.gmra.mxu3 %vm1429_vm12, %v2774_v39 }
 0xd9e   :  { %v3587_v9 = vpop.eup %3586  ;;  %v2752_v14 = vmul.f32 0.7978846, %v2746_v45  ;;  %v2729_v20 = vmul.f32 %v2720_v24, %v2720_v24 }
 0xd9f   :  { %v2763_v4 = vadd.f32 1.0, %v3587_v9 }
 0xda0   :  { %3588 = vtanh.f32 %v2752_v14  ;;  %v2735_v19 = vmul.f32 %v2729_v20, %v2720_v24  ;;  %v3005_v20 = vld [vmem:[%s5329_s10 + $0x1] sm:$0x1] }
 0xda1   :  { %v2769_v1 = vmul.f32 0.5, %v2763_v4  ;;  %v3325_v4 = vld [vmem:[%s5328_s9 + $0x1] ss:$0 sm:$0xff]  ;;  %vm3006_vm11 = vcmp.eq.s32.totalorder %v3005_v20, 0 }
 0xda2   :  { %v2741_v44 = vmul.f32 0.044715, %v2735_v19 }
 0xda3   :  { %v2775_v51 = vmul.f32 %v2769_v1, %v2714_v48  ;;  %v3261_v1 = vsel %vm3006_vm11, 1.0, %v3647_v41 }
 0xda4   :  { %v2747_v35 = vadd.f32 %v2741_v44, %v2720_v24 }
 0xda5   :  { %3251 = vmatmul.msk.f32.gmra.mxu3 %vm1429_vm12, %v2775_v51 }
 0xda6   :  { %v3589_v28 = vpop.eup %3588  ;;  %v2753_v52 = vmul.f32 0.7978846, %v2747_v35  ;;  %v3016_v35 = vperm.slane %v3261_v1, 0 }
 0xda7   :  { %v2764_v21 = vadd.f32 1.0, %v3589_v28 }
 0xda8   :  { %3590 = vtanh.f32 %v2753_v52 }
 0xda9   :  { %v2770_v62 = vmul.f32 0.5, %v2764_v21 }
 0xdab   :  { %v2776_v59 = vmul.f32 %v2770_v62, %v2717_v11  ;;  %v2947_v11 = vshrl.u32 %v62_v63, 7 }
 0xdad   :  { %3252 = vmatmul.msk.f32.gmra.mxu3 %vm1429_vm12, %v2776_v59  ;;  %v2948_v32 = vadd.s32 8, %v2947_v11  ;;  %vm3010_vm13 = vcmp.eq.s32.totalorder %v2947_v11, %v3325_v4 }
 0xdae   :  { %v3591_v22 = vpop.eup %3590  ;;  %v3262_v51 = vsel %vm3010_vm13, 1.0, %v3647_v41 }
 0xdaf   :  { %v2765_v6 = vadd.f32 1.0, %v3591_v22  ;;  %v3017_v52 = vmul.f32 %v3262_v51, %v3016_v35  ;;  %vm3011_vm14 = vcmp.eq.s32.totalorder %v2948_v32, %v3325_v4 }
 0xdb0   :  { %v3263_v62 = vsel %vm3011_vm14, 1.0, %v3647_v41 }
 0xdb1   :  { %v2771_v46 = vmul.f32 0.5, %v2765_v6  ;;  %v3018_v59 = vmul.f32 %v3263_v62, %v3016_v35 }
 0xdb3   :  { %v2777_v38 = vmul.f32 %v2771_v46, %v2720_v24 }
 0xdb5   :  { %3253 = vmatmul.msk.f32.gmra.mxu3 %vm1429_vm12, %v2777_v38 }
 0xe0e   :  { %v2722_v56 = vpop.f32.mrf.mxu2 }
 0xe0f   :  { %v2723_v15 = vadd.f32 %v5218_v37, %v2722_v56 }
 0xe11   :  { %v2730_v50 = vmul.f32 %v2723_v15, %v2723_v15 }
 0xe13   :  { %v2736_v57 = vmul.f32 %v2730_v50, %v2723_v15 }
 0xe15   :  { %v2742_v40 = vmul.f32 0.044715, %v2736_v57 }
 0xe17   :  { %v2748_v49 = vadd.f32 %v2742_v40, %v2723_v15 }
 0xe18   :  { %v2823_v31 = vpop.f32.mrf.mxu3 }
 0xe19   :  { %v2754_v54 = vmul.f32 0.7978846, %v2748_v49  ;;  %v2839_v43 = vadd.f32 %v2823_v31, %v5078_v5 }
 0xe1b   :  { %3592 = vtanh.f32 %v2754_v54  ;;  %v2844_v7 = vadd.f32 %v3323_v26, %v2839_v43 }
 0xe1d   :  { %v2848_v47 = vsel %vm138_vm1, %v2844_v7, 0.0 }
 0xe1e   :  { %2849 = vadd.xlane.f32.xlu1 %v2848_v47 }
 0xe20   :  { %v2826_v53 = vpop.f32.mrf.mxu3 }
 0xe21   :  { %v3593_v33 = vpop.eup %3592  ;;  %v2840_v37 = vadd.f32 %v2826_v53, %v5084_v3 }
 0xe22   :  { %v2766_v29 = vadd.f32 1.0, %v3593_v33 }
 0xe23   :  { %v2845_v30 = vadd.f32 %v3323_v26, %v2840_v37 }
 0xe24   :  { %v2772_v48 = vmul.f32 0.5, %v2766_v29 }
 0xe25   :  { %v2851_v36 = vsel %vm138_vm1, %v2845_v30, 0.0 }
 0xe26   :  { %2852 = vadd.xlane.f32.xlu0 %v2851_v36  ;;  %v2778_v58 = vmul.f32 %v2772_v48, %v2723_v15 }
 0xe28   :  { %v2829_v34 = vpop.f32.mrf.mxu3  ;;  %3254 = vmatmul.msk.f32.gmra.mxu3 %vm1429_vm12, %v2778_v58  ;;  %vm2951_vm12 = vcmp.eq.s32.totalorder %v2950_v16, 0 }
 0xe29   :  { %v3255_v25 = vsel %vm2951_vm12, 1.0, %v3647_v41 }
 0xe2a   :  { %v2961_v8 = vperm.slane %v3255_v25, 0 }
 0xe30   :  { %v2831_v5 = vpop.f32.mrf.mxu3 }
 0xe31   :  { %v2841_v0 = vadd.f32 %v2831_v5, %v5092_v23  ;;  %v3324_v23 = vld [vmem:[%s5328_s9] ss:$0 sm:$0xff]  ;;  %v5292_v5 = vld [vmem:[%s5325_s6 + $0xa3] ss:$0 sm:$0xff] }
 0xe32   :  { %vm2955_vm6 = vcmp.eq.s32.totalorder %v2947_v11, %v3324_v23  ;;  %vm2956_vm10 = vcmp.eq.s32.totalorder %v2948_v32, %v3324_v23  ;;  %v57_v23 = vld [vmem:[%s5325_s6 + $0x90] sm:$0xff] }
 0xe33   :  { %v2846_v13 = vadd.f32 %v3323_v26, %v2841_v0  ;;  %v3256_v17 = vsel %vm2955_vm6, 1.0, %v3647_v41  ;;  %v3257_v39 = vsel %vm2956_vm10, 1.0, %v3647_v41 }
 0xe34   :  { %v2962_v12 = vmul.f32 %v3256_v17, %v2961_v8  ;;  %v2963_v45 = vmul.f32 %v3257_v39, %v2961_v8 }
 0xe35   :  { %v2854_v18 = vsel %vm138_vm1, %v2846_v13, 0.0 }
 0xe36   :  { %2855 = vadd.xlane.f32.xlu2 %v2854_v18 }
 0xe38   :  { %v2834_v55 = vpop.f32.mrf.mxu3 }
 0xe39   :  { %v2842_v3 = vadd.f32 %v2834_v55, %v5097_v27  ;;  %v59_v27 = vld [vmem:[%s5325_s6 + $0xa0] sm:$0x7]  ;;  %v3327_v55 = vld [vmem:[%s5325_s6 + $0xa4] ss:$0 sm:$0xff] }
 0xe3a   :  { %3258 = vmatpush.msk.msra.mxu1 %vm2971_vm8, %v59_v27  ;;  %3264 = vmatpush.msk.msra.mxu0 %vm2971_vm8, %v59_v27 }
 0xe3b   :  { %v2847_v61 = vadd.f32 %v3323_v26, %v2842_v3  ;;  %3259 = vmatmul.msk.f32.vlgmr.msra.gmra.mxu1 %vm2964_vm9, %v2962_v12  ;;  %3265 = vmatmul.msk.f32.vlgmr.msra.gmra.mxu0 %vm2964_vm9, %v3017_v52 }
 0xe3d   :  { %v2857_v2 = vsel %vm138_vm1, %v2847_v61, 0.0 }
 0xe3e   :  { %2858 = vadd.xlane.f32.xlu1 %v2857_v2 }
 0xe43   :  { %3260 = vmatmul.msk.f32.gmra.mxu1 %vm2964_vm9, %v2963_v45  ;;  %3266 = vmatmul.msk.f32.gmra.mxu0 %vm2964_vm9, %v3018_v59  ;;  %v58_v45 = vld [vmem:[%s5325_s6 + $0x98] sm:$0xff]  ;;  %s3648_s6 = smov [#allocation2]  }
 0xe44   :  { %s3059_s3 = sshll.u32 %s3648_s6, 4  ;;  %s3060_s3 = int_to_ptr.vmem [resolvable:$true] %s3059_s3 }
 0xe91   :  { %v2850_v63 = vpop.xlane.xlu1 %2849 }
 0xe92   :  { %v2860_v60 = vmul.f32 %v2850_v63, %v3795_v42 }
 0xe94   :  { %v2864_v10 = vsub.f32 %v2844_v7, %v2860_v60 }
 0xe96   :  { %v2868_v24 = vmul.f32 %v2864_v10, %v2864_v10 }
 0xe98   :  { %v2872_v9 = vsel %vm138_vm1, %v2868_v24, 0.0 }
 0xe99   :  { %2873 = vadd.xlane.f32.xlu0 %v2872_v9  ;;  %v2853_v14 = vpop.xlane.xlu0 %2852 }
 0xe9a   :  { %v2861_v19 = vmul.f32 %v2853_v14, %v3795_v42 }
 0xe9c   :  { %v5268_v44 = vsub.f32 %v2845_v30, %v2861_v19 }
 0xe9e   :  { %v2869_v28 = vmul.f32 %v5268_v44, %v5268_v44 }
 0xea0   :  { %v2875_v21 = vsel %vm138_vm1, %v2869_v28, 0.0 }
 0xea1   :  { %2876 = vadd.xlane.f32.xlu2 %v2875_v21 }
 0xea9   :  { %v2856_v22 = vpop.xlane.xlu2 %2855 }
 0xeaa   :  { %v2862_v6 = vmul.f32 %v2856_v22, %v3795_v42 }
 0xeab   :  { %v2837_v46 = vpop.f32.mrf.mxu3 }
 0xeac   :  { %v5276_v38 = vsub.f32 %v2846_v13, %v2862_v6 }
 0xeae   :  { %v2870_v56 = vmul.f32 %v5276_v38, %v5276_v38 }
 0xeb0   :  { %v2878_v15 = vsel %vm138_vm1, %v2870_v56, 0.0 }
 0xeb1   :  { %v2859_v50 = vpop.xlane.xlu1 %2858  ;;  %2879 = vadd.xlane.f32.xlu1 %v2878_v15 }
 0xeb2   :  { %v2863_v57 = vmul.f32 %v2859_v50, %v3795_v42 }
 0xeb4   :  { %v5282_v40 = vsub.f32 %v2847_v61, %v2863_v57 }
 0xeb6   :  { %v2871_v49 = vmul.f32 %v5282_v40, %v5282_v40 }
 0xeb8   :  { %v2881_v26 = vsel %vm138_vm1, %v2871_v49, 0.0  ;;  %v2992_v41 = vpop.f32.mrf.mxu1  ;;  %v3042_v56 = vpop.f32.mrf.mxu0 }
 0xeb9   :  { %2882 = vadd.xlane.f32.xlu0 %v2881_v26 }
 0xec0   :  { %v2995_v4 = vpop.f32.mrf.mxu1 }
 0xf0c   :  { %v2874_v31 = vpop.xlane.xlu0 %2873 }
 0xf0d   :  { %v2884_v54 = vmul.f32 %v2874_v31, %v3795_v42 }
 0xf0f   :  { %v2888_v43 = vadd.f32 1e-12, %v2884_v54 }
 0xf11   :  { %3594 = vrsqrt.f32 %v2888_v43  ;;  %vm2898_vm0 = vweird.f32 %v2888_v43 }
 0xf14   :  { %v2877_v7 = vpop.xlane.xlu2 %2876 }
 0xf15   :  { %v2885_v47 = vmul.f32 %v2877_v7, %v3795_v42 }
 0xf17   :  { %v3595_v53 = vpop.eup %3594  ;;  %v2889_v33 = vadd.f32 1e-12, %v2885_v47 }
 0xf18   :  { %v2893_v37 = vmul.f32 %v3595_v53, %v2888_v43  ;;  %vm2899_vm15 = vweird.f32 %v3595_v53  ;;  %v3045_v43 = vpop.f32.mrf.mxu0 }
 0xf19   :  { %3596 = vrsqrt.f32 %v2889_v33  ;;  %vm2900_vm2 = vmor %vm2898_vm0, %vm2899_vm15  ;;  %vm2908_vm3 = vweird.f32 %v2889_v33 }
 0xf1a   :  { %v2894_v29 = vmul.f32 %v3595_v53, %v2893_v37 }
 0xf1c   :  { %v2895_v30 = vmul.f32 0.5, %v2894_v29 }
 0xf1e   :  { %v2896_v48 = vsub.f32 1.5, %v2895_v30 }
 0xf1f   :  { %v3597_v36 = vpop.eup %3596 }
 0xf20   :  { %v2897_v58 = vmul.f32 %v3595_v53, %v2896_v48  ;;  %v2903_v34 = vmul.f32 %v3597_v36, %v2889_v33  ;;  %vm2909_vm7 = vweird.f32 %v3597_v36 }
 0xf21   :  { %vm2910_vm4 = vmor %vm2908_vm3, %vm2909_vm7 }
 0xf22   :  { %v2901_v0 = vsel %vm2900_vm2, %v3595_v53, %v2897_v58  ;;  %v2904_v13 = vmul.f32 %v3597_v36, %v2903_v34 }
 0xf23   :  { %v2932_v18 = vmul.f32 %v2901_v0, %v2864_v10 }
 0xf24   :  { %v2905_v3 = vmul.f32 0.5, %v2904_v13  ;;  %v2880_v61 = vpop.xlane.xlu1 %2879 }
 0xf25   :  { %v2886_v2 = vmul.f32 %v2880_v61, %v3795_v42  ;;  %v2937_v16 = vmul.f32 %v5292_v5, %v2932_v18 }
 0xf26   :  { %v2906_v11 = vsub.f32 1.5, %v2905_v3 }
 0xf27   :  { %v2890_v25 = vadd.f32 1e-12, %v2886_v2  ;;  %v2942_v8 = vadd.f32 %v3327_v55, %v2937_v16 }
 0xf28   :  { %v2907_v27 = vmul.f32 %v3597_v36, %v2906_v11 }
 0xf29   :  { %3598 = vrsqrt.f32 %v2890_v25  ;;  %v2998_v17 = vadd.f32 %v2942_v8, %v57_v23  ;;  %vm2918_vm12 = vweird.f32 %v2890_v25 }
 0xf2a   :  { %v2911_v12 = vsel %vm2910_vm4, %v3597_v36, %v2907_v27 }
 0xf2b   :  { %v3000_v63 = vadd.f32 %v2998_v17, %v2992_v41  ;;  %v2933_v32 = vmul.f32 %v2911_v12, %v5268_v44 }
 0xf2c   :  { %v2883_v60 = vpop.xlane.xlu0 %2882 }
 0xf2d   :  { %3002 = vst.msk [vmem:[#allocation2] sm:$0xff] %vm138_vm1, %v3000_v63  ;;  %v2887_v10 = vmul.f32 %v2883_v60, %v3795_v42  ;;  %v2938_v39 = vmul.f32 %v5292_v5, %v2933_v32 }
 0xf2f   :  { %v3599_v24 = vpop.eup %3598  ;;  %v2891_v9 = vadd.f32 1e-12, %v2887_v10  ;;  %v2943_v14 = vadd.f32 %v3327_v55, %v2938_v39 }
 0xf30   :  { %v2913_v20 = vmul.f32 %v3599_v24, %v2890_v25  ;;  %vm2919_vm5 = vweird.f32 %v3599_v24 }
 0xf31   :  { %3600 = vrsqrt.f32 %v2891_v9  ;;  %v2999_v19 = vadd.f32 %v2943_v14, %v58_v45  ;;  %vm2920_vm6 = vmor %vm2918_vm12, %vm2919_vm5  ;;  %vm2928_vm9 = vweird.f32 %v2891_v9 }
 0xf32   :  { %v2914_v1 = vmul.f32 %v3599_v24, %v2913_v20 }
 0xf33   :  { %v3001_v44 = vadd.f32 %v2999_v19, %v2995_v4 }
 0xf34   :  { %v2915_v51 = vmul.f32 0.5, %v2914_v1 }
 0xf35   :  { %3003 = vst.msk [vmem:[#allocation2 + $0x8] sm:$0xff] %vm138_vm1, %v3001_v44 }
 0xf36   :  { %v2916_v35 = vsub.f32 1.5, %v2915_v51 }
 0xf37   :  { %v3601_v42 = vpop.eup %3600 }
 0xf38   :  { %v2917_v28 = vmul.f32 %v3599_v24, %v2916_v35  ;;  %v2923_v52 = vmul.f32 %v3601_v42, %v2891_v9  ;;  %vm2929_vm8 = vweird.f32 %v3601_v42 }
 0xf39   :  { %vm2930_vm10 = vmor %vm2928_vm9, %vm2929_vm8 }
 0xf3a   :  { %v2921_v21 = vsel %vm2920_vm6, %v3599_v24, %v2917_v28  ;;  %v2924_v62 = vmul.f32 %v3601_v42, %v2923_v52 }
 0xf3b   :  { %v2934_v59 = vmul.f32 %v2921_v21, %v5276_v38 }
 0xf3c   :  { %v2925_v22 = vmul.f32 0.5, %v2924_v62 }
 0xf3d   :  { %v2939_v6 = vmul.f32 %v5292_v5, %v2934_v59 }
 0xf3e   :  { %v2926_v46 = vsub.f32 1.5, %v2925_v22 }
 0xf3f   :  { %v2944_v15 = vadd.f32 %v3327_v55, %v2939_v6 }
 0xf40   :  { %v2927_v50 = vmul.f32 %v3601_v42, %v2926_v46 }
 0xf41   :  { %v3048_v57 = vadd.f32 %v2944_v15, %v57_v23 }
 0xf42   :  { %v2931_v49 = vsel %vm2930_vm10, %v3601_v42, %v2927_v50 }
 0xf43   :  { %v3050_v26 = vadd.f32 %v3048_v57, %v3042_v56  ;;  %v2935_v31 = vmul.f32 %v2931_v49, %v5282_v40 }
 0xf45   :  { %3053 = vst.msk [vmem:[#allocation2 + $0x10] sm:$0xff] %vm138_vm1, %v3050_v26  ;;  %v2940_v54 = vmul.f32 %v5292_v5, %v2935_v31 }
 0xf47   :  { %v2945_v38 = vadd.f32 %v3327_v55, %v2940_v54 }
 0xf49   :  { %v3049_v7 = vadd.f32 %v2945_v38, %v58_v45 }
 0xf4b   :  { %v3051_v47 = vadd.f32 %v3049_v7, %v3045_v43 }
 0xf4d   :  { %3054 = vst.msk [vmem:[#allocation2 + $0x18] sm:$0xff] %vm138_vm1, %v3051_v47 }
 0xf4e   :  { %3067 = dma.vmem_to_hbm [thread:$0]  %s3060_s3, 512, %s3062_s23, [#allocation3], %s3649_s24, %s3649_s24, %s3650_s0  }
 0xf4f   :  { %3641 = dma.done.wait [#allocation3], 512  }
 0xf50   :  { %3642 = vsyncadd [#allocation3], 4294966784 }
 0xf51   :  { %3072 = vsyncpa [#allocation3], 1 }

</bundles_post_ra>
